<compile_context>
chip_gen: v7x
topology: tpu7x:2x2x1
jax: 0.10.0
libtpu: 0.0.40
codegen_flags: <defaults>
</compile_context>

<pallas_src>
import math
from functools import partial

import jax
import jax.numpy as jnp
from jax import lax
from jax.experimental import pallas as pl
from jax.experimental.pallas import tpu as pltpu

HID_DIM = 768
HIDDEN_DECODER_SIZE = 256
LN_EPS = 1e-12
_INV_SQRT2 = 1.0 / math.sqrt(2.0)
_MiB = 1024 * 1024


def _round_up(a, b):
    return ((a + b - 1) // b) * b


def _tensorcores_per_device():
    """Best-effort TensorCore count of the local device (v7x has 2)."""
    try:
        return max(1, int(getattr(jax.devices()[0], "num_cores", 1) or 1))
    except Exception:
        return 1


# ----------------------------------------------------------------------------
# Host-side parameter folding: LayerNorm affine (+ optional sdp scale) -> w2/b2
# ----------------------------------------------------------------------------
def fold_proj_params(params, scale=1.0):
    """(w1,b1,gamma,beta,w2,b2) -> (w1,b1,w2',b2') with LN affine and `scale`
    folded into the second Linear (algebraically exact, done in f32)."""
    w1, b1, g, beta, w2, b2 = params
    w2f = (g.reshape(-1, 1) * w2) * scale          # (H2, D)
    b2f = (beta @ w2 + b2) * scale                 # (1, D)
    return (w1, b1, w2f, b2f)


# ----------------------------------------------------------------------------
# Kernel 1: fused projection MLP (Linear -> GeLU -> LayerNorm -> Linear)
# ----------------------------------------------------------------------------
def proj_kernel(x_ref, w1_ref, b1_ref, w2_ref, b2_ref, o_ref,
                *, normalize, approx_gelu):
    # x / w1 / w2 are bf16 (native MXU path); accumulate + normalize in f32.
    h = jnp.dot(x_ref[...], w1_ref[...],
                preferred_element_type=jnp.float32) + b1_ref[...]
    if approx_gelu:
        # Optional tanh-approx GeLU (EUP path) for VALU-bound v6e/v7x; off by
        # default to keep BERT's exact-erf semantics.
        h = jax.nn.gelu(h, approximate=True)
    else:
        # BERT GeLU: 0.5 * x * (1 + erf(x / sqrt(2)))
        h = 0.5 * h * (1.0 + lax.erf(h * _INV_SQRT2))
    # LayerNorm stats, two-pass variance (no E[x^2]-E[x]^2 cancellation) and
    # EUP rsqrt instead of a VPU divide.  Gamma/beta are folded into w2/b2.
    mu = jnp.mean(h, axis=-1, keepdims=True)
    d = h - mu
    var = jnp.mean(d * d, axis=-1, keepdims=True)
    h = d * lax.rsqrt(var + LN_EPS)
    out = jnp.dot(h.astype(w2_ref.dtype), w2_ref[...],
                  preferred_element_type=jnp.float32) + b2_ref[...]
    if normalize:
        # cosine metric: row L2-normalization on the f32 result (before the
        # bf16 cast), so the match kernel stays a pure contraction.
        out = out * lax.rsqrt(jnp.sum(out * out, axis=-1, keepdims=True))
    o_ref[...] = out.astype(o_ref.dtype)


def run_projection(x, folded_params, *, tm=512, normalize=False,
                   approx_gelu=False, out_dtype=jnp.bfloat16):
    """x: (M, H) flattened tokens -> (M, D) in `out_dtype`."""
    w1, b1, w2, b2 = folded_params
    M, H = x.shape
    H2 = w1.shape[1]
    D = w2.shape[1]

    # bf16 MXU inputs, f32 biases (accumulation happens in f32 in-kernel).
    x = x.astype(jnp.bfloat16)
    w1 = w1.astype(jnp.bfloat16)
    w2 = w2.astype(jnp.bfloat16)
    b1 = b1.astype(jnp.float32)
    b2 = b2.astype(jnp.float32)

    # Row tile: as large as possible (MXU-shaped, multiple of 8).  Only split
    # the work into >= n_tc grid steps when the chip actually has more than
    # one TensorCore (v7x); on v5e/v6e use the full tile for small M.
    n_tc = _tensorcores_per_device()
    tm = max(8, min(tm, _round_up(pl.cdiv(M, n_tc), 8)))
    grid = (pl.cdiv(M, tm),)

    return pl.pallas_call(
        partial(proj_kernel, normalize=normalize, approx_gelu=approx_gelu),
        out_shape=jax.ShapeDtypeStruct((M, D), out_dtype),
        grid_spec=pltpu.PrefetchScalarGridSpec(
            num_scalar_prefetch=0,
            grid=grid,
            in_specs=[
                pl.BlockSpec((tm, H), lambda i: (i, 0)),
                pl.BlockSpec((H, H2), lambda i: (0, 0)),   # constant weights:
                pl.BlockSpec((1, H2), lambda i: (0, 0)),   # index_map const =>
                pl.BlockSpec((H2, D), lambda i: (0, 0)),   # no re-DMA per step
                pl.BlockSpec((1, D), lambda i: (0, 0)),
            ],
            out_specs=pl.BlockSpec((tm, D), lambda i: (i, 0)),
        ),
        # ~12 MiB working set at tm=512 (bf16 weights double-buffered + f32
        # intermediates); raise further (and re-check v7x's 64 MiB physical)
        # before using tm >= 1024.
        compiler_params=pltpu.CompilerParams(
            dimension_semantics=("parallel",),
            vmem_limit_bytes=32 * _MiB),
    )(x, w1, b1, w2, b2)


# ----------------------------------------------------------------------------
# Kernel 2: batched matching contraction (identical for 'sdp' and 'cosine')
# ----------------------------------------------------------------------------
def match_kernel(l_ref, vt_ref, o_ref):
    # l: (bb, tl, D) bf16, vt: (bb, D, Np) bf16 -> o: (bb, tl, Np)
    # Standard (M,K)x(K,N) MXU feed per batch: LHS contracts its lane dim,
    # RHS (pre-transposed vision) contracts its sublane dim.
    o_ref[...] = lax.dot_general(
        l_ref[...], vt_ref[...],
        dimension_numbers=(((2,), (1,)), ((0,), (0,))),
        preferred_element_type=jnp.float32).astype(o_ref.dtype)


def run_matching(l, vt, *, bb_max=8, tl=512, out_dtype=jnp.float32):
    """l: (B, L, D) bf16, vt: (B, D, Np) bf16 -> (B, L, Np) in out_dtype."""
    B, L, D = l.shape
    _, _, Np = vt.shape

    tl = max(8, min(_round_up(tl, 8), _round_up(L, 8)))

    # VMEM-aware batch-per-step cap: each step holds double-buffered l / vt /
    # out blocks; keep them under a conservative budget (safe on v7x's 64 MiB
    # physical VMEM as well as v5e/v6e).
    per_batch = 2 * (tl * D * l.dtype.itemsize
                     + D * Np * vt.dtype.itemsize
                     + tl * Np * jnp.dtype(out_dtype).itemsize)
    budget = 24 * _MiB
    bb = max(1, min(bb_max, budget // max(per_batch, 1), B))

    # Two 'parallel' axes (batch tiles x L tiles) so both v7x TensorCores have
    # work even when B is tiny.
    grid = (pl.cdiv(B, bb), pl.cdiv(L, tl))

    return pl.pallas_call(
        match_kernel,
        out_shape=jax.ShapeDtypeStruct((B, L, Np), out_dtype),
        grid_spec=pltpu.PrefetchScalarGridSpec(
            num_scalar_prefetch=0,
            grid=grid,
            in_specs=[
                pl.BlockSpec((bb, tl, D), lambda b, li: (b, li, 0)),
                pl.BlockSpec((bb, D, Np), lambda b, li: (b, 0, 0)),
            ],
            out_specs=pl.BlockSpec((bb, tl, Np), lambda b, li: (b, li, 0)),
        ),
        compiler_params=pltpu.CompilerParams(
            dimension_semantics=("parallel", "parallel"),
            vmem_limit_bytes=32 * _MiB),
    )(l, vt)


# ----------------------------------------------------------------------------
# Module wrapper
# ----------------------------------------------------------------------------
def init_proj_params(key, hid_dim=HID_DIM, out_dim=HIDDEN_DECODER_SIZE):
    k1, k2, k3, k4, k5, k6 = jax.random.split(key, 6)
    h2 = hid_dim * 2
    w1 = jax.random.normal(k1, (hid_dim, h2), jnp.float32) * 0.02
    b1 = jax.random.normal(k2, (1, h2), jnp.float32) * 0.02
    gamma = 1.0 + 0.1 * jax.random.normal(k3, (1, h2), jnp.float32)
    beta = 0.1 * jax.random.normal(k4, (1, h2), jnp.float32)
    w2 = jax.random.normal(k5, (h2, out_dim), jnp.float32) * 0.02
    b2 = jax.random.normal(k6, (1, out_dim), jnp.float32) * 0.02
    return (w1, b1, gamma, beta, w2, b2)


def matching_decoder_lv(lang_feat, vis_feat, lang_params, vis_params, metric,
                        *, approx_gelu=False, match_dtype=jnp.float32):
    assert metric in ("sdp", "cosine")
    B, L, H = lang_feat.shape
    _, N, _ = vis_feat.shape
    D = vis_params[4].shape[1]  # decoder size = v.size(-1)

    # Fold LN affine into w2/b2 for both towers; additionally fold the sdp
    # 1/sqrt(D) score scale into the language side so the match kernel writes
    # the final scores with no post-multiply.
    scale = (1.0 / math.sqrt(D)) if metric == "sdp" else 1.0
    normalize = metric == "cosine"
    lang_p = fold_proj_params(lang_params, scale=scale)
    vis_p = fold_proj_params(vis_params)

    # Note: for very small M the two projections could share one pallas_call
    # (grid axis over {lang, vis}); kept separate here for clarity.
    l = run_projection(lang_feat.reshape(B * L, H), lang_p,
                       normalize=normalize, approx_gelu=approx_gelu
                       ).reshape(B, L, D)
    v = run_projection(vis_feat.reshape(B * N, H), vis_p,
                       normalize=normalize, approx_gelu=approx_gelu
                       ).reshape(B, N, D)

    # Lane-dense matching output: zero-pad the vision-token axis up to a
    # multiple of 128 so the (B, L, Np) stores are unmasked, then slice.
    Np = _round_up(N, 128)
    if Np != N:
        v = jnp.pad(v, ((0, 0), (0, Np - N), (0, 0)))
    # Pre-transposed vision feed: D on sublanes, tokens on lanes -> MXU-native
    # RHS, no per-step XLU transpose inside the match kernel.
    vt = jnp.swapaxes(v, 1, 2)  # (B, D, Np)
    # TODO(synk): emit vt directly from the vision projection's out_specs to
    # skip this one-time XLA transpose for very large N.

    out = run_matching(l, vt, out_dtype=match_dtype)
    return out[:, :, :N]


# ----------------------------------------------------------------------------
# Pure-JAX (f32) reference, matching the PyTorch module semantics
# ----------------------------------------------------------------------------
def _proj_ref(x, params):
    w1, b1, g, beta, w2, b2 = params
    h = x @ w1 + b1
    h = 0.5 * h * (1.0 + lax.erf(h / jnp.sqrt(2.0)))
    mu = jnp.mean(h, axis=-1, keepdims=True)
    var = jnp.mean((h - mu) ** 2, axis=-1, keepdims=True)
    h = (h - mu) / jnp.sqrt(var + LN_EPS) * g + beta
    return h @ w2 + b2


def _ref(lang_feat, vis_feat, lang_params, vis_params, metric):
    l = _proj_ref(lang_feat, lang_params)
    v = _proj_ref(vis_feat, vis_params)
    if metric == "sdp":
        return jnp.einsum("bld,bnd->bln", l, v) / math.sqrt(v.shape[-1])
    ln = l / jnp.linalg.norm(l, axis=-1, keepdims=True)
    vn = v / jnp.linalg.norm(v, axis=-1, keepdims=True)
    return jnp.einsum("bld,bnd->bln", ln, vn)


if __name__ == "__main__":
    key = jax.random.PRNGKey(0)
    k_lang, k_vis, k_lp, k_vp = jax.random.split(key, 4)

    B, L, N = 2, 8, 16
    lang_feat = jax.random.normal(k_lang, (B, L, HID_DIM), jnp.float32)
    vis_feat = jax.random.normal(k_vis, (B, N, HID_DIM), jnp.float32)

    lang_params = init_proj_params(k_lp)
    vis_params = init_proj_params(k_vp)

    ok = True
    for metric in ("sdp", "cosine"):
        out = matching_decoder_lv(lang_feat, vis_feat, lang_params, vis_params,
                                  metric)
        out = jax.block_until_ready(out)
        ref = _ref(lang_feat, vis_feat, lang_params, vis_params, metric)
        if out.shape != (B, L, N) or out.dtype != jnp.float32:
            ok = False
        # bf16 matmul inputs / f32 accumulation vs. the pure-f32 reference.
        if not jnp.allclose(out, ref, atol=5e-2, rtol=5e-2):
            ok = False

    if ok:
        print("KERNEL_OK")
</pallas_src>

<mosaic_0001>
module attributes {stable_mosaic.version = 11 : i64} {
  func.func @proj_kernel(%arg0: i32, %arg1: memref<16x768xbf16, #tpu.memory_space<vmem>>, %arg2: memref<768x1536xbf16, #tpu.memory_space<vmem>>, %arg3: memref<1x1536xf32, #tpu.memory_space<vmem>>, %arg4: memref<1536x256xbf16, #tpu.memory_space<vmem>>, %arg5: memref<1x256xf32, #tpu.memory_space<vmem>>, %arg6: memref<16x256xbf16, #tpu.memory_space<vmem>>) attributes {dimension_semantics = [#tpu.dimension_semantics<parallel>], iteration_bounds = array<i64: 1>, scalar_prefetch = 0 : i64, scratch_operands = 0 : i64, tpu.core_type = #tpu.core_type<tc>, window_params = [{transform_indices = @transform_0, window_bounds = array<i64: 16, 768>}, {pipeline_mode = #tpu.pipeline_mode<synchronous>, transform_indices = @transform_1, window_bounds = array<i64: 768, 1536>}, {pipeline_mode = #tpu.pipeline_mode<synchronous>, transform_indices = @transform_2, window_bounds = array<i64: 1, 1536>}, {pipeline_mode = #tpu.pipeline_mode<synchronous>, transform_indices = @transform_3, window_bounds = array<i64: 1536, 256>}, {pipeline_mode = #tpu.pipeline_mode<synchronous>, transform_indices = @transform_4, window_bounds = array<i64: 1, 256>}, {transform_indices = @transform_5, window_bounds = array<i64: 16, 256>}]} {
    %c0 = arith.constant 0 : index
    %c0_0 = arith.constant 0 : index
    %0 = vector.load %arg1[%c0, %c0_0] : memref<16x768xbf16, #tpu.memory_space<vmem>>, vector<16x768xbf16>
    %c0_1 = arith.constant 0 : index
    %c0_2 = arith.constant 0 : index
    %1 = vector.load %arg2[%c0_1, %c0_2] : memref<768x1536xbf16, #tpu.memory_space<vmem>>, vector<768x1536xbf16>
    %cst = arith.constant dense<0.000000e+00> : vector<16x1536xf32>
    %2 = tpu.matmul %0, %1, %cst {dimension_numbers = #tpu.dot_dimension_numbers<[1], [0], [0], [1], [0, 0, 1, 1], [], []>} : vector<16x768xbf16>, vector<768x1536xbf16>, vector<16x1536xf32> -> vector<16x1536xf32>
    %c0_3 = arith.constant 0 : index
    %c0_4 = arith.constant 0 : index
    %3 = vector.load %arg3[%c0_3, %c0_4] : memref<1x1536xf32, #tpu.memory_space<vmem>>, vector<1x1536xf32>
    %4 = vector.broadcast %3 : vector<1x1536xf32> to vector<16x1536xf32>
    %5 = arith.addf %2, %4 : vector<16x1536xf32>
    %cst_5 = arith.constant 5.000000e-01 : f32
    %6 = vector.broadcast %cst_5 : f32 to vector<16x1536xf32>
    %7 = arith.mulf %6, %5 : vector<16x1536xf32>
    %cst_6 = arith.constant 0.707106769 : f32
    %8 = vector.broadcast %cst_6 : f32 to vector<16x1536xf32>
    %9 = arith.mulf %5, %8 : vector<16x1536xf32>
    %10 = math.erf %9 : vector<16x1536xf32>
    %cst_7 = arith.constant 1.000000e+00 : f32
    %11 = vector.broadcast %cst_7 : f32 to vector<16x1536xf32>
    %12 = arith.addf %11, %10 : vector<16x1536xf32>
    %13 = arith.mulf %7, %12 : vector<16x1536xf32>
    %cst_8 = arith.constant dense<0.000000e+00> : vector<16xf32>
    %14 = vector.multi_reduction <add>, %13, %cst_8 [1] : vector<16x1536xf32> to vector<16xf32>
    %15 = vector.shape_cast %14 : vector<16xf32> to vector<16x1xf32>
    %cst_9 = arith.constant 1.536000e+03 : f32
    %16 = vector.broadcast %cst_9 : f32 to vector<16x1xf32>
    %17 = arith.divf %15, %16 : vector<16x1xf32>
    %18 = vector.broadcast %17 : vector<16x1xf32> to vector<16x1536xf32>
    %19 = arith.subf %13, %18 : vector<16x1536xf32>
    %20 = arith.mulf %19, %19 : vector<16x1536xf32>
    %cst_10 = arith.constant dense<0.000000e+00> : vector<16xf32>
    %21 = vector.multi_reduction <add>, %20, %cst_10 [1] : vector<16x1536xf32> to vector<16xf32>
    %22 = vector.shape_cast %21 : vector<16xf32> to vector<16x1xf32>
    %cst_11 = arith.constant 1.536000e+03 : f32
    %23 = vector.broadcast %cst_11 : f32 to vector<16x1xf32>
    %24 = arith.divf %22, %23 : vector<16x1xf32>
    %cst_12 = arith.constant 9.99999996E-13 : f32
    %25 = vector.broadcast %cst_12 : f32 to vector<16x1xf32>
    %26 = arith.addf %24, %25 : vector<16x1xf32>
    %27 = math.rsqrt %26 : vector<16x1xf32>
    %28 = vector.broadcast %27 : vector<16x1xf32> to vector<16x1536xf32>
    %29 = arith.mulf %19, %28 : vector<16x1536xf32>
    %30 = arith.truncf %29 : vector<16x1536xf32> to vector<16x1536xbf16>
    %c0_13 = arith.constant 0 : index
    %c0_14 = arith.constant 0 : index
    %31 = vector.load %arg4[%c0_13, %c0_14] : memref<1536x256xbf16, #tpu.memory_space<vmem>>, vector<1536x256xbf16>
    %cst_15 = arith.constant dense<0.000000e+00> : vector<16x256xf32>
    %32 = tpu.matmul %30, %31, %cst_15 {dimension_numbers = #tpu.dot_dimension_numbers<[1], [0], [0], [1], [0, 0, 1, 1], [], []>} : vector<16x1536xbf16>, vector<1536x256xbf16>, vector<16x256xf32> -> vector<16x256xf32>
    %c0_16 = arith.constant 0 : index
    %c0_17 = arith.constant 0 : index
    %33 = vector.load %arg5[%c0_16, %c0_17] : memref<1x256xf32, #tpu.memory_space<vmem>>, vector<1x256xf32>
    %34 = vector.broadcast %33 : vector<1x256xf32> to vector<16x256xf32>
    %35 = arith.addf %32, %34 : vector<16x256xf32>
    %36 = arith.truncf %35 : vector<16x256xf32> to vector<16x256xbf16>
    %c0_18 = arith.constant 0 : index
    %c0_19 = arith.constant 0 : index
    %37 = vector.load %arg6[%c0_18, %c0_19] : memref<16x256xbf16, #tpu.memory_space<vmem>>, vector<16x256xbf16>
    tpu.vector_store %arg6[%c0_18, %c0_19], %36 {strides = array<i32>} : memref<16x256xbf16, #tpu.memory_space<vmem>>, vector<16x256xbf16>,
    return
  }
  func.func @transform_0(%arg0: i32) -> (i32, i32) {
    %c0_i32 = arith.constant 0 : i32
    %c0_i32_0 = arith.constant 0 : i32
    return %arg0, %c0_i32 : i32, i32
  }
  func.func @transform_1(%arg0: i32) -> (i32, i32) {
    %c0_i32 = arith.constant 0 : i32
    %c0_i32_0 = arith.constant 0 : i32
    %c0_i32_1 = arith.constant 0 : i32
    return %c0_i32, %c0_i32_0 : i32, i32
  }
  func.func @transform_2(%arg0: i32) -> (i32, i32) {
    %c0_i32 = arith.constant 0 : i32
    %c0_i32_0 = arith.constant 0 : i32
    %c0_i32_1 = arith.constant 0 : i32
    return %c0_i32, %c0_i32_0 : i32, i32
  }
  func.func @transform_3(%arg0: i32) -> (i32, i32) {
    %c0_i32 = arith.constant 0 : i32
    %c0_i32_0 = arith.constant 0 : i32
    %c0_i32_1 = arith.constant 0 : i32
    return %c0_i32, %c0_i32_0 : i32, i32
  }
  func.func @transform_4(%arg0: i32) -> (i32, i32) {
    %c0_i32 = arith.constant 0 : i32
    %c0_i32_0 = arith.constant 0 : i32
    %c0_i32_1 = arith.constant 0 : i32
    return %c0_i32, %c0_i32_0 : i32, i32
  }
  func.func @transform_5(%arg0: i32) -> (i32, i32) {
    %c0_i32 = arith.constant 0 : i32
    %c0_i32_0 = arith.constant 0 : i32
    return %arg0, %c0_i32 : i32, i32
  }
}

</mosaic_0001>

<bundles_post_ra>
// kernel: tpu_custom_call.1
= control target key start
LH: loop header
LB: loop body
LE: loop exit
PB: predicated region body
PF: predicated region fallthrough
CT: control target
= control target key end

     0   :  { %10 = vsyncpa [#allocation3], 0  ;;  %s9030_s0 = inlined_call_operand.hbm [shape: bf16[16,768], index: 0, kind: input, shape index: {}]   ;;  %s9031_s1 = inlined_call_operand.hbm [shape: bf16[768,1536], index: 1, kind: input, shape index: {}]   ;;  %s9032_s2 = inlined_call_operand.hbm [shape: f32[1,1536], index: 2, kind: input, shape index: {}]   ;;  %s9033_s3 = inlined_call_operand.hbm [shape: bf16[1536,256], index: 3, kind: input, shape index: {}]   ;;  %s9034_s4 = inlined_call_operand.hbm [shape: f32[1,256], index: 4, kind: input, shape index: {}]   ;;  %s9035_s5 = inlined_call_operand.hbm [shape: bf16[16,256], index: 5, kind: output, shape index: {}]  }
   0x1   :  { %11 = vsyncpa [#allocation6], 0 }
   0x2   :  { %12 = vsyncpa [#allocation9], 0 }
   0x3   :  { %13 = vsyncpa [#allocation4], 0  ;;  %s8386_s18 = smov [#allocation5]   ;;  %s8246_s22 = scalar_lea.hbm %s9031_s1, 73728 }
   0x4   :  { %s31_s19 = sshll.u32 %s8386_s18, 4  ;;  %p8247_p0 = scmp.ne.s32.totalorder %s9031_s1, %s8246_s22  ;;  %s32_s19 = int_to_ptr.vmem [resolvable:$true] %s31_s19 }
   0x5   :  { %p8250_p1 = scmp.lt.u32.totalorder %s8246_s22, %s9031_s1 }
   0x7   :  { %p8252_p2 = pnand %p8250_p1, %p8247_p0 }
   0x9   :  { %8255 = shalt.err (!%p8252_p2)
}
   0xa   :  { %s8256_s27 = scalar_lea.vmem %s32_s19, 73728  ;;  %p8261_p4 = scmp.lt.s32.totalorder %s32_s19, %s32_s19 }
   0xb   :  { %p8257_p3 = scmp.ne.s32.totalorder %s32_s19, %s8256_s27  ;;  %p8262_p5 = scmp.lt.s32.totalorder %s8256_s27, %s8256_s27 }
   0xd   :  { %p8263_p6 = por %p8262_p5, %p8261_p4 }
   0xf   :  { %p8264_p7 = pnand %p8263_p6, %p8257_p3 }
  0x11   :  { %8267 = shalt.err (!%p8264_p7)
}
  0x12   :  { %s8387_s28 = smov 768   ;;  %s8388_s29 = smov 48  }
  0x13   :  { %37 = dma.hbm_to_vmem [thread:$0]  %s9031_s1, 73728, %s32_s19, [#allocation6], %s8387_s28, %s8387_s28, %s8388_s29  }
  0x14   :  { %s8389_s7 = smov [#allocation8]   ;;  %s8268_s11 = scalar_lea.hbm %s9033_s3, 24576 }
  0x15   :  { %s53_s8 = sshll.u32 %s8389_s7, 4  ;;  %p8269_p8 = scmp.ne.s32.totalorder %s9033_s3, %s8268_s11  ;;  %s54_s8 = int_to_ptr.vmem [resolvable:$true] %s53_s8 }
  0x16   :  { %p8272_p9 = scmp.lt.u32.totalorder %s8268_s11, %s9033_s3 }
  0x18   :  { %p8274_p10 = pnand %p8272_p9, %p8269_p8 }
  0x1a   :  { %8277 = shalt.err (!%p8274_p10)
}
  0x1b   :  { %s8278_s16 = scalar_lea.vmem %s54_s8, 24576  ;;  %p8283_p12 = scmp.lt.s32.totalorder %s54_s8, %s54_s8 }
  0x1c   :  { %p8279_p11 = scmp.ne.s32.totalorder %s54_s8, %s8278_s16  ;;  %p8284_p13 = scmp.lt.s32.totalorder %s8278_s16, %s8278_s16 }
  0x1e   :  { %p8285_p0 = por %p8284_p13, %p8283_p12 }
  0x20   :  { %p8286_p1 = pnand %p8285_p0, %p8279_p11 }
  0x22   :  { %8289 = shalt.err (!%p8286_p1)
}
  0x23   :  { %s8390_s1 = smov 128   ;;  %s8391_s17 = smov 8  }
  0x24   :  { %59 = dma.hbm_to_vmem [thread:$0]  %s9033_s3, 24576, %s54_s8, [#allocation9], %s8390_s1, %s8390_s1, %s8391_s17  }
  0x25   :  { %s8392_s20 = smov [#allocation2]   ;;  %s8290_s24 = scalar_lea.hbm %s9030_s0, 768 }
  0x26   :  { %s19_s21 = sshll.u32 %s8392_s20, 4  ;;  %p8291_p2 = scmp.ne.s32.totalorder %s9030_s0, %s8290_s24  ;;  %s20_s21 = int_to_ptr.vmem [resolvable:$true] %s19_s21 }
  0x27   :  { %p8294_p3 = scmp.lt.u32.totalorder %s8290_s24, %s9030_s0 }
  0x29   :  { %p8296_p4 = pnand %p8294_p3, %p8291_p2 }
  0x2b   :  { %8299 = shalt.err (!%p8296_p4)
}
  0x2c   :  { %s8300_s29 = scalar_lea.vmem %s20_s21, 768  ;;  %p8305_p6 = scmp.lt.s32.totalorder %s20_s21, %s20_s21 }
  0x2d   :  { %p8301_p5 = scmp.ne.s32.totalorder %s20_s21, %s8300_s29  ;;  %p8306_p7 = scmp.lt.s32.totalorder %s8300_s29, %s8300_s29 }
  0x2f   :  { %p8307_p8 = por %p8306_p7, %p8305_p6 }
  0x31   :  { %p8308_p9 = pnand %p8307_p8, %p8301_p5 }
  0x33   :  { %8311 = shalt.err (!%p8308_p9)
}
  0x34   :  { %s8393_s3 = smov 384   ;;  %s8394_s30 = smov 24  }
  0x35   :  { %25 = dma.hbm_to_vmem [thread:$0]  %s9030_s0, 768, %s20_s21, [#allocation3], %s8393_s3, %s8393_s3, %s8394_s30  }
  0x36   :  { %s8395_s8 = smov [#allocation7]   ;;  %s8396_s10 = smov [#allocation10]  }
  0x37   :  { %s44_s9 = sshll.u32 %s8395_s8, 4  ;;  %s66_s11 = sshll.u32 %s8396_s10, 4  ;;  %s45_s9 = int_to_ptr.vmem [resolvable:$true] %s44_s9  ;;  %s67_s11 = int_to_ptr.vmem [resolvable:$true] %s66_s11 }
  0x38   :  { %s8312_s14 = scalar_lea.hbm %s9032_s2, 192 }
  0x39   :  { %p8313_p10 = scmp.ne.s32.totalorder %s9032_s2, %s8312_s14  ;;  %p8316_p11 = scmp.lt.u32.totalorder %s8312_s14, %s9032_s2 }
  0x3b   :  { %p8318_p12 = pnand %p8316_p11, %p8313_p10 }
  0x3d   :  { %8321 = shalt.err (!%p8318_p12)
}
  0x3e   :  { %s8322_s0 = scalar_lea.vmem %s45_s9, 192  ;;  %p8327_p0 = scmp.lt.s32.totalorder %s45_s9, %s45_s9 }
  0x3f   :  { %p8323_p13 = scmp.ne.s32.totalorder %s45_s9, %s8322_s0  ;;  %p8328_p1 = scmp.lt.s32.totalorder %s8322_s0, %s8322_s0 }
  0x41   :  { %p8329_p2 = por %p8328_p1, %p8327_p0 }
  0x43   :  { %p8330_p3 = pnand %p8329_p2, %p8323_p13 }
  0x45   :  { %8333 = shalt.err (!%p8330_p3)
}
  0x46   :  { %47 = dma.hbm_to_vmem [thread:$0]  %s9032_s2, 192, %s45_s9, [#allocation6]  }
  0x47   :  { %s8334_s24 = scalar_lea.hbm %s9034_s4, 32 }
  0x48   :  { %p8335_p4 = scmp.ne.s32.totalorder %s9034_s4, %s8334_s24  ;;  %p8338_p5 = scmp.lt.u32.totalorder %s8334_s24, %s9034_s4 }
  0x4a   :  { %p8340_p6 = pnand %p8338_p5, %p8335_p4 }
  0x4c   :  { %8343 = shalt.err (!%p8340_p6)
}
  0x4d   :  { %s8344_s29 = scalar_lea.vmem %s67_s11, 32  ;;  %p8349_p8 = scmp.lt.s32.totalorder %s67_s11, %s67_s11 }
  0x4e   :  { %p8345_p7 = scmp.ne.s32.totalorder %s67_s11, %s8344_s29  ;;  %p8350_p9 = scmp.lt.s32.totalorder %s8344_s29, %s8344_s29 }
  0x50   :  { %p8351_p10 = por %p8350_p9, %p8349_p8 }
  0x52   :  { %p8352_p11 = pnand %p8351_p10, %p8345_p7 }
  0x54   :  { %8355 = shalt.err (!%p8352_p11)
}
  0x55   :  { %69 = dma.hbm_to_vmem [thread:$0]  %s9034_s4, 32, %s67_s11, [#allocation9]  }
  0x56   :  { %8378 = dma.done.wait [#allocation3], 768  }
  0x57   :  { %8379 = vsyncadd [#allocation3], 4294966528 }
  0x58   :  { %8380 = dma.done.wait [#allocation6], 73920  }
  0x59   :  { %8381 = vsyncadd [#allocation6], 4294893376 }
  0x5a   :  { %8382 = dma.done.wait [#allocation9], 24608  }
  0x5b   :  { %8383 = vsyncadd [#allocation9], 4294942688  ;;  %v7021_v0 = vld [vmem:[#allocation5 + $0x4] ss:$48 sps:$4 sm:$0xff]   ;;  %v7023_v1 = vld [vmem:[#allocation5] ss:$48 sps:$4 sm:$0xff]  }
  0x5c   :  { %3641 = vmatprep.subr.bf16.mxu1 %v7021_v0  ;;  %v7024_v2 = vld [vmem:[#allocation5 + $0x64] ss:$48 sps:$4 sm:$0xff]   ;;  %v7026_v3 = vld [vmem:[#allocation5 + $0x60] ss:$48 sps:$4 sm:$0xff]   ;;  %s8397_s4 = smov [#allocation11]  }
  0x5d   :  { %3642 = vmatpush1.bf16.msra.mxu1 %v7023_v1  ;;  %v7027_v4 = vld [vmem:[#allocation5 + $0xc4] ss:$48 sps:$4 sm:$0xff]   ;;  %v7029_v5 = vld [vmem:[#allocation5 + $0xc0] ss:$48 sps:$4 sm:$0xff]   ;;  %s6121_s30 = sshll.u32 %s8397_s4, 4  ;;  %s6122_s30 = int_to_ptr.vmem [resolvable:$true] %s6121_s30 }
  0x5e   :  { %3643 = vmatprep.subr.bf16.mxu1 %v7024_v2  ;;  %v7030_v6 = vld [vmem:[#allocation5 + $0x124] ss:$48 sps:$4 sm:$0xff]   ;;  %v7032_v7 = vld [vmem:[#allocation5 + $0x120] ss:$48 sps:$4 sm:$0xff]   ;;  %s8356_s6 = scalar_lea.vmem %s6122_s30, 256  ;;  %p8361_p13 = scmp.lt.s32.totalorder %s6122_s30, %s6122_s30 }
  0x5f   :  { %v7033_v8 = vld [vmem:[#allocation5 + $0x184] ss:$48 sps:$4 sm:$0xff]   ;;  %v7035_v9 = vld [vmem:[#allocation5 + $0x180] ss:$48 sps:$4 sm:$0xff]   ;;  %p8357_p12 = scmp.ne.s32.totalorder %s6122_s30, %s8356_s6  ;;  %p8362_p0 = scmp.lt.s32.totalorder %s8356_s6, %s8356_s6 }
  0x60   :  { %v7036_v10 = vld [vmem:[#allocation5 + $0x1e4] ss:$48 sps:$4 sm:$0xff]   ;;  %v7038_v11 = vld [vmem:[#allocation5 + $0x1e0] ss:$48 sps:$4 sm:$0xff]  }
  0x61   :  { %3644 = vmatpush1.bf16.msra.mxu1 %v7026_v3  ;;  %v7039_v12 = vld [vmem:[#allocation5 + $0x244] ss:$48 sps:$4 sm:$0xff]   ;;  %v7041_v14 = vld [vmem:[#allocation5 + $0x240] ss:$48 sps:$4 sm:$0xff]   ;;  %p8363_p1 = por %p8362_p0, %p8361_p13 }
  0x62   :  { %3645 = vmatprep.subr.bf16.mxu1 %v7027_v4  ;;  %v7069_v13 = vld [vmem:[#allocation2 + $0x4] ss:$24 sps:$4 sm:$0xff]   ;;  %v7044_v16 = vld [vmem:[#allocation5 + $0x2a0] ss:$48 sps:$4 sm:$0xff]  }
  0x63   :  { %v7042_v15 = vld [vmem:[#allocation5 + $0x2a4] ss:$48 sps:$4 sm:$0xff]   ;;  %3673 = vmatprep.mubr.bf16.mxu1 %v7069_v13  ;;  %3931 = vmatprep.mubr.bf16.mxu0 %v7069_v13  ;;  %v7047_v18 = vld [vmem:[#allocation5 + $0x300] ss:$48 sps:$4 sm:$0xff]   ;;  %p8364_p2 = pnand %p8363_p1, %p8357_p12 }
  0x64   :  { %v7045_v17 = vld [vmem:[#allocation5 + $0x304] ss:$48 sps:$4 sm:$0xff]   ;;  %v7050_v20 = vld [vmem:[#allocation5 + $0x360] ss:$48 sps:$4 sm:$0xff]  }
  0x65   :  { %3646 = vmatpush1.bf16.msra.mxu1 %v7029_v5  ;;  %v7048_v19 = vld [vmem:[#allocation5 + $0x364] ss:$48 sps:$4 sm:$0xff]   ;;  %v7053_v22 = vld [vmem:[#allocation5 + $0x3c0] ss:$48 sps:$4 sm:$0xff]  }
  0x66   :  { %3647 = vmatprep.subr.bf16.mxu1 %v7030_v6  ;;  %v7051_v21 = vld [vmem:[#allocation5 + $0x3c4] ss:$48 sps:$4 sm:$0xff]   ;;  %v7056_v24 = vld [vmem:[#allocation5 + $0x420] ss:$48 sps:$4 sm:$0xff]  }
  0x67   :  { %v7054_v23 = vld [vmem:[#allocation5 + $0x424] ss:$48 sps:$4 sm:$0xff]   ;;  %v7059_v26 = vld [vmem:[#allocation5 + $0x480] ss:$48 sps:$4 sm:$0xff]  }
  0x68   :  { %v7057_v25 = vld [vmem:[#allocation5 + $0x484] ss:$48 sps:$4 sm:$0xff]   ;;  %v7062_v28 = vld [vmem:[#allocation5 + $0x4e0] ss:$48 sps:$4 sm:$0xff]  }
  0x69   :  { %3648 = vmatpush1.bf16.msra.mxu1 %v7032_v7  ;;  %v7060_v27 = vld [vmem:[#allocation5 + $0x4e4] ss:$48 sps:$4 sm:$0xff]   ;;  %v7065_v30 = vld [vmem:[#allocation5 + $0x540] ss:$48 sps:$4 sm:$0xff]  }
  0x6a   :  { %3649 = vmatprep.subr.bf16.mxu1 %v7033_v8  ;;  %v7063_v29 = vld [vmem:[#allocation5 + $0x544] ss:$48 sps:$4 sm:$0xff]   ;;  %v7068_v32 = vld [vmem:[#allocation5 + $0x5a0] ss:$48 sps:$4 sm:$0xff]  }
  0x6b   :  { %v7066_v31 = vld [vmem:[#allocation5 + $0x5a4] ss:$48 sps:$4 sm:$0xff]   ;;  %v8491_v34 = vld [vmem:[#allocation2] ss:$24 sps:$4 sm:$0xff]  }
  0x6c   :  { %v7073_v33 = vld [vmem:[#allocation5 + $0x604] ss:$48 sps:$4 sm:$0xff]   ;;  %v7071_v35 = vld [vmem:[#allocation5 + $0x600] ss:$48 sps:$4 sm:$0xff]  }
  0x6d   :  { %3650 = vmatpush1.bf16.msra.mxu1 %v7035_v9  ;;  %v8493_v36 = vld [vmem:[#allocation2 + $0xc] ss:$24 sps:$4 sm:$0xff]   ;;  %v7075_v38 = vld [vmem:[#allocation5 + $0x660] ss:$48 sps:$4 sm:$0xff]  }
  0x6e   :  { %3651 = vmatprep.subr.bf16.mxu1 %v7036_v10  ;;  %v7077_v37 = vld [vmem:[#allocation5 + $0x664] ss:$48 sps:$4 sm:$0xff]   ;;  %v7078_v40 = vld [vmem:[#allocation5 + $0x6c0] ss:$48 sps:$4 sm:$0xff]  }
  0x6f   :  { %v7080_v39 = vld [vmem:[#allocation5 + $0x6c4] ss:$48 sps:$4 sm:$0xff]   ;;  %v7182_v42 = vld [vmem:[#allocation5 + $0x10] ss:$48 sps:$4 sm:$0xff]  }
  0x70   :  { %v7180_v41 = vld [vmem:[#allocation5 + $0x14] ss:$48 sps:$4 sm:$0xff]   ;;  %v7188_v45 = vld [vmem:[#allocation5 + $0x70] ss:$48 sps:$4 sm:$0xff]  }
  0x71   :  { %3652 = vmatpush1.bf16.msra.mxu1 %v7038_v11  ;;  %v7083_v43 = vld [vmem:[#allocation5 + $0x724] ss:$48 sps:$4 sm:$0xff]   ;;  %3899 = vmatprep.subr.bf16.mxu0 %v7180_v41  ;;  %v7081_v46 = vld [vmem:[#allocation5 + $0x720] ss:$48 sps:$4 sm:$0xff]  }
  0x72   :  { %3653 = vmatprep.subr.bf16.mxu1 %v7039_v12  ;;  %3900 = vmatpush1.bf16.msra.mxu0 %v7182_v42  ;;  %v7186_v44 = vld [vmem:[#allocation5 + $0x74] ss:$48 sps:$4 sm:$0xff]   ;;  %v7194_v49 = vld [vmem:[#allocation5 + $0xd0] ss:$48 sps:$4 sm:$0xff]  }
  0x73   :  { %v7086_v47 = vld [vmem:[#allocation5 + $0x784] ss:$48 sps:$4 sm:$0xff]   ;;  %3901 = vmatprep.subr.bf16.mxu0 %v7186_v44  ;;  %v7084_v50 = vld [vmem:[#allocation5 + $0x780] ss:$48 sps:$4 sm:$0xff]  }
  0x74   :  { %v7192_v48 = vld [vmem:[#allocation5 + $0xd4] ss:$48 sps:$4 sm:$0xff]   ;;  %v7200_v53 = vld [vmem:[#allocation5 + $0x130] ss:$48 sps:$4 sm:$0xff]  }
  0x75   :  { %3654 = vmatpush1.bf16.msra.mxu1 %v7041_v14  ;;  %v7089_v51 = vld [vmem:[#allocation5 + $0x7e4] ss:$48 sps:$4 sm:$0xff]   ;;  %v7087_v54 = vld [vmem:[#allocation5 + $0x7e0] ss:$48 sps:$4 sm:$0xff]  }
  0x76   :  { %3655 = vmatprep.subr.bf16.mxu1 %v7042_v15  ;;  %3902 = vmatpush1.bf16.msra.mxu0 %v7188_v45  ;;  %v7198_v52 = vld [vmem:[#allocation5 + $0x134] ss:$48 sps:$4 sm:$0xff]   ;;  %v7206_v57 = vld [vmem:[#allocation5 + $0x190] ss:$48 sps:$4 sm:$0xff]  }
  0x77   :  { %3903 = vmatprep.subr.bf16.mxu0 %v7192_v48  ;;  %v7092_v55 = vld [vmem:[#allocation5 + $0x844] ss:$48 sps:$4 sm:$0xff]   ;;  %v7090_v58 = vld [vmem:[#allocation5 + $0x840] ss:$48 sps:$4 sm:$0xff]  }
  0x78   :  { %v7204_v56 = vld [vmem:[#allocation5 + $0x194] ss:$48 sps:$4 sm:$0xff]   ;;  %v7212_v61 = vld [vmem:[#allocation5 + $0x1f0] ss:$48 sps:$4 sm:$0xff]  }
  0x79   :  { %3656 = vmatpush1.bf16.msra.mxu1 %v7044_v16  ;;  %v7095_v59 = vld [vmem:[#allocation5 + $0x8a4] ss:$48 sps:$4 sm:$0xff]   ;;  %v7093_v62 = vld [vmem:[#allocation5 + $0x8a0] ss:$48 sps:$4 sm:$0xff]  }
  0x7a   :  { %3657 = vmatprep.subr.bf16.mxu1 %v7045_v17  ;;  %3904 = vmatpush1.bf16.msra.mxu0 %v7194_v49  ;;  %v7210_v60 = vld [vmem:[#allocation5 + $0x1f4] ss:$48 sps:$4 sm:$0xff]   ;;  %v7218_v1 = vld [vmem:[#allocation5 + $0x250] ss:$48 sps:$4 sm:$0xff]  }
  0x7b   :  { %3905 = vmatprep.subr.bf16.mxu0 %v7198_v52  ;;  %v7098_v63 = vld [vmem:[#allocation5 + $0x904] ss:$48 sps:$4 sm:$0xff]   ;;  %v7096_v2 = vld [vmem:[#allocation5 + $0x900] ss:$48 sps:$4 sm:$0xff]  }
  0x7c   :  { %v7216_v0 = vld [vmem:[#allocation5 + $0x254] ss:$48 sps:$4 sm:$0xff]   ;;  %v7224_v5 = vld [vmem:[#allocation5 + $0x2b0] ss:$48 sps:$4 sm:$0xff]  }
  0x7d   :  { %3658 = vmatpush1.bf16.msra.mxu1 %v7047_v18  ;;  %v7101_v3 = vld [vmem:[#allocation5 + $0x964] ss:$48 sps:$4 sm:$0xff]   ;;  %v7099_v6 = vld [vmem:[#allocation5 + $0x960] ss:$48 sps:$4 sm:$0xff]  }
  0x7e   :  { %3659 = vmatprep.subr.bf16.mxu1 %v7048_v19  ;;  %3906 = vmatpush1.bf16.msra.mxu0 %v7200_v53  ;;  %v7222_v4 = vld [vmem:[#allocation5 + $0x2b4] ss:$48 sps:$4 sm:$0xff]   ;;  %v7230_v9 = vld [vmem:[#allocation5 + $0x310] ss:$48 sps:$4 sm:$0xff]  }
  0x7f   :  { %3907 = vmatprep.subr.bf16.mxu0 %v7204_v56  ;;  %v7104_v7 = vld [vmem:[#allocation5 + $0x9c4] ss:$48 sps:$4 sm:$0xff]   ;;  %v7102_v10 = vld [vmem:[#allocation5 + $0x9c0] ss:$48 sps:$4 sm:$0xff]  }
  0x80   :  { %v7228_v8 = vld [vmem:[#allocation5 + $0x314] ss:$48 sps:$4 sm:$0xff]   ;;  %v7236_v13 = vld [vmem:[#allocation5 + $0x370] ss:$48 sps:$4 sm:$0xff]  }
  0x81   :  { %3660 = vmatpush1.bf16.msra.mxu1 %v7050_v20  ;;  %v7107_v11 = vld [vmem:[#allocation5 + $0xa24] ss:$48 sps:$4 sm:$0xff]   ;;  %v7105_v14 = vld [vmem:[#allocation5 + $0xa20] ss:$48 sps:$4 sm:$0xff]  }
  0x82   :  { %3661 = vmatprep.subr.bf16.mxu1 %v7051_v21  ;;  %3908 = vmatpush1.bf16.msra.mxu0 %v7206_v57  ;;  %v7234_v12 = vld [vmem:[#allocation5 + $0x374] ss:$48 sps:$4 sm:$0xff]   ;;  %v7242_v17 = vld [vmem:[#allocation5 + $0x3d0] ss:$48 sps:$4 sm:$0xff]  }
  0x83   :  { %3909 = vmatprep.subr.bf16.mxu0 %v7210_v60  ;;  %v7110_v15 = vld [vmem:[#allocation5 + $0xa84] ss:$48 sps:$4 sm:$0xff]   ;;  %v7108_v18 = vld [vmem:[#allocation5 + $0xa80] ss:$48 sps:$4 sm:$0xff]  }
  0x84   :  { %v7240_v16 = vld [vmem:[#allocation5 + $0x3d4] ss:$48 sps:$4 sm:$0xff]   ;;  %v7248_v21 = vld [vmem:[#allocation5 + $0x430] ss:$48 sps:$4 sm:$0xff]  }
  0x85   :  { %3662 = vmatpush1.bf16.msra.mxu1 %v7053_v22  ;;  %v7113_v19 = vld [vmem:[#allocation5 + $0xae4] ss:$48 sps:$4 sm:$0xff]   ;;  %v7111_v22 = vld [vmem:[#allocation5 + $0xae0] ss:$48 sps:$4 sm:$0xff]  }
  0x86   :  { %3663 = vmatprep.subr.bf16.mxu1 %v7054_v23  ;;  %3910 = vmatpush1.bf16.msra.mxu0 %v7212_v61  ;;  %v7246_v20 = vld [vmem:[#allocation5 + $0x434] ss:$48 sps:$4 sm:$0xff]   ;;  %v7272_v41 = vld [vmem:[#allocation5 + $0x5b0] ss:$48 sps:$4 sm:$0xff]  }
  0x87   :  { %3911 = vmatprep.subr.bf16.mxu0 %v7216_v0  ;;  %v7116_v23 = vld [vmem:[#allocation5 + $0xb44] ss:$48 sps:$4 sm:$0xff]   ;;  %v7126_v42 = vld [vmem:[#allocation5 + $0xc60] ss:$48 sps:$4 sm:$0xff]  }
  0x88   :  { %v7276_v44 = vld [vmem:[#allocation5 + $0x610] ss:$48 sps:$4 sm:$0xff]   ;;  %v7278_v45 = vld [vmem:[#allocation5 + $0x614] ss:$48 sps:$4 sm:$0xff]  }
  0x89   :  { %3664 = vmatpush1.bf16.msra.mxu1 %v7056_v24  ;;  %v7252_v24 = vld [vmem:[#allocation5 + $0x494] ss:$48 sps:$4 sm:$0xff]   ;;  %v7282_v48 = vld [vmem:[#allocation5 + $0x670] ss:$48 sps:$4 sm:$0xff]  }
  0x8a   :  { %3665 = vmatprep.subr.bf16.mxu1 %v7057_v25  ;;  %3912 = vmatpush1.bf16.msra.mxu0 %v7218_v1  ;;  %v7254_v25 = vld [vmem:[#allocation5 + $0x490] ss:$48 sps:$4 sm:$0xff]   ;;  %v7284_v49 = vld [vmem:[#allocation5 + $0x674] ss:$48 sps:$4 sm:$0xff]  }
  0x8b   :  { %3913 = vmatprep.subr.bf16.mxu0 %v7222_v4  ;;  %v7288_v52 = vld [vmem:[#allocation5 + $0x6d0] ss:$48 sps:$4 sm:$0xff]   ;;  %v7290_v53 = vld [vmem:[#allocation5 + $0x6d4] ss:$48 sps:$4 sm:$0xff]  }
  0x8c   :  { %v7294_v56 = vld [vmem:[#allocation5 + $0x730] ss:$48 sps:$4 sm:$0xff]   ;;  %v7296_v57 = vld [vmem:[#allocation5 + $0x734] ss:$48 sps:$4 sm:$0xff]  }
  0x8d   :  { %3666 = vmatpush1.bf16.msra.mxu1 %v7059_v26  ;;  %v7114_v26 = vld [vmem:[#allocation5 + $0xb40] ss:$48 sps:$4 sm:$0xff]   ;;  %v7146_v61 = vld [vmem:[#allocation5 + $0xea4] ss:$48 sps:$4 sm:$0xff]  }
  0x8e   :  { %3667 = vmatprep.subr.bf16.mxu1 %v7060_v27  ;;  %3914 = vmatpush1.bf16.msra.mxu0 %v7224_v5  ;;  %v7119_v27 = vld [vmem:[#allocation5 + $0xba4] ss:$48 sps:$4 sm:$0xff]   ;;  %v7141_v60 = vld [vmem:[#allocation5 + $0xe40] ss:$48 sps:$4 sm:$0xff]  }
  0x8f   :  { %3915 = vmatprep.subr.bf16.mxu0 %v7228_v8  ;;  %v7144_v0 = vld [vmem:[#allocation5 + $0xea0] ss:$48 sps:$4 sm:$0xff]   ;;  %v7149_v1 = vld [vmem:[#allocation5 + $0xf04] ss:$48 sps:$4 sm:$0xff]  }
  0x90   :  { %v7147_v4 = vld [vmem:[#allocation5 + $0xf00] ss:$48 sps:$4 sm:$0xff]   ;;  %v7152_v5 = vld [vmem:[#allocation5 + $0xf64] ss:$48 sps:$4 sm:$0xff]  }
  0x91   :  { %3668 = vmatpush1.bf16.msra.mxu1 %v7062_v28  ;;  %v7258_v28 = vld [vmem:[#allocation5 + $0x4f4] ss:$48 sps:$4 sm:$0xff]   ;;  %v7150_v8 = vld [vmem:[#allocation5 + $0xf60] ss:$48 sps:$4 sm:$0xff]  }
  0x92   :  { %3669 = vmatprep.subr.bf16.mxu1 %v7063_v29  ;;  %3916 = vmatpush1.bf16.msra.mxu0 %v7230_v9  ;;  %v7260_v29 = vld [vmem:[#allocation5 + $0x4f0] ss:$48 sps:$4 sm:$0xff]   ;;  %v7155_v9 = vld [vmem:[#allocation5 + $0xfc4] ss:$48 sps:$4 sm:$0xff]  }
  0x93   :  { %3917 = vmatprep.subr.bf16.mxu0 %v7234_v12  ;;  %v7153_v12 = vld [vmem:[#allocation5 + $0xfc0] ss:$48 sps:$4 sm:$0xff]  }
  0x95   :  { %3670 = vmatpush1.bf16.msra.mxu1 %v7065_v30  ;;  %v7117_v30 = vld [vmem:[#allocation5 + $0xba0] ss:$48 sps:$4 sm:$0xff]  }
  0x96   :  { %3671 = vmatprep.subr.bf16.mxu1 %v7066_v31  ;;  %3918 = vmatpush1.bf16.msra.mxu0 %v7236_v13  ;;  %v7124_v31 = vld [vmem:[#allocation5 + $0xc04] ss:$48 sps:$4 sm:$0xff]  }
  0x97   :  { %3919 = vmatprep.subr.bf16.mxu0 %v7240_v16  ;;  %v7158_v13 = vld [vmem:[#allocation5 + $0x1024] ss:$48 sps:$4 sm:$0xff]   ;;  %v7156_v16 = vld [vmem:[#allocation5 + $0x1020] ss:$48 sps:$4 sm:$0xff]  }
  0x99   :  { %3672 = vmatpush1.bf16.msra.mxu1 %v7068_v32  ;;  %v8497_v32 = vld [vmem:[#allocation2 + $0x8] ss:$24 sps:$4 sm:$0xff]  }
  0x9a   :  { %3684 = vmatprep.subr.bf16.mxu1 %v7073_v33  ;;  %3920 = vmatpush1.bf16.msra.mxu0 %v7242_v17  ;;  %v7264_v33 = vld [vmem:[#allocation5 + $0x554] ss:$48 sps:$4 sm:$0xff]  }
  0x9b   :  { %3921 = vmatprep.subr.bf16.mxu0 %v7246_v20  ;;  %v7161_v17 = vld [vmem:[#allocation5 + $0x1084] ss:$48 sps:$4 sm:$0xff]   ;;  %v7159_v20 = vld [vmem:[#allocation5 + $0x1080] ss:$48 sps:$4 sm:$0xff]  }
  0x9c   :  { %3674 = vmatmul.mubr.bf16.vlgmr.msra.gmra.mrb[0].mxu1 %v8491_v34 }
  0x9d   :  { %3685 = vmatpush1.bf16.msra.mxu1 %v7071_v35  ;;  %3716 = vmatprep.mubr.bf16.mxu1 %v8493_v36  ;;  %v7122_v35 = vld [vmem:[#allocation5 + $0xc00] ss:$48 sps:$4 sm:$0xff]  }
  0x9e   :  { %3686 = vmatprep.subr.bf16.mxu1 %v7077_v37  ;;  %3922 = vmatpush1.bf16.msra.mxu0 %v7248_v21  ;;  %v7266_v37 = vld [vmem:[#allocation5 + $0x550] ss:$48 sps:$4 sm:$0xff]   ;;  %v7164_v21 = vld [vmem:[#allocation5 + $0x10e4] ss:$48 sps:$4 sm:$0xff]  }
  0x9f   :  { %3923 = vmatprep.subr.bf16.mxu0 %v7252_v24  ;;  %v7162_v24 = vld [vmem:[#allocation5 + $0x10e0] ss:$48 sps:$4 sm:$0xff]  }
  0xa1   :  { %3687 = vmatpush1.bf16.msra.mxu1 %v7075_v38  ;;  %v7128_v38 = vld [vmem:[#allocation5 + $0xc64] ss:$48 sps:$4 sm:$0xff]  }
  0xa2   :  { %3688 = vmatprep.subr.bf16.mxu1 %v7080_v39  ;;  %3924 = vmatpush1.bf16.msra.mxu0 %v7254_v25  ;;  %v8499_v39 = vld [vmem:[#allocation2 + $0x14] ss:$24 sps:$4 sm:$0xff]  }
  0xa3   :  { %3925 = vmatprep.subr.bf16.mxu0 %v7258_v28  ;;  %v7167_v25 = vld [vmem:[#allocation5 + $0x1144] ss:$48 sps:$4 sm:$0xff]   ;;  %v7165_v28 = vld [vmem:[#allocation5 + $0x1140] ss:$48 sps:$4 sm:$0xff]  }
  0xa5   :  { %3689 = vmatpush1.bf16.msra.mxu1 %v7078_v40  ;;  %v7270_v40 = vld [vmem:[#allocation5 + $0x5b4] ss:$48 sps:$4 sm:$0xff]  }
  0xa6   :  { %3690 = vmatprep.subr.bf16.mxu1 %v7083_v43  ;;  %3926 = vmatpush1.bf16.msra.mxu0 %v7260_v29  ;;  %v7131_v43 = vld [vmem:[#allocation5 + $0xcc4] ss:$48 sps:$4 sm:$0xff]  }
  0xa7   :  { %3927 = vmatprep.subr.bf16.mxu0 %v7264_v33  ;;  %v7170_v29 = vld [vmem:[#allocation5 + $0x11a4] ss:$48 sps:$4 sm:$0xff]   ;;  %v7168_v33 = vld [vmem:[#allocation5 + $0x11a0] ss:$48 sps:$4 sm:$0xff]  }
  0xa9   :  { %3691 = vmatpush1.bf16.msra.mxu1 %v7081_v46  ;;  %v7129_v46 = vld [vmem:[#allocation5 + $0xcc0] ss:$48 sps:$4 sm:$0xff]  }
  0xaa   :  { %3692 = vmatprep.subr.bf16.mxu1 %v7086_v47  ;;  %3928 = vmatpush1.bf16.msra.mxu0 %v7266_v37  ;;  %v7134_v47 = vld [vmem:[#allocation5 + $0xd24] ss:$48 sps:$4 sm:$0xff]   ;;  %v8505_v37 = vld [vmem:[#allocation2 + $0x10] ss:$24 sps:$4 sm:$0xff]  }
  0xab   :  { %3929 = vmatprep.subr.bf16.mxu0 %v7270_v40  ;;  %v7362_v40 = vld [vmem:[#allocation5 + $0xb54] ss:$48 sps:$4 sm:$0xff]  }
  0xad   :  { %3693 = vmatpush1.bf16.msra.mxu1 %v7084_v50  ;;  %v7132_v50 = vld [vmem:[#allocation5 + $0xd20] ss:$48 sps:$4 sm:$0xff]  }
  0xae   :  { %3694 = vmatprep.subr.bf16.mxu1 %v7089_v51  ;;  %3930 = vmatpush1.bf16.msra.mxu0 %v7272_v41  ;;  %v7137_v51 = vld [vmem:[#allocation5 + $0xd84] ss:$48 sps:$4 sm:$0xff]   ;;  %v7174_v41 = vld [vmem:[#allocation5 + $0x8] ss:$48 sps:$4 sm:$0xff]  }
  0xaf   :  { %3942 = vmatprep.subr.bf16.mxu0 %v7278_v45  ;;  %v7177_v45 = vld [vmem:[#allocation5 + $0x68] ss:$48 sps:$4 sm:$0xff]  }
  0xb1   :  { %3695 = vmatpush1.bf16.msra.mxu1 %v7087_v54  ;;  %3932 = vmatmul.mubr.bf16.vlgmr.msra.gmra.mrb[0].mxu0 %v8491_v34  ;;  %v7135_v54 = vld [vmem:[#allocation5 + $0xd80] ss:$48 sps:$4 sm:$0xff]  }
  0xb2   :  { %3696 = vmatprep.subr.bf16.mxu1 %v7092_v55  ;;  %3943 = vmatpush1.bf16.msra.mxu0 %v7276_v44  ;;  %v7140_v55 = vld [vmem:[#allocation5 + $0xde4] ss:$48 sps:$4 sm:$0xff]   ;;  %v7138_v34 = vld [vmem:[#allocation5 + $0xde0] ss:$48 sps:$4 sm:$0xff]  }
  0xb3   :  { %3974 = vmatprep.mubr.bf16.mxu0 %v8493_v36  ;;  %3944 = vmatprep.subr.bf16.mxu0 %v7284_v49  ;;  %v7300_v36 = vld [vmem:[#allocation5 + $0x790] ss:$48 sps:$4 sm:$0xff]   ;;  %v7368_v44 = vld [vmem:[#allocation5 + $0xbb4] ss:$48 sps:$4 sm:$0xff]  }
  0xb4   :  { %v7374_v49 = vld [vmem:[#allocation5 + $0xc14] ss:$48 sps:$4 sm:$0xff]  }
  0xb5   :  { %3697 = vmatpush1.bf16.msra.mxu1 %v7090_v58  ;;  %v7143_v58 = vld [vmem:[#allocation5 + $0xe44] ss:$48 sps:$4 sm:$0xff]  }
  0xb6   :  { %3698 = vmatprep.subr.bf16.mxu1 %v7095_v59  ;;  %3945 = vmatpush1.bf16.msra.mxu0 %v7282_v48  ;;  %v7302_v59 = vld [vmem:[#allocation5 + $0x794] ss:$48 sps:$4 sm:$0xff]   ;;  %v7372_v48 = vld [vmem:[#allocation5 + $0xc10] ss:$48 sps:$4 sm:$0xff]  }
  0xb7   :  { %3946 = vmatprep.subr.bf16.mxu0 %v7290_v53  ;;  %v7380_v53 = vld [vmem:[#allocation5 + $0xc74] ss:$48 sps:$4 sm:$0xff]  }
  0xb9   :  { %3699 = vmatpush1.bf16.msra.mxu1 %v7093_v62  ;;  %v7306_v62 = vld [vmem:[#allocation5 + $0x7f0] ss:$48 sps:$4 sm:$0xff]  }
  0xba   :  { %3700 = vmatprep.subr.bf16.mxu1 %v7098_v63  ;;  %3947 = vmatpush1.bf16.msra.mxu0 %v7288_v52  ;;  %v7308_v63 = vld [vmem:[#allocation5 + $0x7f4] ss:$48 sps:$4 sm:$0xff]   ;;  %v7378_v52 = vld [vmem:[#allocation5 + $0xc70] ss:$48 sps:$4 sm:$0xff]  }
  0xbb   :  { %3948 = vmatprep.subr.bf16.mxu0 %v7296_v57  ;;  %v7386_v57 = vld [vmem:[#allocation5 + $0xcd4] ss:$48 sps:$4 sm:$0xff]  }
  0xbd   :  { %3701 = vmatpush1.bf16.msra.mxu1 %v7096_v2  ;;  %v7312_v2 = vld [vmem:[#allocation5 + $0x850] ss:$48 sps:$4 sm:$0xff]  }
  0xbe   :  { %3702 = vmatprep.subr.bf16.mxu1 %v7101_v3  ;;  %3949 = vmatpush1.bf16.msra.mxu0 %v7294_v56  ;;  %v7314_v3 = vld [vmem:[#allocation5 + $0x854] ss:$48 sps:$4 sm:$0xff]   ;;  %v7384_v56 = vld [vmem:[#allocation5 + $0xcd0] ss:$48 sps:$4 sm:$0xff]  }
  0xbf   :  { %3950 = vmatprep.subr.bf16.mxu0 %v7302_v59  ;;  %v7392_v59 = vld [vmem:[#allocation5 + $0xd34] ss:$48 sps:$4 sm:$0xff]  }
  0xc1   :  { %3703 = vmatpush1.bf16.msra.mxu1 %v7099_v6  ;;  %v7318_v6 = vld [vmem:[#allocation5 + $0x8b0] ss:$48 sps:$4 sm:$0xff]  }
  0xc2   :  { %3704 = vmatprep.subr.bf16.mxu1 %v7104_v7  ;;  %3951 = vmatpush1.bf16.msra.mxu0 %v7300_v36  ;;  %v7320_v7 = vld [vmem:[#allocation5 + $0x8b4] ss:$48 sps:$4 sm:$0xff]   ;;  %v7390_v36 = vld [vmem:[#allocation5 + $0xd30] ss:$48 sps:$4 sm:$0xff]  }
  0xc3   :  { %3952 = vmatprep.subr.bf16.mxu0 %v7308_v63  ;;  %v7215_v63 = vld [vmem:[#allocation5 + $0x2ac] ss:$48 sps:$4 sm:$0xff]  }
  0xc5   :  { %3705 = vmatpush1.bf16.msra.mxu1 %v7102_v10  ;;  %v7324_v10 = vld [vmem:[#allocation5 + $0x910] ss:$48 sps:$4 sm:$0xff]  }
  0xc6   :  { %3706 = vmatprep.subr.bf16.mxu1 %v7107_v11  ;;  %3953 = vmatpush1.bf16.msra.mxu0 %v7306_v62  ;;  %v7326_v11 = vld [vmem:[#allocation5 + $0x914] ss:$48 sps:$4 sm:$0xff]   ;;  %v7207_v62 = vld [vmem:[#allocation5 + $0x248] ss:$48 sps:$4 sm:$0xff]  }
  0xc7   :  { %3954 = vmatprep.subr.bf16.mxu0 %v7314_v3  ;;  %v7221_v3 = vld [vmem:[#allocation5 + $0x30c] ss:$48 sps:$4 sm:$0xff]  }
  0xc9   :  { %3707 = vmatpush1.bf16.msra.mxu1 %v7105_v14  ;;  %v7330_v14 = vld [vmem:[#allocation5 + $0x970] ss:$48 sps:$4 sm:$0xff]  }
  0xca   :  { %3708 = vmatprep.subr.bf16.mxu1 %v7110_v15  ;;  %3955 = vmatpush1.bf16.msra.mxu0 %v7312_v2  ;;  %v7332_v15 = vld [vmem:[#allocation5 + $0x974] ss:$48 sps:$4 sm:$0xff]   ;;  %v7213_v2 = vld [vmem:[#allocation5 + $0x2a8] ss:$48 sps:$4 sm:$0xff]  }
  0xcb   :  { %3956 = vmatprep.subr.bf16.mxu0 %v7320_v7  ;;  %v7227_v7 = vld [vmem:[#allocation5 + $0x36c] ss:$48 sps:$4 sm:$0xff]  }
  0xcd   :  { %3709 = vmatpush1.bf16.msra.mxu1 %v7108_v18  ;;  %v7336_v18 = vld [vmem:[#allocation5 + $0x9d0] ss:$48 sps:$4 sm:$0xff]  }
  0xce   :  { %3710 = vmatprep.subr.bf16.mxu1 %v7113_v19  ;;  %3957 = vmatpush1.bf16.msra.mxu0 %v7318_v6  ;;  %v7338_v19 = vld [vmem:[#allocation5 + $0x9d4] ss:$48 sps:$4 sm:$0xff]   ;;  %v7219_v6 = vld [vmem:[#allocation5 + $0x308] ss:$48 sps:$4 sm:$0xff]  }
  0xcf   :  { %3958 = vmatprep.subr.bf16.mxu0 %v7326_v11  ;;  %v7233_v11 = vld [vmem:[#allocation5 + $0x3cc] ss:$48 sps:$4 sm:$0xff]  }
  0xd1   :  { %3711 = vmatpush1.bf16.msra.mxu1 %v7111_v22  ;;  %v7342_v22 = vld [vmem:[#allocation5 + $0xa30] ss:$48 sps:$4 sm:$0xff]  }
  0xd2   :  { %3712 = vmatprep.subr.bf16.mxu1 %v7116_v23  ;;  %3959 = vmatpush1.bf16.msra.mxu0 %v7324_v10  ;;  %v7344_v23 = vld [vmem:[#allocation5 + $0xa34] ss:$48 sps:$4 sm:$0xff]   ;;  %v7225_v10 = vld [vmem:[#allocation5 + $0x368] ss:$48 sps:$4 sm:$0xff]  }
  0xd3   :  { %3960 = vmatprep.subr.bf16.mxu0 %v7332_v15  ;;  %v7239_v15 = vld [vmem:[#allocation5 + $0x42c] ss:$48 sps:$4 sm:$0xff]  }
  0xd5   :  { %3713 = vmatpush1.bf16.msra.mxu1 %v7114_v26  ;;  %v7348_v26 = vld [vmem:[#allocation5 + $0xa90] ss:$48 sps:$4 sm:$0xff]  }
  0xd6   :  { %3714 = vmatprep.subr.bf16.mxu1 %v7119_v27  ;;  %3961 = vmatpush1.bf16.msra.mxu0 %v7330_v14  ;;  %v7350_v27 = vld [vmem:[#allocation5 + $0xa94] ss:$48 sps:$4 sm:$0xff]   ;;  %v7231_v14 = vld [vmem:[#allocation5 + $0x3c8] ss:$48 sps:$4 sm:$0xff]  }
  0xd7   :  { %3962 = vmatprep.subr.bf16.mxu0 %v7338_v19  ;;  %v7245_v19 = vld [vmem:[#allocation5 + $0x48c] ss:$48 sps:$4 sm:$0xff]  }
  0xd9   :  { %3715 = vmatpush1.bf16.msra.mxu1 %v7117_v30  ;;  %v7354_v30 = vld [vmem:[#allocation5 + $0xaf0] ss:$48 sps:$4 sm:$0xff]  }
  0xda   :  { %3727 = vmatprep.subr.bf16.mxu1 %v7124_v31  ;;  %3963 = vmatpush1.bf16.msra.mxu0 %v7336_v18  ;;  %v7356_v31 = vld [vmem:[#allocation5 + $0xaf4] ss:$48 sps:$4 sm:$0xff]   ;;  %v7237_v18 = vld [vmem:[#allocation5 + $0x428] ss:$48 sps:$4 sm:$0xff]  }
  0xdb   :  { %3964 = vmatprep.subr.bf16.mxu0 %v7344_v23  ;;  %v7251_v23 = vld [vmem:[#allocation5 + $0x4ec] ss:$48 sps:$4 sm:$0xff]  }
  0xdc   :  { %3717 = vmatmul.mubr.bf16.vlgmr.msra.gmra.mrb[0].mxu1 %v8497_v32 }
  0xdd   :  { %3728 = vmatpush1.bf16.msra.mxu1 %v7122_v35  ;;  %3759 = vmatprep.mubr.bf16.mxu1 %v8499_v39  ;;  %v7176_v35 = vld [vmem:[#allocation5 + $0xc] ss:$48 sps:$4 sm:$0xff]  }
  0xde   :  { %3729 = vmatprep.subr.bf16.mxu1 %v7128_v38  ;;  %3965 = vmatpush1.bf16.msra.mxu0 %v7342_v22  ;;  %v7360_v38 = vld [vmem:[#allocation5 + $0xb50] ss:$48 sps:$4 sm:$0xff]   ;;  %v7243_v22 = vld [vmem:[#allocation5 + $0x488] ss:$48 sps:$4 sm:$0xff]  }
  0xdf   :  { %3966 = vmatprep.subr.bf16.mxu0 %v7350_v27  ;;  %v7257_v27 = vld [vmem:[#allocation5 + $0x54c] ss:$48 sps:$4 sm:$0xff]  }
  0xe1   :  { %3730 = vmatpush1.bf16.msra.mxu1 %v7126_v42  ;;  %v7179_v42 = vld [vmem:[#allocation5 + $0x6c] ss:$48 sps:$4 sm:$0xff]  }
  0xe2   :  { %3731 = vmatprep.subr.bf16.mxu1 %v7131_v43  ;;  %3967 = vmatpush1.bf16.msra.mxu0 %v7348_v26  ;;  %v7366_v43 = vld [vmem:[#allocation5 + $0xbb0] ss:$48 sps:$4 sm:$0xff]   ;;  %v7249_v26 = vld [vmem:[#allocation5 + $0x4e8] ss:$48 sps:$4 sm:$0xff]  }
  0xe3   :  { %3968 = vmatprep.subr.bf16.mxu0 %v7356_v31  ;;  %v7263_v31 = vld [vmem:[#allocation5 + $0x5ac] ss:$48 sps:$4 sm:$0xff]  }
  0xe5   :  { %3732 = vmatpush1.bf16.msra.mxu1 %v7129_v46  ;;  %v7185_v46 = vld [vmem:[#allocation5 + $0xcc] ss:$48 sps:$4 sm:$0xff]  }
  0xe6   :  { %3733 = vmatprep.subr.bf16.mxu1 %v7134_v47  ;;  %3969 = vmatpush1.bf16.msra.mxu0 %v7354_v30  ;;  %v8508_v47 = vld [vmem:[#allocation2 + $0x4] ss:$24 sps:$4 sm:$0xff]   ;;  %v7255_v30 = vld [vmem:[#allocation5 + $0x548] ss:$48 sps:$4 sm:$0xff]  }
  0xe7   :  { %3970 = vmatprep.subr.bf16.mxu0 %v7362_v40  ;;  %v7269_v40 = vld [vmem:[#allocation5 + $0x60c] ss:$48 sps:$4 sm:$0xff]  }
  0xe9   :  { %3734 = vmatpush1.bf16.msra.mxu1 %v7132_v50  ;;  %v7183_v50 = vld [vmem:[#allocation5 + $0xc8] ss:$48 sps:$4 sm:$0xff]  }
  0xea   :  { %3735 = vmatprep.subr.bf16.mxu1 %v7137_v51  ;;  %3971 = vmatpush1.bf16.msra.mxu0 %v7360_v38  ;;  %v7191_v51 = vld [vmem:[#allocation5 + $0x12c] ss:$48 sps:$4 sm:$0xff]   ;;  %v7261_v38 = vld [vmem:[#allocation5 + $0x5a8] ss:$48 sps:$4 sm:$0xff]  }
  0xeb   :  { %3972 = vmatprep.subr.bf16.mxu0 %v7368_v44  ;;  %v7275_v44 = vld [vmem:[#allocation5 + $0x66c] ss:$48 sps:$4 sm:$0xff]  }
  0xed   :  { %3736 = vmatpush1.bf16.msra.mxu1 %v7135_v54  ;;  %v7189_v54 = vld [vmem:[#allocation5 + $0x128] ss:$48 sps:$4 sm:$0xff]  }
  0xee   :  { %3737 = vmatprep.subr.bf16.mxu1 %v7140_v55  ;;  %3973 = vmatpush1.bf16.msra.mxu0 %v7366_v43  ;;  %v7197_v55 = vld [vmem:[#allocation5 + $0x18c] ss:$48 sps:$4 sm:$0xff]   ;;  %v7267_v43 = vld [vmem:[#allocation5 + $0x608] ss:$48 sps:$4 sm:$0xff]  }
  0xef   :  { %3985 = vmatprep.subr.bf16.mxu0 %v7374_v49  ;;  %v7273_v49 = vld [vmem:[#allocation5 + $0x668] ss:$48 sps:$4 sm:$0xff]  }
  0xf1   :  { %3738 = vmatpush1.bf16.msra.mxu1 %v7138_v34  ;;  %3975 = vmatmul.mubr.bf16.vlgmr.msra.gmra.mrb[0].mxu0 %v8497_v32  ;;  %v7195_v34 = vld [vmem:[#allocation5 + $0x188] ss:$48 sps:$4 sm:$0xff]  }
  0xf2   :  { %3739 = vmatprep.subr.bf16.mxu1 %v7143_v58  ;;  %3986 = vmatpush1.bf16.msra.mxu0 %v7372_v48  ;;  %v7203_v58 = vld [vmem:[#allocation5 + $0x1ec] ss:$48 sps:$4 sm:$0xff]   ;;  %v7201_v32 = vld [vmem:[#allocation5 + $0x1e8] ss:$48 sps:$4 sm:$0xff]  }
  0xf3   :  { %4017 = vmatprep.mubr.bf16.mxu0 %v8499_v39  ;;  %3987 = vmatprep.subr.bf16.mxu0 %v7380_v53  ;;  %v7396_v39 = vld [vmem:[#allocation5 + $0xd90] ss:$48 sps:$4 sm:$0xff]   ;;  %v7470_v53 = vld [vmem:[#allocation5 + $0x24] ss:$48 sps:$4 sm:$0xff]  }
  0xf4   :  { %v8513_v48 = vld [vmem:[#allocation2] ss:$24 sps:$4 sm:$0xff]  }
  0xf5   :  { %3740 = vmatpush1.bf16.msra.mxu1 %v7141_v60  ;;  %v7209_v60 = vld [vmem:[#allocation5 + $0x24c] ss:$48 sps:$4 sm:$0xff]  }
  0xf6   :  { %3741 = vmatprep.subr.bf16.mxu1 %v7146_v61  ;;  %3988 = vmatpush1.bf16.msra.mxu0 %v7378_v52  ;;  %v7398_v61 = vld [vmem:[#allocation5 + $0xd94] ss:$48 sps:$4 sm:$0xff]   ;;  %v7468_v52 = vld [vmem:[#allocation5 + $0x20] ss:$48 sps:$4 sm:$0xff]  }
  0xf7   :  { %3989 = vmatprep.subr.bf16.mxu0 %v7386_v57  ;;  %v7476_v57 = vld [vmem:[#allocation5 + $0x84] ss:$48 sps:$4 sm:$0xff]  }
  0xf9   :  { %3742 = vmatpush1.bf16.msra.mxu1 %v7144_v0  ;;  %v7402_v0 = vld [vmem:[#allocation5 + $0xdf0] ss:$48 sps:$4 sm:$0xff]  }
  0xfa   :  { %3743 = vmatprep.subr.bf16.mxu1 %v7149_v1  ;;  %3990 = vmatpush1.bf16.msra.mxu0 %v7384_v56  ;;  %v7404_v1 = vld [vmem:[#allocation5 + $0xdf4] ss:$48 sps:$4 sm:$0xff]   ;;  %v7474_v56 = vld [vmem:[#allocation5 + $0x80] ss:$48 sps:$4 sm:$0xff]  }
  0xfb   :  { %3991 = vmatprep.subr.bf16.mxu0 %v7392_v59  ;;  %v7482_v59 = vld [vmem:[#allocation5 + $0xe4] ss:$48 sps:$4 sm:$0xff]  }
  0xfd   :  { %3744 = vmatpush1.bf16.msra.mxu1 %v7147_v4  ;;  %v7408_v4 = vld [vmem:[#allocation5 + $0xe50] ss:$48 sps:$4 sm:$0xff]  }
  0xfe   :  { %3745 = vmatprep.subr.bf16.mxu1 %v7152_v5  ;;  %3992 = vmatpush1.bf16.msra.mxu0 %v7390_v36  ;;  %v7410_v5 = vld [vmem:[#allocation5 + $0xe54] ss:$48 sps:$4 sm:$0xff]   ;;  %v7480_v36 = vld [vmem:[#allocation5 + $0xe0] ss:$48 sps:$4 sm:$0xff]  }
  0xff   :  { %3993 = vmatprep.subr.bf16.mxu0 %v7398_v61  ;;  %v7488_v61 = vld [vmem:[#allocation5 + $0x144] ss:$48 sps:$4 sm:$0xff]  }
 0x101   :  { %3746 = vmatpush1.bf16.msra.mxu1 %v7150_v8  ;;  %v7414_v8 = vld [vmem:[#allocation5 + $0xeb0] ss:$48 sps:$4 sm:$0xff]  }
 0x102   :  { %3747 = vmatprep.subr.bf16.mxu1 %v7155_v9  ;;  %3994 = vmatpush1.bf16.msra.mxu0 %v7396_v39  ;;  %v7416_v9 = vld [vmem:[#allocation5 + $0xeb4] ss:$48 sps:$4 sm:$0xff]   ;;  %v7486_v39 = vld [vmem:[#allocation5 + $0x140] ss:$48 sps:$4 sm:$0xff]  }
 0x103   :  { %3995 = vmatprep.subr.bf16.mxu0 %v7404_v1  ;;  %v7311_v1 = vld [vmem:[#allocation5 + $0x8ac] ss:$48 sps:$4 sm:$0xff]  }
 0x105   :  { %3748 = vmatpush1.bf16.msra.mxu1 %v7153_v12  ;;  %v7420_v12 = vld [vmem:[#allocation5 + $0xf10] ss:$48 sps:$4 sm:$0xff]  }
 0x106   :  { %3749 = vmatprep.subr.bf16.mxu1 %v7158_v13  ;;  %3996 = vmatpush1.bf16.msra.mxu0 %v7402_v0  ;;  %v7422_v13 = vld [vmem:[#allocation5 + $0xf14] ss:$48 sps:$4 sm:$0xff]   ;;  %v7492_v0 = vld [vmem:[#allocation5 + $0x1a0] ss:$48 sps:$4 sm:$0xff]  }
 0x107   :  { %3997 = vmatprep.subr.bf16.mxu0 %v7410_v5  ;;  %v7317_v5 = vld [vmem:[#allocation5 + $0x90c] ss:$48 sps:$4 sm:$0xff]  }
 0x109   :  { %3750 = vmatpush1.bf16.msra.mxu1 %v7156_v16  ;;  %v7426_v16 = vld [vmem:[#allocation5 + $0xf70] ss:$48 sps:$4 sm:$0xff]  }
 0x10a   :  { %3751 = vmatprep.subr.bf16.mxu1 %v7161_v17  ;;  %3998 = vmatpush1.bf16.msra.mxu0 %v7408_v4  ;;  %v7428_v17 = vld [vmem:[#allocation5 + $0xf74] ss:$48 sps:$4 sm:$0xff]   ;;  %v7498_v4 = vld [vmem:[#allocation5 + $0x200] ss:$48 sps:$4 sm:$0xff]  }
 0x10b   :  { %3999 = vmatprep.subr.bf16.mxu0 %v7416_v9  ;;  %v7323_v9 = vld [vmem:[#allocation5 + $0x96c] ss:$48 sps:$4 sm:$0xff]  }
 0x10d   :  { %3752 = vmatpush1.bf16.msra.mxu1 %v7159_v20  ;;  %v7432_v20 = vld [vmem:[#allocation5 + $0xfd0] ss:$48 sps:$4 sm:$0xff]  }
 0x10e   :  { %3753 = vmatprep.subr.bf16.mxu1 %v7164_v21  ;;  %4000 = vmatpush1.bf16.msra.mxu0 %v7414_v8  ;;  %v7434_v21 = vld [vmem:[#allocation5 + $0xfd4] ss:$48 sps:$4 sm:$0xff]   ;;  %v7504_v8 = vld [vmem:[#allocation5 + $0x260] ss:$48 sps:$4 sm:$0xff]  }
 0x10f   :  { %4001 = vmatprep.subr.bf16.mxu0 %v7422_v13  ;;  %v7329_v13 = vld [vmem:[#allocation5 + $0x9cc] ss:$48 sps:$4 sm:$0xff]  }
 0x111   :  { %3754 = vmatpush1.bf16.msra.mxu1 %v7162_v24  ;;  %v7438_v24 = vld [vmem:[#allocation5 + $0x1030] ss:$48 sps:$4 sm:$0xff]  }
 0x112   :  { %3755 = vmatprep.subr.bf16.mxu1 %v7167_v25  ;;  %4002 = vmatpush1.bf16.msra.mxu0 %v7420_v12  ;;  %v7440_v25 = vld [vmem:[#allocation5 + $0x1034] ss:$48 sps:$4 sm:$0xff]   ;;  %v7510_v12 = vld [vmem:[#allocation5 + $0x2c0] ss:$48 sps:$4 sm:$0xff]  }
 0x113   :  { %4003 = vmatprep.subr.bf16.mxu0 %v7428_v17  ;;  %v7335_v17 = vld [vmem:[#allocation5 + $0xa2c] ss:$48 sps:$4 sm:$0xff]  }
 0x115   :  { %3756 = vmatpush1.bf16.msra.mxu1 %v7165_v28  ;;  %v7444_v28 = vld [vmem:[#allocation5 + $0x1090] ss:$48 sps:$4 sm:$0xff]  }
 0x116   :  { %3757 = vmatprep.subr.bf16.mxu1 %v7170_v29  ;;  %4004 = vmatpush1.bf16.msra.mxu0 %v7426_v16  ;;  %v7446_v29 = vld [vmem:[#allocation5 + $0x1094] ss:$48 sps:$4 sm:$0xff]   ;;  %v7516_v16 = vld [vmem:[#allocation5 + $0x320] ss:$48 sps:$4 sm:$0xff]  }
 0x117   :  { %4005 = vmatprep.subr.bf16.mxu0 %v7434_v21  ;;  %v7341_v21 = vld [vmem:[#allocation5 + $0xa8c] ss:$48 sps:$4 sm:$0xff]  }
 0x119   :  { %3758 = vmatpush1.bf16.msra.mxu1 %v7168_v33  ;;  %v7450_v33 = vld [vmem:[#allocation5 + $0x10f0] ss:$48 sps:$4 sm:$0xff]  }
 0x11a   :  { %3770 = vmatprep.subr.bf16.mxu1 %v7176_v35  ;;  %4006 = vmatpush1.bf16.msra.mxu0 %v7432_v20  ;;  %v7452_v35 = vld [vmem:[#allocation5 + $0x10f4] ss:$48 sps:$4 sm:$0xff]   ;;  %v7522_v20 = vld [vmem:[#allocation5 + $0x380] ss:$48 sps:$4 sm:$0xff]  }
 0x11b   :  { %4007 = vmatprep.subr.bf16.mxu0 %v7440_v25  ;;  %v7347_v25 = vld [vmem:[#allocation5 + $0xaec] ss:$48 sps:$4 sm:$0xff]  }
 0x11c   :  { %3760 = vmatmul.mubr.bf16.vlgmr.msra.gmra.mrb[0].mxu1 %v8505_v37 }
 0x11d   :  { %3771 = vmatpush1.bf16.msra.mxu1 %v7174_v41  ;;  %3802 = vmatprep.mubr.bf16.mxu1 %v8508_v47  ;;  %v7456_v41 = vld [vmem:[#allocation5 + $0x1150] ss:$48 sps:$4 sm:$0xff]  }
 0x11e   :  { %3772 = vmatprep.subr.bf16.mxu1 %v7179_v42  ;;  %4008 = vmatpush1.bf16.msra.mxu0 %v7438_v24  ;;  %v7458_v42 = vld [vmem:[#allocation5 + $0x1154] ss:$48 sps:$4 sm:$0xff]   ;;  %v7339_v24 = vld [vmem:[#allocation5 + $0xa88] ss:$48 sps:$4 sm:$0xff]  }
 0x11f   :  { %4009 = vmatprep.subr.bf16.mxu0 %v7446_v29  ;;  %v7353_v29 = vld [vmem:[#allocation5 + $0xb4c] ss:$48 sps:$4 sm:$0xff]  }
 0x121   :  { %3773 = vmatpush1.bf16.msra.mxu1 %v7177_v45  ;;  %v7461_v45 = vld [vmem:[#allocation5 + $0x11b4] ss:$48 sps:$4 sm:$0xff]  }
 0x122   :  { %3774 = vmatprep.subr.bf16.mxu1 %v7185_v46  ;;  %4010 = vmatpush1.bf16.msra.mxu0 %v7444_v28  ;;  %v7459_v46 = vld [vmem:[#allocation5 + $0x11b0] ss:$48 sps:$4 sm:$0xff]   ;;  %v7345_v28 = vld [vmem:[#allocation5 + $0xae8] ss:$48 sps:$4 sm:$0xff]  }
 0x123   :  { %4011 = vmatprep.subr.bf16.mxu0 %v7452_v35  ;;  %v7359_v35 = vld [vmem:[#allocation5 + $0xbac] ss:$48 sps:$4 sm:$0xff]  }
 0x125   :  { %3775 = vmatpush1.bf16.msra.mxu1 %v7183_v50  ;;  %v7281_v50 = vld [vmem:[#allocation5 + $0x6cc] ss:$48 sps:$4 sm:$0xff]  }
 0x126   :  { %3776 = vmatprep.subr.bf16.mxu1 %v7191_v51  ;;  %4012 = vmatpush1.bf16.msra.mxu0 %v7450_v33  ;;  %v8516_v51 = vld [vmem:[#allocation2 + $0xc] ss:$24 sps:$4 sm:$0xff]   ;;  %v7351_v33 = vld [vmem:[#allocation5 + $0xb48] ss:$48 sps:$4 sm:$0xff]  }
 0x127   :  { %4013 = vmatprep.subr.bf16.mxu0 %v7458_v42  ;;  %v7365_v42 = vld [vmem:[#allocation5 + $0xc0c] ss:$48 sps:$4 sm:$0xff]  }
 0x129   :  { %3777 = vmatpush1.bf16.msra.mxu1 %v7189_v54  ;;  %v7279_v54 = vld [vmem:[#allocation5 + $0x6c8] ss:$48 sps:$4 sm:$0xff]  }
 0x12a   :  { %3778 = vmatprep.subr.bf16.mxu1 %v7197_v55  ;;  %4014 = vmatpush1.bf16.msra.mxu0 %v7456_v41  ;;  %v7287_v55 = vld [vmem:[#allocation5 + $0x72c] ss:$48 sps:$4 sm:$0xff]   ;;  %v7357_v41 = vld [vmem:[#allocation5 + $0xba8] ss:$48 sps:$4 sm:$0xff]  }
 0x12b   :  { %4015 = vmatprep.subr.bf16.mxu0 %v7461_v45  ;;  %v7363_v45 = vld [vmem:[#allocation5 + $0xc08] ss:$48 sps:$4 sm:$0xff]  }
 0x12d   :  { %3779 = vmatpush1.bf16.msra.mxu1 %v7195_v34  ;;  %v7285_v34 = vld [vmem:[#allocation5 + $0x728] ss:$48 sps:$4 sm:$0xff]  }
 0x12e   :  { %3780 = vmatprep.subr.bf16.mxu1 %v7203_v58  ;;  %4016 = vmatpush1.bf16.msra.mxu0 %v7459_v46  ;;  %v7293_v58 = vld [vmem:[#allocation5 + $0x78c] ss:$48 sps:$4 sm:$0xff]  }
 0x12f   :  { %4157 = vmatprep.subr.bf16.mxu0 %v7470_v53  ;;  %v7371_v46 = vld [vmem:[#allocation5 + $0xc6c] ss:$48 sps:$4 sm:$0xff]   ;;  %v7369_v53 = vld [vmem:[#allocation5 + $0xc68] ss:$48 sps:$4 sm:$0xff]  }
 0x131   :  { %3781 = vmatpush1.bf16.msra.mxu1 %v7201_v32  ;;  %4018 = vmatmul.mubr.bf16.vlgmr.msra.gmra.mrb[0].mxu0 %v8505_v37  ;;  %v7291_v32 = vld [vmem:[#allocation5 + $0x788] ss:$48 sps:$4 sm:$0xff]  }
 0x132   :  { %3782 = vmatprep.subr.bf16.mxu1 %v7209_v60  ;;  %4158 = vmatpush1.bf16.msra.mxu0 %v7468_v52  ;;  %v7299_v60 = vld [vmem:[#allocation5 + $0x7ec] ss:$48 sps:$4 sm:$0xff]   ;;  %v7297_v37 = vld [vmem:[#allocation5 + $0x7e8] ss:$48 sps:$4 sm:$0xff]  }
 0x133   :  { %4189 = vmatprep.mubr.bf16.mxu0 %v8508_v47  ;;  %4159 = vmatprep.subr.bf16.mxu0 %v7476_v57  ;;  %v7305_v47 = vld [vmem:[#allocation5 + $0x84c] ss:$48 sps:$4 sm:$0xff]   ;;  %v8521_v52 = vld [vmem:[#allocation2 + $0x8] ss:$24 sps:$4 sm:$0xff]   ;;  %v7566_v57 = vld [vmem:[#allocation5 + $0x624] ss:$48 sps:$4 sm:$0xff]  }
 0x135   :  { %3783 = vmatpush1.bf16.msra.mxu1 %v7207_v62  ;;  %v7494_v62 = vld [vmem:[#allocation5 + $0x1a4] ss:$48 sps:$4 sm:$0xff]  }
 0x136   :  { %3784 = vmatprep.subr.bf16.mxu1 %v7215_v63  ;;  %4160 = vmatpush1.bf16.msra.mxu0 %v7474_v56  ;;  %v7303_v63 = vld [vmem:[#allocation5 + $0x848] ss:$48 sps:$4 sm:$0xff]   ;;  %v7564_v56 = vld [vmem:[#allocation5 + $0x620] ss:$48 sps:$4 sm:$0xff]  }
 0x137   :  { %4161 = vmatprep.subr.bf16.mxu0 %v7482_v59  ;;  %v7572_v59 = vld [vmem:[#allocation5 + $0x684] ss:$48 sps:$4 sm:$0xff]  }
 0x139   :  { %3785 = vmatpush1.bf16.msra.mxu1 %v7213_v2  ;;  %v7500_v2 = vld [vmem:[#allocation5 + $0x204] ss:$48 sps:$4 sm:$0xff]  }
 0x13a   :  { %3786 = vmatprep.subr.bf16.mxu1 %v7221_v3  ;;  %4162 = vmatpush1.bf16.msra.mxu0 %v7480_v36  ;;  %v7309_v3 = vld [vmem:[#allocation5 + $0x8a8] ss:$48 sps:$4 sm:$0xff]   ;;  %v7570_v36 = vld [vmem:[#allocation5 + $0x680] ss:$48 sps:$4 sm:$0xff]  }
 0x13b   :  { %4163 = vmatprep.subr.bf16.mxu0 %v7488_v61  ;;  %v7578_v61 = vld [vmem:[#allocation5 + $0x6e4] ss:$48 sps:$4 sm:$0xff]  }
 0x13d   :  { %3787 = vmatpush1.bf16.msra.mxu1 %v7219_v6  ;;  %v7506_v6 = vld [vmem:[#allocation5 + $0x264] ss:$48 sps:$4 sm:$0xff]  }
 0x13e   :  { %3788 = vmatprep.subr.bf16.mxu1 %v7227_v7  ;;  %4164 = vmatpush1.bf16.msra.mxu0 %v7486_v39  ;;  %v7315_v7 = vld [vmem:[#allocation5 + $0x908] ss:$48 sps:$4 sm:$0xff]   ;;  %v7576_v39 = vld [vmem:[#allocation5 + $0x6e0] ss:$48 sps:$4 sm:$0xff]  }
 0x13f   :  { %4165 = vmatprep.subr.bf16.mxu0 %v7494_v62  ;;  %v7582_v62 = vld [vmem:[#allocation5 + $0x740] ss:$48 sps:$4 sm:$0xff]  }
 0x141   :  { %3789 = vmatpush1.bf16.msra.mxu1 %v7225_v10  ;;  %v7512_v10 = vld [vmem:[#allocation5 + $0x2c4] ss:$48 sps:$4 sm:$0xff]  }
 0x142   :  { %3790 = vmatprep.subr.bf16.mxu1 %v7233_v11  ;;  %4166 = vmatpush1.bf16.msra.mxu0 %v7492_v0  ;;  %v7321_v11 = vld [vmem:[#allocation5 + $0x968] ss:$48 sps:$4 sm:$0xff]   ;;  %v7401_v0 = vld [vmem:[#allocation5 + $0xe4c] ss:$48 sps:$4 sm:$0xff]  }
 0x143   :  { %4167 = vmatprep.subr.bf16.mxu0 %v7500_v2  ;;  %v7399_v2 = vld [vmem:[#allocation5 + $0xe48] ss:$48 sps:$4 sm:$0xff]  }
 0x145   :  { %3791 = vmatpush1.bf16.msra.mxu1 %v7231_v14  ;;  %v7518_v14 = vld [vmem:[#allocation5 + $0x324] ss:$48 sps:$4 sm:$0xff]  }
 0x146   :  { %3792 = vmatprep.subr.bf16.mxu1 %v7239_v15  ;;  %4168 = vmatpush1.bf16.msra.mxu0 %v7498_v4  ;;  %v7327_v15 = vld [vmem:[#allocation5 + $0x9c8] ss:$48 sps:$4 sm:$0xff]   ;;  %v7594_v4 = vld [vmem:[#allocation5 + $0x800] ss:$48 sps:$4 sm:$0xff]  }
 0x147   :  { %4169 = vmatprep.subr.bf16.mxu0 %v7506_v6  ;;  %v7405_v6 = vld [vmem:[#allocation5 + $0xea8] ss:$48 sps:$4 sm:$0xff]  }
 0x149   :  { %3793 = vmatpush1.bf16.msra.mxu1 %v7237_v18  ;;  %v7524_v18 = vld [vmem:[#allocation5 + $0x384] ss:$48 sps:$4 sm:$0xff]  }
 0x14a   :  { %3794 = vmatprep.subr.bf16.mxu1 %v7245_v19  ;;  %4170 = vmatpush1.bf16.msra.mxu0 %v7504_v8  ;;  %v7333_v19 = vld [vmem:[#allocation5 + $0xa28] ss:$48 sps:$4 sm:$0xff]   ;;  %v7600_v8 = vld [vmem:[#allocation5 + $0x860] ss:$48 sps:$4 sm:$0xff]  }
 0x14b   :  { %4171 = vmatprep.subr.bf16.mxu0 %v7512_v10  ;;  %v7411_v10 = vld [vmem:[#allocation5 + $0xf08] ss:$48 sps:$4 sm:$0xff]  }
 0x14d   :  { %3795 = vmatpush1.bf16.msra.mxu1 %v7243_v22  ;;  %v7528_v22 = vld [vmem:[#allocation5 + $0x3e0] ss:$48 sps:$4 sm:$0xff]  }
 0x14e   :  { %3796 = vmatprep.subr.bf16.mxu1 %v7251_v23  ;;  %4172 = vmatpush1.bf16.msra.mxu0 %v7510_v12  ;;  %v7530_v23 = vld [vmem:[#allocation5 + $0x3e4] ss:$48 sps:$4 sm:$0xff]   ;;  %v7606_v12 = vld [vmem:[#allocation5 + $0x8c0] ss:$48 sps:$4 sm:$0xff]  }
 0x14f   :  { %4173 = vmatprep.subr.bf16.mxu0 %v7518_v14  ;;  %v7417_v14 = vld [vmem:[#allocation5 + $0xf68] ss:$48 sps:$4 sm:$0xff]  }
 0x151   :  { %3797 = vmatpush1.bf16.msra.mxu1 %v7249_v26  ;;  %v7534_v26 = vld [vmem:[#allocation5 + $0x440] ss:$48 sps:$4 sm:$0xff]  }
 0x152   :  { %3798 = vmatprep.subr.bf16.mxu1 %v7257_v27  ;;  %4174 = vmatpush1.bf16.msra.mxu0 %v7516_v16  ;;  %v7536_v27 = vld [vmem:[#allocation5 + $0x444] ss:$48 sps:$4 sm:$0xff]   ;;  %v7612_v16 = vld [vmem:[#allocation5 + $0x920] ss:$48 sps:$4 sm:$0xff]  }
 0x153   :  { %4175 = vmatprep.subr.bf16.mxu0 %v7524_v18  ;;  %v7423_v18 = vld [vmem:[#allocation5 + $0xfc8] ss:$48 sps:$4 sm:$0xff]  }
 0x155   :  { %3799 = vmatpush1.bf16.msra.mxu1 %v7255_v30  ;;  %v7540_v30 = vld [vmem:[#allocation5 + $0x4a0] ss:$48 sps:$4 sm:$0xff]  }
 0x156   :  { %3800 = vmatprep.subr.bf16.mxu1 %v7263_v31  ;;  %4176 = vmatpush1.bf16.msra.mxu0 %v7522_v20  ;;  %v7542_v31 = vld [vmem:[#allocation5 + $0x4a4] ss:$48 sps:$4 sm:$0xff]   ;;  %v7618_v20 = vld [vmem:[#allocation5 + $0x980] ss:$48 sps:$4 sm:$0xff]  }
 0x157   :  { %4177 = vmatprep.subr.bf16.mxu0 %v7530_v23  ;;  %v7437_v23 = vld [vmem:[#allocation5 + $0x108c] ss:$48 sps:$4 sm:$0xff]  }
 0x159   :  { %3801 = vmatpush1.bf16.msra.mxu1 %v7261_v38  ;;  %v7546_v38 = vld [vmem:[#allocation5 + $0x500] ss:$48 sps:$4 sm:$0xff]  }
 0x15a   :  { %3813 = vmatprep.subr.bf16.mxu1 %v7269_v40  ;;  %4178 = vmatpush1.bf16.msra.mxu0 %v7528_v22  ;;  %v7548_v40 = vld [vmem:[#allocation5 + $0x504] ss:$48 sps:$4 sm:$0xff]   ;;  %v7429_v22 = vld [vmem:[#allocation5 + $0x1028] ss:$48 sps:$4 sm:$0xff]  }
 0x15b   :  { %4179 = vmatprep.subr.bf16.mxu0 %v7536_v27  ;;  %v7443_v27 = vld [vmem:[#allocation5 + $0x10ec] ss:$48 sps:$4 sm:$0xff]  }
 0x15c   :  { %3803 = vmatmul.mubr.bf16.vlgmr.msra.gmra.mrb[4].mxu1 %v8513_v48 }
 0x15d   :  { %3814 = vmatpush1.bf16.msra.mxu1 %v7267_v43  ;;  %3845 = vmatprep.mubr.bf16.mxu1 %v8516_v51  ;;  %v7552_v43 = vld [vmem:[#allocation5 + $0x560] ss:$48 sps:$4 sm:$0xff]  }
 0x15e   :  { %3815 = vmatprep.subr.bf16.mxu1 %v7275_v44  ;;  %4180 = vmatpush1.bf16.msra.mxu0 %v7534_v26  ;;  %v7554_v44 = vld [vmem:[#allocation5 + $0x564] ss:$48 sps:$4 sm:$0xff]   ;;  %v7435_v26 = vld [vmem:[#allocation5 + $0x1088] ss:$48 sps:$4 sm:$0xff]  }
 0x15f   :  { %4181 = vmatprep.subr.bf16.mxu0 %v7542_v31  ;;  %v7449_v31 = vld [vmem:[#allocation5 + $0x114c] ss:$48 sps:$4 sm:$0xff]  }
 0x161   :  { %3816 = vmatpush1.bf16.msra.mxu1 %v7273_v49  ;;  %v7558_v49 = vld [vmem:[#allocation5 + $0x5c0] ss:$48 sps:$4 sm:$0xff]  }
 0x162   :  { %3817 = vmatprep.subr.bf16.mxu1 %v7281_v50  ;;  %4182 = vmatpush1.bf16.msra.mxu0 %v7540_v30  ;;  %v7560_v50 = vld [vmem:[#allocation5 + $0x5c4] ss:$48 sps:$4 sm:$0xff]   ;;  %v7441_v30 = vld [vmem:[#allocation5 + $0x10e8] ss:$48 sps:$4 sm:$0xff]  }
 0x163   :  { %4183 = vmatprep.subr.bf16.mxu0 %v7548_v40  ;;  %v7455_v40 = vld [vmem:[#allocation5 + $0x11ac] ss:$48 sps:$4 sm:$0xff]  }
 0x165   :  { %3818 = vmatpush1.bf16.msra.mxu1 %v7279_v54  ;;  %v7377_v54 = vld [vmem:[#allocation5 + $0xccc] ss:$48 sps:$4 sm:$0xff]  }
 0x166   :  { %3819 = vmatprep.subr.bf16.mxu1 %v7287_v55  ;;  %4184 = vmatpush1.bf16.msra.mxu0 %v7546_v38  ;;  %v8524_v55 = vld [vmem:[#allocation2 + $0x14] ss:$24 sps:$4 sm:$0xff]   ;;  %v7447_v38 = vld [vmem:[#allocation5 + $0x1148] ss:$48 sps:$4 sm:$0xff]  }
 0x167   :  { %4185 = vmatprep.subr.bf16.mxu0 %v7554_v44  ;;  %v7464_v44 = vld [vmem:[#allocation5 + $0x1c] ss:$48 sps:$4 sm:$0xff]  }
 0x169   :  { %3820 = vmatpush1.bf16.msra.mxu1 %v7285_v34  ;;  %v7375_v34 = vld [vmem:[#allocation5 + $0xcc8] ss:$48 sps:$4 sm:$0xff]  }
 0x16a   :  { %3821 = vmatprep.subr.bf16.mxu1 %v7293_v58  ;;  %4186 = vmatpush1.bf16.msra.mxu0 %v7552_v43  ;;  %v7383_v58 = vld [vmem:[#allocation5 + $0xd2c] ss:$48 sps:$4 sm:$0xff]   ;;  %v7453_v43 = vld [vmem:[#allocation5 + $0x11a8] ss:$48 sps:$4 sm:$0xff]  }
 0x16b   :  { %4187 = vmatprep.subr.bf16.mxu0 %v7560_v50  ;;  %v7467_v50 = vld [vmem:[#allocation5 + $0x7c] ss:$48 sps:$4 sm:$0xff]  }
 0x16d   :  { %3822 = vmatpush1.bf16.msra.mxu1 %v7291_v32  ;;  %v7381_v32 = vld [vmem:[#allocation5 + $0xd28] ss:$48 sps:$4 sm:$0xff]  }
 0x16e   :  { %3823 = vmatprep.subr.bf16.mxu1 %v7299_v60  ;;  %4188 = vmatpush1.bf16.msra.mxu0 %v7558_v49  ;;  %v7389_v60 = vld [vmem:[#allocation5 + $0xd8c] ss:$48 sps:$4 sm:$0xff]   ;;  %v7462_v49 = vld [vmem:[#allocation5 + $0x18] ss:$48 sps:$4 sm:$0xff]  }
 0x16f   :  { %4200 = vmatprep.subr.bf16.mxu0 %v7566_v57  ;;  %v7465_v57 = vld [vmem:[#allocation5 + $0x78] ss:$48 sps:$4 sm:$0xff]  }
 0x171   :  { %3824 = vmatpush1.bf16.msra.mxu1 %v7297_v37  ;;  %4190 = vmatmul.mubr.bf16.vlgmr.msra.gmra.mrb[4].mxu0 %v8513_v48  ;;  %v7387_v37 = vld [vmem:[#allocation5 + $0xd88] ss:$48 sps:$4 sm:$0xff]  }
 0x172   :  { %3825 = vmatprep.subr.bf16.mxu1 %v7305_v47  ;;  %4201 = vmatpush1.bf16.msra.mxu0 %v7564_v56  ;;  %v7395_v47 = vld [vmem:[#allocation5 + $0xdec] ss:$48 sps:$4 sm:$0xff]   ;;  %v7393_v48 = vld [vmem:[#allocation5 + $0xde8] ss:$48 sps:$4 sm:$0xff]  }
 0x173   :  { %4232 = vmatprep.mubr.bf16.mxu0 %v8516_v51  ;;  %4202 = vmatprep.subr.bf16.mxu0 %v7572_v59  ;;  %v7588_v51 = vld [vmem:[#allocation5 + $0x7a0] ss:$48 sps:$4 sm:$0xff]   ;;  %v7662_v59 = vld [vmem:[#allocation5 + $0xc24] ss:$48 sps:$4 sm:$0xff]  }
 0x174   :  { %v8529_v56 = vld [vmem:[#allocation2 + $0x10] ss:$24 sps:$4 sm:$0xff]  }
 0x175   :  { %3826 = vmatpush1.bf16.msra.mxu1 %v7303_v63  ;;  %v7584_v63 = vld [vmem:[#allocation5 + $0x744] ss:$48 sps:$4 sm:$0xff]  }
 0x176   :  { %3827 = vmatprep.subr.bf16.mxu1 %v7311_v1  ;;  %4203 = vmatpush1.bf16.msra.mxu0 %v7570_v36  ;;  %v7590_v1 = vld [vmem:[#allocation5 + $0x7a4] ss:$48 sps:$4 sm:$0xff]   ;;  %v7660_v36 = vld [vmem:[#allocation5 + $0xc20] ss:$48 sps:$4 sm:$0xff]  }
 0x177   :  { %4204 = vmatprep.subr.bf16.mxu0 %v7578_v61  ;;  %v7668_v61 = vld [vmem:[#allocation5 + $0xc84] ss:$48 sps:$4 sm:$0xff]  }
 0x179   :  { %3828 = vmatpush1.bf16.msra.mxu1 %v7309_v3  ;;  %v7407_v3 = vld [vmem:[#allocation5 + $0xeac] ss:$48 sps:$4 sm:$0xff]  }
 0x17a   :  { %3829 = vmatprep.subr.bf16.mxu1 %v7317_v5  ;;  %4205 = vmatpush1.bf16.msra.mxu0 %v7576_v39  ;;  %v7596_v5 = vld [vmem:[#allocation5 + $0x804] ss:$48 sps:$4 sm:$0xff]   ;;  %v7666_v39 = vld [vmem:[#allocation5 + $0xc80] ss:$48 sps:$4 sm:$0xff]  }
 0x17b   :  { %4206 = vmatprep.subr.bf16.mxu0 %v7584_v63  ;;  %v7674_v63 = vld [vmem:[#allocation5 + $0xce4] ss:$48 sps:$4 sm:$0xff]  }
 0x17d   :  { %3830 = vmatpush1.bf16.msra.mxu1 %v7315_v7  ;;  %v7413_v7 = vld [vmem:[#allocation5 + $0xf0c] ss:$48 sps:$4 sm:$0xff]  }
 0x17e   :  { %3831 = vmatprep.subr.bf16.mxu1 %v7323_v9  ;;  %4207 = vmatpush1.bf16.msra.mxu0 %v7582_v62  ;;  %v7602_v9 = vld [vmem:[#allocation5 + $0x864] ss:$48 sps:$4 sm:$0xff]   ;;  %v7672_v62 = vld [vmem:[#allocation5 + $0xce0] ss:$48 sps:$4 sm:$0xff]  }
 0x17f   :  { %4208 = vmatprep.subr.bf16.mxu0 %v7590_v1  ;;  %v7680_v1 = vld [vmem:[#allocation5 + $0xd44] ss:$48 sps:$4 sm:$0xff]  }
 0x181   :  { %3832 = vmatpush1.bf16.msra.mxu1 %v7321_v11  ;;  %v7419_v11 = vld [vmem:[#allocation5 + $0xf6c] ss:$48 sps:$4 sm:$0xff]  }
 0x182   :  { %3833 = vmatprep.subr.bf16.mxu1 %v7329_v13  ;;  %4209 = vmatpush1.bf16.msra.mxu0 %v7588_v51  ;;  %v7608_v13 = vld [vmem:[#allocation5 + $0x8c4] ss:$48 sps:$4 sm:$0xff]   ;;  %v7678_v51 = vld [vmem:[#allocation5 + $0xd40] ss:$48 sps:$4 sm:$0xff]  }
 0x183   :  { %4210 = vmatprep.subr.bf16.mxu0 %v7596_v5 }
 0x185   :  { %3834 = vmatpush1.bf16.msra.mxu1 %v7327_v15  ;;  %v7425_v15 = vld [vmem:[#allocation5 + $0xfcc] ss:$48 sps:$4 sm:$0xff]  }
 0x186   :  { %3835 = vmatprep.subr.bf16.mxu1 %v7335_v17  ;;  %4211 = vmatpush1.bf16.msra.mxu0 %v7594_v4  ;;  %v7614_v17 = vld [vmem:[#allocation5 + $0x924] ss:$48 sps:$4 sm:$0xff]  }
 0x187   :  { %4212 = vmatprep.subr.bf16.mxu0 %v7602_v9  ;;  %v7686_v4 = vld [vmem:[#allocation5 + $0xda4] ss:$48 sps:$4 sm:$0xff]   ;;  %v7495_v9 = vld [vmem:[#allocation5 + $0x258] ss:$48 sps:$4 sm:$0xff]  }
 0x189   :  { %3836 = vmatpush1.bf16.msra.mxu1 %v7333_v19  ;;  %v7431_v19 = vld [vmem:[#allocation5 + $0x102c] ss:$48 sps:$4 sm:$0xff]  }
 0x18a   :  { %3837 = vmatprep.subr.bf16.mxu1 %v7341_v21  ;;  %4213 = vmatpush1.bf16.msra.mxu0 %v7600_v8  ;;  %v7620_v21 = vld [vmem:[#allocation5 + $0x984] ss:$48 sps:$4 sm:$0xff]  }
 0x18b   :  { %4214 = vmatprep.subr.bf16.mxu0 %v7608_v13  ;;  %v7690_v13 = vld [vmem:[#allocation5 + $0xe00] ss:$48 sps:$4 sm:$0xff]  }
 0x18d   :  { %3838 = vmatpush1.bf16.msra.mxu1 %v7339_v24  ;;  %v7624_v24 = vld [vmem:[#allocation5 + $0x9e0] ss:$48 sps:$4 sm:$0xff]  }
 0x18e   :  { %3839 = vmatprep.subr.bf16.mxu1 %v7347_v25  ;;  %4215 = vmatpush1.bf16.msra.mxu0 %v7606_v12  ;;  %v7626_v25 = vld [vmem:[#allocation5 + $0x9e4] ss:$48 sps:$4 sm:$0xff]  }
 0x18f   :  { %4216 = vmatprep.subr.bf16.mxu0 %v7614_v17  ;;  %v7692_v12 = vld [vmem:[#allocation5 + $0xe04] ss:$48 sps:$4 sm:$0xff]   ;;  %v7696_v17 = vld [vmem:[#allocation5 + $0xe60] ss:$48 sps:$4 sm:$0xff]  }
 0x191   :  { %3840 = vmatpush1.bf16.msra.mxu1 %v7345_v28  ;;  %v7630_v28 = vld [vmem:[#allocation5 + $0xa40] ss:$48 sps:$4 sm:$0xff]  }
 0x192   :  { %3841 = vmatprep.subr.bf16.mxu1 %v7353_v29  ;;  %4217 = vmatpush1.bf16.msra.mxu0 %v7612_v16  ;;  %v7632_v29 = vld [vmem:[#allocation5 + $0xa44] ss:$48 sps:$4 sm:$0xff]  }
 0x193   :  { %4218 = vmatprep.subr.bf16.mxu0 %v7620_v21  ;;  %v7698_v16 = vld [vmem:[#allocation5 + $0xe64] ss:$48 sps:$4 sm:$0xff]   ;;  %v7702_v21 = vld [vmem:[#allocation5 + $0xec0] ss:$48 sps:$4 sm:$0xff]  }
 0x195   :  { %3842 = vmatpush1.bf16.msra.mxu1 %v7351_v33  ;;  %v7636_v33 = vld [vmem:[#allocation5 + $0xaa0] ss:$48 sps:$4 sm:$0xff]  }
 0x196   :  { %3843 = vmatprep.subr.bf16.mxu1 %v7359_v35  ;;  %4219 = vmatpush1.bf16.msra.mxu0 %v7618_v20  ;;  %v7638_v35 = vld [vmem:[#allocation5 + $0xaa4] ss:$48 sps:$4 sm:$0xff]  }
 0x197   :  { %4220 = vmatprep.subr.bf16.mxu0 %v7626_v25  ;;  %v7704_v20 = vld [vmem:[#allocation5 + $0xec4] ss:$48 sps:$4 sm:$0xff]   ;;  %v7708_v25 = vld [vmem:[#allocation5 + $0xf20] ss:$48 sps:$4 sm:$0xff]  }
 0x199   :  { %3844 = vmatpush1.bf16.msra.mxu1 %v7357_v41  ;;  %v7642_v41 = vld [vmem:[#allocation5 + $0xb00] ss:$48 sps:$4 sm:$0xff]  }
 0x19a   :  { %3856 = vmatprep.subr.bf16.mxu1 %v7365_v42  ;;  %4221 = vmatpush1.bf16.msra.mxu0 %v7624_v24  ;;  %v7644_v42 = vld [vmem:[#allocation5 + $0xb04] ss:$48 sps:$4 sm:$0xff]  }
 0x19b   :  { %4222 = vmatprep.subr.bf16.mxu0 %v7632_v29  ;;  %v7710_v24 = vld [vmem:[#allocation5 + $0xf24] ss:$48 sps:$4 sm:$0xff]   ;;  %v7714_v29 = vld [vmem:[#allocation5 + $0xf80] ss:$48 sps:$4 sm:$0xff]  }
 0x19c   :  { %3846 = vmatmul.mubr.bf16.vlgmr.msra.gmra.mrb[4].mxu1 %v8521_v52 }
 0x19d   :  { %3857 = vmatpush1.bf16.msra.mxu1 %v7363_v45  ;;  %3888 = vmatprep.mubr.bf16.mxu1 %v8524_v55  ;;  %v7648_v45 = vld [vmem:[#allocation5 + $0xb60] ss:$48 sps:$4 sm:$0xff]  }
 0x19e   :  { %3858 = vmatprep.subr.bf16.mxu1 %v7371_v46  ;;  %4223 = vmatpush1.bf16.msra.mxu0 %v7630_v28  ;;  %v7650_v46 = vld [vmem:[#allocation5 + $0xb64] ss:$48 sps:$4 sm:$0xff]  }
 0x19f   :  { %4224 = vmatprep.subr.bf16.mxu0 %v7638_v35  ;;  %v7716_v28 = vld [vmem:[#allocation5 + $0xf84] ss:$48 sps:$4 sm:$0xff]   ;;  %v7720_v35 = vld [vmem:[#allocation5 + $0xfe0] ss:$48 sps:$4 sm:$0xff]  }
 0x1a1   :  { %3859 = vmatpush1.bf16.msra.mxu1 %v7369_v53  ;;  %v7654_v53 = vld [vmem:[#allocation5 + $0xbc0] ss:$48 sps:$4 sm:$0xff]  }
 0x1a2   :  { %3860 = vmatprep.subr.bf16.mxu1 %v7377_v54  ;;  %4225 = vmatpush1.bf16.msra.mxu0 %v7636_v33  ;;  %v7656_v54 = vld [vmem:[#allocation5 + $0xbc4] ss:$48 sps:$4 sm:$0xff]  }
 0x1a3   :  { %4226 = vmatprep.subr.bf16.mxu0 %v7644_v42  ;;  %v7722_v33 = vld [vmem:[#allocation5 + $0xfe4] ss:$48 sps:$4 sm:$0xff]   ;;  %v7726_v42 = vld [vmem:[#allocation5 + $0x1040] ss:$48 sps:$4 sm:$0xff]  }
 0x1a5   :  { %3861 = vmatpush1.bf16.msra.mxu1 %v7375_v34  ;;  %v7473_v34 = vld [vmem:[#allocation5 + $0xdc] ss:$48 sps:$4 sm:$0xff]  }
 0x1a6   :  { %3862 = vmatprep.subr.bf16.mxu1 %v7383_v58  ;;  %4227 = vmatpush1.bf16.msra.mxu0 %v7642_v41  ;;  %v8532_v58 = vld [vmem:[#allocation2 + $0x4] ss:$24 sps:$4 sm:$0xff]  }
 0x1a7   :  { %4228 = vmatprep.subr.bf16.mxu0 %v7650_v46  ;;  %v7728_v41 = vld [vmem:[#allocation5 + $0x1044] ss:$48 sps:$4 sm:$0xff]   ;;  %v7732_v46 = vld [vmem:[#allocation5 + $0x10a0] ss:$48 sps:$4 sm:$0xff]  }
 0x1a9   :  { %3863 = vmatpush1.bf16.msra.mxu1 %v7381_v32  ;;  %v7471_v32 = vld [vmem:[#allocation5 + $0xd8] ss:$48 sps:$4 sm:$0xff]  }
 0x1aa   :  { %3864 = vmatprep.subr.bf16.mxu1 %v7389_v60  ;;  %4229 = vmatpush1.bf16.msra.mxu0 %v7648_v45  ;;  %v7479_v60 = vld [vmem:[#allocation5 + $0x13c] ss:$48 sps:$4 sm:$0xff]   ;;  %v7734_v45 = vld [vmem:[#allocation5 + $0x10a4] ss:$48 sps:$4 sm:$0xff]  }
 0x1ab   :  { %4230 = vmatprep.subr.bf16.mxu0 %v7656_v54  ;;  %v7738_v54 = vld [vmem:[#allocation5 + $0x1100] ss:$48 sps:$4 sm:$0xff]  }
 0x1ad   :  { %3865 = vmatpush1.bf16.msra.mxu1 %v7387_v37  ;;  %v7477_v37 = vld [vmem:[#allocation5 + $0x138] ss:$48 sps:$4 sm:$0xff]  }
 0x1ae   :  { %3866 = vmatprep.subr.bf16.mxu1 %v7395_v47  ;;  %4231 = vmatpush1.bf16.msra.mxu0 %v7654_v53  ;;  %v7485_v47 = vld [vmem:[#allocation5 + $0x19c] ss:$48 sps:$4 sm:$0xff]   ;;  %v7740_v53 = vld [vmem:[#allocation5 + $0x1104] ss:$48 sps:$4 sm:$0xff]  }
 0x1af   :  { %4243 = vmatprep.subr.bf16.mxu0 %v7662_v59  ;;  %v7744_v59 = vld [vmem:[#allocation5 + $0x1160] ss:$48 sps:$4 sm:$0xff]  }
 0x1b1   :  { %3867 = vmatpush1.bf16.msra.mxu1 %v7393_v48  ;;  %4233 = vmatmul.mubr.bf16.vlgmr.msra.gmra.mrb[4].mxu0 %v8521_v52  ;;  %v7483_v48 = vld [vmem:[#allocation5 + $0x198] ss:$48 sps:$4 sm:$0xff]  }
 0x1b2   :  { %3868 = vmatprep.subr.bf16.mxu1 %v7401_v0  ;;  %4244 = vmatpush1.bf16.msra.mxu0 %v7660_v36  ;;  %v7491_v0 = vld [vmem:[#allocation5 + $0x1fc] ss:$48 sps:$4 sm:$0xff]   ;;  %v7746_v36 = vld [vmem:[#allocation5 + $0x1164] ss:$48 sps:$4 sm:$0xff]  }
 0x1b3   :  { %4275 = vmatprep.mubr.bf16.mxu0 %v8524_v55  ;;  %4245 = vmatprep.subr.bf16.mxu0 %v7668_v61  ;;  %v8545_v61 = vld [vmem:[#allocation2] ss:$24 sps:$4 sm:$0xff]  }
 0x1b5   :  { %3869 = vmatpush1.bf16.msra.mxu1 %v7399_v2  ;;  %v7489_v2 = vld [vmem:[#allocation5 + $0x1f8] ss:$48 sps:$4 sm:$0xff]  }
 0x1b6   :  { %3870 = vmatprep.subr.bf16.mxu1 %v7407_v3  ;;  %4246 = vmatpush1.bf16.msra.mxu0 %v7666_v39  ;;  %v7497_v3 = vld [vmem:[#allocation5 + $0x25c] ss:$48 sps:$4 sm:$0xff]   ;;  %v7749_v39 = vld [vmem:[#allocation5 + $0x11c4] ss:$48 sps:$4 sm:$0xff]  }
 0x1b7   :  { %4247 = vmatprep.subr.bf16.mxu0 %v7674_v63  ;;  %v7569_v63 = vld [vmem:[#allocation5 + $0x6dc] ss:$48 sps:$4 sm:$0xff]  }
 0x1b9   :  { %3871 = vmatpush1.bf16.msra.mxu1 %v7405_v6 }
 0x1ba   :  { %3872 = vmatprep.subr.bf16.mxu1 %v7413_v7  ;;  %4248 = vmatpush1.bf16.msra.mxu0 %v7672_v62  ;;  %v7684_v7 = vld [vmem:[#allocation5 + $0xda0] ss:$48 sps:$4 sm:$0xff]   ;;  %v8548_v62 = vld [vmem:[#allocation2 + $0xc] ss:$24 sps:$4 sm:$0xff]  }
 0x1bb   :  { %4249 = vmatprep.subr.bf16.mxu0 %v7680_v1  ;;  %v7581_v1 = vld [vmem:[#allocation5 + $0x79c] ss:$48 sps:$4 sm:$0xff]  }
 0x1bd   :  { %3873 = vmatpush1.bf16.msra.mxu1 %v7411_v10 }
 0x1be   :  { %3874 = vmatprep.subr.bf16.mxu1 %v7419_v11  ;;  %4250 = vmatpush1.bf16.msra.mxu0 %v7678_v51  ;;  %v7503_v11 = vld [vmem:[#allocation5 + $0x2bc] ss:$48 sps:$4 sm:$0xff]   ;;  %v7573_v51 = vld [vmem:[#allocation5 + $0x738] ss:$48 sps:$4 sm:$0xff]  }
 0x1bf   :  { %4251 = vmatprep.subr.bf16.mxu0 %v7686_v4  ;;  %v7585_v4 = vld [vmem:[#allocation5 + $0x7f8] ss:$48 sps:$4 sm:$0xff]  }
 0x1c1   :  { %3875 = vmatpush1.bf16.msra.mxu1 %v7417_v14  ;;  %v7501_v14 = vld [vmem:[#allocation5 + $0x2b8] ss:$48 sps:$4 sm:$0xff]  }
 0x1c2   :  { %3876 = vmatprep.subr.bf16.mxu1 %v7425_v15  ;;  %4252 = vmatpush1.bf16.msra.mxu0 %v7684_v7  ;;  %v7509_v15 = vld [vmem:[#allocation5 + $0x31c] ss:$48 sps:$4 sm:$0xff]  }
 0x1c3   :  { %4253 = vmatprep.subr.bf16.mxu0 %v7692_v12  ;;  %v7593_v7 = vld [vmem:[#allocation5 + $0x85c] ss:$48 sps:$4 sm:$0xff]   ;;  %v7597_v12 = vld [vmem:[#allocation5 + $0x8b8] ss:$48 sps:$4 sm:$0xff]  }
 0x1c5   :  { %3877 = vmatpush1.bf16.msra.mxu1 %v7423_v18  ;;  %v7507_v18 = vld [vmem:[#allocation5 + $0x318] ss:$48 sps:$4 sm:$0xff]  }
 0x1c6   :  { %3878 = vmatprep.subr.bf16.mxu1 %v7431_v19  ;;  %4254 = vmatpush1.bf16.msra.mxu0 %v7690_v13  ;;  %v7515_v19 = vld [vmem:[#allocation5 + $0x37c] ss:$48 sps:$4 sm:$0xff]  }
 0x1c7   :  { %4255 = vmatprep.subr.bf16.mxu0 %v7698_v16  ;;  %v7605_v13 = vld [vmem:[#allocation5 + $0x91c] ss:$48 sps:$4 sm:$0xff]  }
 0x1c9   :  { %3879 = vmatpush1.bf16.msra.mxu1 %v7429_v22  ;;  %v7513_v22 = vld [vmem:[#allocation5 + $0x378] ss:$48 sps:$4 sm:$0xff]  }
 0x1ca   :  { %3880 = vmatprep.subr.bf16.mxu1 %v7437_v23  ;;  %4256 = vmatpush1.bf16.msra.mxu0 %v7696_v17  ;;  %v7521_v23 = vld [vmem:[#allocation5 + $0x3dc] ss:$48 sps:$4 sm:$0xff]   ;;  %v7603_v17 = vld [vmem:[#allocation5 + $0x918] ss:$48 sps:$4 sm:$0xff]  }
 0x1cb   :  { %4257 = vmatprep.subr.bf16.mxu0 %v7704_v20  ;;  %v7609_v20 = vld [vmem:[#allocation5 + $0x978] ss:$48 sps:$4 sm:$0xff]  }
 0x1cd   :  { %3881 = vmatpush1.bf16.msra.mxu1 %v7435_v26  ;;  %v7519_v26 = vld [vmem:[#allocation5 + $0x3d8] ss:$48 sps:$4 sm:$0xff]  }
 0x1ce   :  { %3882 = vmatprep.subr.bf16.mxu1 %v7443_v27  ;;  %4258 = vmatpush1.bf16.msra.mxu0 %v7702_v21  ;;  %v7527_v27 = vld [vmem:[#allocation5 + $0x43c] ss:$48 sps:$4 sm:$0xff]  }
 0x1cf   :  { %4259 = vmatprep.subr.bf16.mxu0 %v7710_v24  ;;  %v7617_v21 = vld [vmem:[#allocation5 + $0x9dc] ss:$48 sps:$4 sm:$0xff]   ;;  %v7621_v24 = vld [vmem:[#allocation5 + $0xa38] ss:$48 sps:$4 sm:$0xff]  }
 0x1d1   :  { %3883 = vmatpush1.bf16.msra.mxu1 %v7441_v30  ;;  %v7525_v30 = vld [vmem:[#allocation5 + $0x438] ss:$48 sps:$4 sm:$0xff]  }
 0x1d2   :  { %3884 = vmatprep.subr.bf16.mxu1 %v7449_v31  ;;  %4260 = vmatpush1.bf16.msra.mxu0 %v7708_v25  ;;  %v7533_v31 = vld [vmem:[#allocation5 + $0x49c] ss:$48 sps:$4 sm:$0xff]  }
 0x1d3   :  { %4261 = vmatprep.subr.bf16.mxu0 %v7716_v28  ;;  %v7629_v25 = vld [vmem:[#allocation5 + $0xa9c] ss:$48 sps:$4 sm:$0xff]   ;;  %v7633_v28 = vld [vmem:[#allocation5 + $0xaf8] ss:$48 sps:$4 sm:$0xff]  }
 0x1d5   :  { %3885 = vmatpush1.bf16.msra.mxu1 %v7447_v38  ;;  %v7531_v38 = vld [vmem:[#allocation5 + $0x498] ss:$48 sps:$4 sm:$0xff]  }
 0x1d6   :  { %3886 = vmatprep.subr.bf16.mxu1 %v7455_v40  ;;  %4262 = vmatpush1.bf16.msra.mxu0 %v7714_v29  ;;  %v7539_v40 = vld [vmem:[#allocation5 + $0x4fc] ss:$48 sps:$4 sm:$0xff]  }
 0x1d7   :  { %4263 = vmatprep.subr.bf16.mxu0 %v7722_v33  ;;  %v7641_v29 = vld [vmem:[#allocation5 + $0xb5c] ss:$48 sps:$4 sm:$0xff]   ;;  %v7645_v33 = vld [vmem:[#allocation5 + $0xbb8] ss:$48 sps:$4 sm:$0xff]  }
 0x1d9   :  { %3887 = vmatpush1.bf16.msra.mxu1 %v7453_v43  ;;  %v7537_v43 = vld [vmem:[#allocation5 + $0x4f8] ss:$48 sps:$4 sm:$0xff]  }
 0x1da   :  { %4028 = vmatprep.subr.bf16.mxu1 %v7464_v44  ;;  %4264 = vmatpush1.bf16.msra.mxu0 %v7720_v35  ;;  %v7545_v44 = vld [vmem:[#allocation5 + $0x55c] ss:$48 sps:$4 sm:$0xff]  }
 0x1db   :  { %4265 = vmatprep.subr.bf16.mxu0 %v7728_v41  ;;  %v7653_v35 = vld [vmem:[#allocation5 + $0xc1c] ss:$48 sps:$4 sm:$0xff]   ;;  %v7657_v41 = vld [vmem:[#allocation5 + $0xc78] ss:$48 sps:$4 sm:$0xff]  }
 0x1dc   :  { %3889 = vmatmul.mubr.bf16.vlgmr.msra.gmra.mrb[4].mxu1 %v8529_v56 }
 0x1dd   :  { %4029 = vmatpush1.bf16.msra.mxu1 %v7462_v49  ;;  %4060 = vmatprep.mubr.bf16.mxu1 %v8532_v58  ;;  %v7543_v49 = vld [vmem:[#allocation5 + $0x558] ss:$48 sps:$4 sm:$0xff]  }
 0x1de   :  { %4030 = vmatprep.subr.bf16.mxu1 %v7467_v50  ;;  %4266 = vmatpush1.bf16.msra.mxu0 %v7726_v42  ;;  %v7551_v50 = vld [vmem:[#allocation5 + $0x5bc] ss:$48 sps:$4 sm:$0xff]  }
 0x1df   :  { %4267 = vmatprep.subr.bf16.mxu0 %v7734_v45  ;;  %v7665_v42 = vld [vmem:[#allocation5 + $0xcdc] ss:$48 sps:$4 sm:$0xff]   ;;  %v7669_v45 = vld [vmem:[#allocation5 + $0xd38] ss:$48 sps:$4 sm:$0xff]  }
 0x1e1   :  { %4031 = vmatpush1.bf16.msra.mxu1 %v7465_v57  ;;  %v7549_v57 = vld [vmem:[#allocation5 + $0x5b8] ss:$48 sps:$4 sm:$0xff]  }
 0x1e2   :  { %4032 = vmatprep.subr.bf16.mxu1 %v7473_v34  ;;  %4268 = vmatpush1.bf16.msra.mxu0 %v7732_v46  ;;  %v7557_v34 = vld [vmem:[#allocation5 + $0x61c] ss:$48 sps:$4 sm:$0xff]  }
 0x1e3   :  { %4269 = vmatprep.subr.bf16.mxu0 %v7740_v53  ;;  %v7677_v46 = vld [vmem:[#allocation5 + $0xd9c] ss:$48 sps:$4 sm:$0xff]  }
 0x1e4   :  { %v7689_v53 = vld [vmem:[#allocation5 + $0xe5c] ss:$48 sps:$4 sm:$0xff]  }
 0x1e5   :  { %4033 = vmatpush1.bf16.msra.mxu1 %v7471_v32  ;;  %v7555_v32 = vld [vmem:[#allocation5 + $0x618] ss:$48 sps:$4 sm:$0xff]  }
 0x1e6   :  { %4034 = vmatprep.subr.bf16.mxu1 %v7479_v60  ;;  %4270 = vmatpush1.bf16.msra.mxu0 %v7738_v54  ;;  %v7563_v60 = vld [vmem:[#allocation5 + $0x67c] ss:$48 sps:$4 sm:$0xff]  }
 0x1e7   :  { %4271 = vmatprep.subr.bf16.mxu0 %v7746_v36  ;;  %v7695_v54 = vld [vmem:[#allocation5 + $0xebc] ss:$48 sps:$4 sm:$0xff]   ;;  %v7699_v36 = vld [vmem:[#allocation5 + $0xf18] ss:$48 sps:$4 sm:$0xff]  }
 0x1e9   :  { %4035 = vmatpush1.bf16.msra.mxu1 %v7477_v37  ;;  %v7747_v37 = vld [vmem:[#allocation5 + $0x11c0] ss:$48 sps:$4 sm:$0xff]  }
 0x1ea   :  { %4036 = vmatprep.subr.bf16.mxu1 %v7485_v47  ;;  %4272 = vmatpush1.bf16.msra.mxu0 %v7744_v59  ;;  %v7561_v47 = vld [vmem:[#allocation5 + $0x678] ss:$48 sps:$4 sm:$0xff]   ;;  %v7707_v59 = vld [vmem:[#allocation5 + $0xf7c] ss:$48 sps:$4 sm:$0xff]  }
 0x1eb   :  { %4273 = vmatprep.subr.bf16.mxu0 %v7749_v39  ;;  %v7711_v39 = vld [vmem:[#allocation5 + $0xfd8] ss:$48 sps:$4 sm:$0xff]  }
 0x1ed   :  { %4037 = vmatpush1.bf16.msra.mxu1 %v7483_v48  ;;  %v7567_v48 = vld [vmem:[#allocation5 + $0x6d8] ss:$48 sps:$4 sm:$0xff]  }
 0x1ee   :  { %4038 = vmatprep.subr.bf16.mxu1 %v7491_v0  ;;  %4274 = vmatpush1.bf16.msra.mxu0 %v7747_v37  ;;  %v7575_v0 = vld [vmem:[#allocation5 + $0x73c] ss:$48 sps:$4 sm:$0xff]  }
 0x1ef   :  { %v8537_v5 = vpop.f32.mrb[0].mxu1  ;;  %v7719_v37 = vld [vmem:[#allocation5 + $0x103c] ss:$48 sps:$4 sm:$0xff]  }
 0x1f0   :  { %v8539_v6 = vpop.f32.mrb[1].mxu1 }
 0x1f1   :  { %v8541_v8 = vpop.f32.mrb[2].mxu1  ;;  %4039 = vmatpush1.bf16.msra.mxu1 %v7489_v2  ;;  %4276 = vmatmul.mubr.bf16.vlgmr.msra.gmra.mrb[4].mxu0 %v8529_v56  ;;  %v7579_v2 = vld [vmem:[#allocation5 + $0x798] ss:$48 sps:$4 sm:$0xff]  }
 0x1f2   :  { %v8543_v10 = vpop.f32.mrb[3].mxu1  ;;  %4040 = vmatprep.subr.bf16.mxu1 %v7497_v3  ;;  %v7587_v3 = vld [vmem:[#allocation5 + $0x7fc] ss:$48 sps:$4 sm:$0xff]  }
 0x1f5   :  { %4041 = vmatpush1.bf16.msra.mxu1 %v7495_v9  ;;  %v7591_v9 = vld [vmem:[#allocation5 + $0x858] ss:$48 sps:$4 sm:$0xff]  }
 0x1f6   :  { %4042 = vmatprep.subr.bf16.mxu1 %v7503_v11  ;;  %v7599_v11 = vld [vmem:[#allocation5 + $0x8bc] ss:$48 sps:$4 sm:$0xff]  }
 0x1f9   :  { %4043 = vmatpush1.bf16.msra.mxu1 %v7501_v14 }
 0x1fa   :  { %4044 = vmatprep.subr.bf16.mxu1 %v7509_v15 }
 0x1fd   :  { %4045 = vmatpush1.bf16.msra.mxu1 %v7507_v18 }
 0x1fe   :  { %4046 = vmatprep.subr.bf16.mxu1 %v7515_v19  ;;  %v7611_v19 = vld [vmem:[#allocation5 + $0x97c] ss:$48 sps:$4 sm:$0xff]  }
 0x201   :  { %4047 = vmatpush1.bf16.msra.mxu1 %v7513_v22  ;;  %v7615_v22 = vld [vmem:[#allocation5 + $0x9d8] ss:$48 sps:$4 sm:$0xff]  }
 0x202   :  { %4048 = vmatprep.subr.bf16.mxu1 %v7521_v23  ;;  %v7623_v23 = vld [vmem:[#allocation5 + $0xa3c] ss:$48 sps:$4 sm:$0xff]  }
 0x204   :  { %v8552_v14 = vpop.f32.mrb[0].mxu0 }
 0x205   :  { %4049 = vmatpush1.bf16.msra.mxu1 %v7519_v26  ;;  %v8554_v15 = vpop.f32.mrb[1].mxu0  ;;  %v7627_v26 = vld [vmem:[#allocation5 + $0xa98] ss:$48 sps:$4 sm:$0xff]  }
 0x206   :  { %4050 = vmatprep.subr.bf16.mxu1 %v7527_v27  ;;  %v8556_v16 = vpop.f32.mrb[2].mxu0  ;;  %v7635_v27 = vld [vmem:[#allocation5 + $0xafc] ss:$48 sps:$4 sm:$0xff]  }
 0x207   :  { %v8558_v18 = vpop.f32.mrb[3].mxu0 }
 0x209   :  { %4051 = vmatpush1.bf16.msra.mxu1 %v7525_v30  ;;  %v7639_v30 = vld [vmem:[#allocation5 + $0xb58] ss:$48 sps:$4 sm:$0xff]  }
 0x20a   :  { %4052 = vmatprep.subr.bf16.mxu1 %v7533_v31  ;;  %v7647_v31 = vld [vmem:[#allocation5 + $0xbbc] ss:$48 sps:$4 sm:$0xff]  }
 0x20d   :  { %4053 = vmatpush1.bf16.msra.mxu1 %v7531_v38  ;;  %v7651_v38 = vld [vmem:[#allocation5 + $0xc18] ss:$48 sps:$4 sm:$0xff]  }
 0x20e   :  { %4054 = vmatprep.subr.bf16.mxu1 %v7539_v40  ;;  %v7659_v40 = vld [vmem:[#allocation5 + $0xc7c] ss:$48 sps:$4 sm:$0xff]  }
 0x211   :  { %4055 = vmatpush1.bf16.msra.mxu1 %v7537_v43  ;;  %v7663_v43 = vld [vmem:[#allocation5 + $0xcd8] ss:$48 sps:$4 sm:$0xff]  }
 0x212   :  { %4056 = vmatprep.subr.bf16.mxu1 %v7545_v44  ;;  %v7671_v44 = vld [vmem:[#allocation5 + $0xd3c] ss:$48 sps:$4 sm:$0xff]  }
 0x215   :  { %4057 = vmatpush1.bf16.msra.mxu1 %v7543_v49  ;;  %v7675_v49 = vld [vmem:[#allocation5 + $0xd98] ss:$48 sps:$4 sm:$0xff]  }
 0x216   :  { %4058 = vmatprep.subr.bf16.mxu1 %v7551_v50  ;;  %v7683_v50 = vld [vmem:[#allocation5 + $0xdfc] ss:$48 sps:$4 sm:$0xff]  }
 0x219   :  { %4059 = vmatpush1.bf16.msra.mxu1 %v7549_v57  ;;  %v7693_v57 = vld [vmem:[#allocation5 + $0xeb8] ss:$48 sps:$4 sm:$0xff]  }
 0x21a   :  { %4071 = vmatprep.subr.bf16.mxu1 %v7557_v34  ;;  %v7701_v34 = vld [vmem:[#allocation5 + $0xf1c] ss:$48 sps:$4 sm:$0xff]  }
 0x21c   :  { %4061 = vmatmul.mubr.bf16.vlgmr.msra.gmra.mrb[8].mxu1 %v8545_v61 }
 0x21d   :  { %4072 = vmatpush1.bf16.msra.mxu1 %v7555_v32  ;;  %4103 = vmatprep.mubr.bf16.mxu1 %v8548_v62  ;;  %v7705_v32 = vld [vmem:[#allocation5 + $0xf78] ss:$48 sps:$4 sm:$0xff]  }
 0x21e   :  { %4073 = vmatprep.subr.bf16.mxu1 %v7563_v60  ;;  %v7713_v60 = vld [vmem:[#allocation5 + $0xfdc] ss:$48 sps:$4 sm:$0xff]  }
 0x221   :  { %4074 = vmatpush1.bf16.msra.mxu1 %v7561_v47  ;;  %v7717_v47 = vld [vmem:[#allocation5 + $0x1038] ss:$48 sps:$4 sm:$0xff]  }
 0x222   :  { %4075 = vmatprep.subr.bf16.mxu1 %v7569_v63  ;;  %v7725_v63 = vld [vmem:[#allocation5 + $0x109c] ss:$48 sps:$4 sm:$0xff]  }
 0x225   :  { %4076 = vmatpush1.bf16.msra.mxu1 %v7567_v48  ;;  %v7723_v48 = vld [vmem:[#allocation5 + $0x1098] ss:$48 sps:$4 sm:$0xff]  }
 0x226   :  { %4077 = vmatprep.subr.bf16.mxu1 %v7575_v0  ;;  %v7731_v0 = vld [vmem:[#allocation5 + $0x10fc] ss:$48 sps:$4 sm:$0xff]  }
 0x229   :  { %4078 = vmatpush1.bf16.msra.mxu1 %v7573_v51  ;;  %v7729_v51 = vld [vmem:[#allocation5 + $0x10f8] ss:$48 sps:$4 sm:$0xff]  }
 0x22a   :  { %4079 = vmatprep.subr.bf16.mxu1 %v7581_v1  ;;  %v7737_v1 = vld [vmem:[#allocation5 + $0x115c] ss:$48 sps:$4 sm:$0xff]  }
 0x22d   :  { %4080 = vmatpush1.bf16.msra.mxu1 %v7579_v2  ;;  %v7735_v2 = vld [vmem:[#allocation5 + $0x1158] ss:$48 sps:$4 sm:$0xff]  }
 0x22e   :  { %4081 = vmatprep.subr.bf16.mxu1 %v7587_v3  ;;  %v7743_v3 = vld [vmem:[#allocation5 + $0x11bc] ss:$48 sps:$4 sm:$0xff]  }
 0x231   :  { %4082 = vmatpush1.bf16.msra.mxu1 %v7585_v4  ;;  %v7741_v4 = vld [vmem:[#allocation5 + $0x11b8] ss:$48 sps:$4 sm:$0xff]  }
 0x232   :  { %4083 = vmatprep.subr.bf16.mxu1 %v7593_v7  ;;  %v7752_v7 = vld [vmem:[#allocation5 + $0x2c] ss:$48 sps:$4 sm:$0xff]  }
 0x235   :  { %4084 = vmatpush1.bf16.msra.mxu1 %v7591_v9  ;;  %v7750_v9 = vld [vmem:[#allocation5 + $0x28] ss:$48 sps:$4 sm:$0xff]  }
 0x236   :  { %4085 = vmatprep.subr.bf16.mxu1 %v7599_v11  ;;  %v7755_v11 = vld [vmem:[#allocation5 + $0x8c] ss:$48 sps:$4 sm:$0xff]  }
 0x239   :  { %4086 = vmatpush1.bf16.msra.mxu1 %v7597_v12  ;;  %v7753_v12 = vld [vmem:[#allocation5 + $0x88] ss:$48 sps:$4 sm:$0xff]  }
 0x23a   :  { %4087 = vmatprep.subr.bf16.mxu1 %v7605_v13  ;;  %v7758_v13 = vld [vmem:[#allocation5 + $0xec] ss:$48 sps:$4 sm:$0xff]  }
 0x23d   :  { %4088 = vmatpush1.bf16.msra.mxu1 %v7603_v17  ;;  %v7756_v17 = vld [vmem:[#allocation5 + $0xe8] ss:$48 sps:$4 sm:$0xff]  }
 0x23e   :  { %4089 = vmatprep.subr.bf16.mxu1 %v7611_v19  ;;  %v7761_v19 = vld [vmem:[#allocation5 + $0x14c] ss:$48 sps:$4 sm:$0xff]  }
 0x241   :  { %4090 = vmatpush1.bf16.msra.mxu1 %v7609_v20  ;;  %v7759_v20 = vld [vmem:[#allocation5 + $0x148] ss:$48 sps:$4 sm:$0xff]  }
 0x242   :  { %4091 = vmatprep.subr.bf16.mxu1 %v7617_v21  ;;  %v7764_v21 = vld [vmem:[#allocation5 + $0x1ac] ss:$48 sps:$4 sm:$0xff]  }
 0x245   :  { %4092 = vmatpush1.bf16.msra.mxu1 %v7615_v22  ;;  %v7762_v22 = vld [vmem:[#allocation5 + $0x1a8] ss:$48 sps:$4 sm:$0xff]  }
 0x246   :  { %4093 = vmatprep.subr.bf16.mxu1 %v7623_v23  ;;  %v7767_v23 = vld [vmem:[#allocation5 + $0x20c] ss:$48 sps:$4 sm:$0xff]  }
 0x249   :  { %4094 = vmatpush1.bf16.msra.mxu1 %v7621_v24  ;;  %v7770_v24 = vld [vmem:[#allocation5 + $0x26c] ss:$48 sps:$4 sm:$0xff]  }
 0x24a   :  { %4095 = vmatprep.subr.bf16.mxu1 %v7629_v25 }
 0x24d   :  { %4096 = vmatpush1.bf16.msra.mxu1 %v7627_v26 }
 0x24e   :  { %4097 = vmatprep.subr.bf16.mxu1 %v7635_v27  ;;  %v7768_v27 = vld [vmem:[#allocation5 + $0x268] ss:$48 sps:$4 sm:$0xff]  }
 0x251   :  { %4098 = vmatpush1.bf16.msra.mxu1 %v7633_v28 }
 0x252   :  { %4099 = vmatprep.subr.bf16.mxu1 %v7641_v29  ;;  %v7773_v29 = vld [vmem:[#allocation5 + $0x2cc] ss:$48 sps:$4 sm:$0xff]  }
 0x255   :  { %4100 = vmatpush1.bf16.msra.mxu1 %v7639_v30  ;;  %v7771_v30 = vld [vmem:[#allocation5 + $0x2c8] ss:$48 sps:$4 sm:$0xff]  }
 0x256   :  { %4101 = vmatprep.subr.bf16.mxu1 %v7647_v31  ;;  %v7776_v31 = vld [vmem:[#allocation5 + $0x32c] ss:$48 sps:$4 sm:$0xff]  }
 0x259   :  { %4102 = vmatpush1.bf16.msra.mxu1 %v7645_v33  ;;  %v7774_v33 = vld [vmem:[#allocation5 + $0x328] ss:$48 sps:$4 sm:$0xff]  }
 0x25a   :  { %4114 = vmatprep.subr.bf16.mxu1 %v7653_v35  ;;  %v7779_v35 = vld [vmem:[#allocation5 + $0x38c] ss:$48 sps:$4 sm:$0xff]  }
 0x25c   :  { %4104 = vmatmul.mubr.bf16.vlgmr.msra.gmra.mrb[8].mxu1 %v8521_v52  ;;  %v7681_v52 = vld [vmem:[#allocation5 + $0xdf8] ss:$48 sps:$4 sm:$0xff]  }
 0x25d   :  { %4115 = vmatpush1.bf16.msra.mxu1 %v7651_v38  ;;  %4146 = vmatprep.mubr.bf16.mxu1 %v8524_v55  ;;  %v7687_v55 = vld [vmem:[#allocation5 + $0xe58] ss:$48 sps:$4 sm:$0xff]  }
 0x25e   :  { %4116 = vmatprep.subr.bf16.mxu1 %v7659_v40  ;;  %v7777_v38 = vld [vmem:[#allocation5 + $0x388] ss:$48 sps:$4 sm:$0xff]   ;;  %v7782_v40 = vld [vmem:[#allocation5 + $0x3ec] ss:$48 sps:$4 sm:$0xff]  }
 0x261   :  { %4117 = vmatpush1.bf16.msra.mxu1 %v7657_v41  ;;  %v7780_v41 = vld [vmem:[#allocation5 + $0x3e8] ss:$48 sps:$4 sm:$0xff]  }
 0x262   :  { %4118 = vmatprep.subr.bf16.mxu1 %v7665_v42  ;;  %v7785_v42 = vld [vmem:[#allocation5 + $0x44c] ss:$48 sps:$4 sm:$0xff]  }
 0x265   :  { %4119 = vmatpush1.bf16.msra.mxu1 %v7663_v43  ;;  %v7783_v43 = vld [vmem:[#allocation5 + $0x448] ss:$48 sps:$4 sm:$0xff]  }
 0x266   :  { %4120 = vmatprep.subr.bf16.mxu1 %v7671_v44  ;;  %v7788_v44 = vld [vmem:[#allocation5 + $0x4ac] ss:$48 sps:$4 sm:$0xff]  }
 0x269   :  { %4121 = vmatpush1.bf16.msra.mxu1 %v7669_v45  ;;  %v7786_v45 = vld [vmem:[#allocation5 + $0x4a8] ss:$48 sps:$4 sm:$0xff]  }
 0x26a   :  { %4122 = vmatprep.subr.bf16.mxu1 %v7677_v46  ;;  %v7791_v46 = vld [vmem:[#allocation5 + $0x50c] ss:$48 sps:$4 sm:$0xff]  }
 0x26d   :  { %4123 = vmatpush1.bf16.msra.mxu1 %v7675_v49  ;;  %v7789_v49 = vld [vmem:[#allocation5 + $0x508] ss:$48 sps:$4 sm:$0xff]  }
 0x26e   :  { %4124 = vmatprep.subr.bf16.mxu1 %v7683_v50  ;;  %v7794_v50 = vld [vmem:[#allocation5 + $0x56c] ss:$48 sps:$4 sm:$0xff]  }
 0x271   :  { %4125 = vmatpush1.bf16.msra.mxu1 %v7681_v52  ;;  %v7792_v52 = vld [vmem:[#allocation5 + $0x568] ss:$48 sps:$4 sm:$0xff]  }
 0x272   :  { %4126 = vmatprep.subr.bf16.mxu1 %v7689_v53  ;;  %v7797_v53 = vld [vmem:[#allocation5 + $0x5cc] ss:$48 sps:$4 sm:$0xff]  }
 0x275   :  { %4127 = vmatpush1.bf16.msra.mxu1 %v7687_v55  ;;  %v7795_v55 = vld [vmem:[#allocation5 + $0x5c8] ss:$48 sps:$4 sm:$0xff]  }
 0x276   :  { %4128 = vmatprep.subr.bf16.mxu1 %v7695_v54  ;;  %v7800_v54 = vld [vmem:[#allocation5 + $0x62c] ss:$48 sps:$4 sm:$0xff]  }
 0x279   :  { %4129 = vmatpush1.bf16.msra.mxu1 %v7693_v57  ;;  %v7798_v57 = vld [vmem:[#allocation5 + $0x628] ss:$48 sps:$4 sm:$0xff]  }
 0x27a   :  { %4130 = vmatprep.subr.bf16.mxu1 %v7701_v34  ;;  %v7803_v34 = vld [vmem:[#allocation5 + $0x68c] ss:$48 sps:$4 sm:$0xff]  }
 0x27d   :  { %4131 = vmatpush1.bf16.msra.mxu1 %v7699_v36  ;;  %v7801_v36 = vld [vmem:[#allocation5 + $0x688] ss:$48 sps:$4 sm:$0xff]  }
 0x27e   :  { %4132 = vmatprep.subr.bf16.mxu1 %v7707_v59  ;;  %v7806_v59 = vld [vmem:[#allocation5 + $0x6ec] ss:$48 sps:$4 sm:$0xff]  }
 0x281   :  { %4133 = vmatpush1.bf16.msra.mxu1 %v7705_v32  ;;  %v7804_v32 = vld [vmem:[#allocation5 + $0x6e8] ss:$48 sps:$4 sm:$0xff]  }
 0x282   :  { %4134 = vmatprep.subr.bf16.mxu1 %v7713_v60  ;;  %v7809_v60 = vld [vmem:[#allocation5 + $0x74c] ss:$48 sps:$4 sm:$0xff]  }
 0x285   :  { %4135 = vmatpush1.bf16.msra.mxu1 %v7711_v39  ;;  %v7807_v39 = vld [vmem:[#allocation5 + $0x748] ss:$48 sps:$4 sm:$0xff]  }
 0x286   :  { %4136 = vmatprep.subr.bf16.mxu1 %v7719_v37  ;;  %v7812_v37 = vld [vmem:[#allocation5 + $0x7ac] ss:$48 sps:$4 sm:$0xff]  }
 0x289   :  { %4137 = vmatpush1.bf16.msra.mxu1 %v7717_v47  ;;  %v7810_v47 = vld [vmem:[#allocation5 + $0x7a8] ss:$48 sps:$4 sm:$0xff]  }
 0x28a   :  { %4138 = vmatprep.subr.bf16.mxu1 %v7725_v63  ;;  %v7815_v63 = vld [vmem:[#allocation5 + $0x80c] ss:$48 sps:$4 sm:$0xff]  }
 0x28d   :  { %4139 = vmatpush1.bf16.msra.mxu1 %v7723_v48  ;;  %v7818_v48 = vld [vmem:[#allocation5 + $0x86c] ss:$48 sps:$4 sm:$0xff]  }
 0x28e   :  { %4140 = vmatprep.subr.bf16.mxu1 %v7731_v0  ;;  %v7821_v0 = vld [vmem:[#allocation5 + $0x8cc] ss:$48 sps:$4 sm:$0xff]  }
 0x291   :  { %4141 = vmatpush1.bf16.msra.mxu1 %v7729_v51  ;;  %v7819_v51 = vld [vmem:[#allocation5 + $0x8c8] ss:$48 sps:$4 sm:$0xff]  }
 0x292   :  { %4142 = vmatprep.subr.bf16.mxu1 %v7737_v1  ;;  %v7824_v1 = vld [vmem:[#allocation5 + $0x92c] ss:$48 sps:$4 sm:$0xff]  }
 0x295   :  { %4143 = vmatpush1.bf16.msra.mxu1 %v7735_v2 }
 0x296   :  { %4144 = vmatprep.subr.bf16.mxu1 %v7743_v3 }
 0x299   :  { %4145 = vmatpush1.bf16.msra.mxu1 %v7741_v4 }
 0x29a   :  { %4286 = vmatprep.subr.bf16.mxu1 %v7752_v7  ;;  %v7822_v7 = vld [vmem:[#allocation5 + $0x928] ss:$48 sps:$4 sm:$0xff]  }
 0x29c   :  { %4147 = vmatmul.mubr.bf16.vlgmr.msra.gmra.mrb[8].mxu1 %v8529_v56  ;;  %v7765_v56 = vld [vmem:[#allocation5 + $0x208] ss:$48 sps:$4 sm:$0xff]  }
 0x29d   :  { %4287 = vmatpush1.bf16.msra.mxu1 %v7750_v9  ;;  %4318 = vmatprep.mubr.bf16.mxu1 %v8532_v58 }
 0x29e   :  { %4288 = vmatprep.subr.bf16.mxu1 %v7755_v11  ;;  %v7827_v11 = vld [vmem:[#allocation5 + $0x98c] ss:$48 sps:$4 sm:$0xff]  }
 0x2a1   :  { %4289 = vmatpush1.bf16.msra.mxu1 %v7753_v12  ;;  %v7825_v12 = vld [vmem:[#allocation5 + $0x988] ss:$48 sps:$4 sm:$0xff]  }
 0x2a2   :  { %4290 = vmatprep.subr.bf16.mxu1 %v7758_v13  ;;  %v7830_v13 = vld [vmem:[#allocation5 + $0x9ec] ss:$48 sps:$4 sm:$0xff]  }
 0x2a5   :  { %4291 = vmatpush1.bf16.msra.mxu1 %v7756_v17  ;;  %v7828_v17 = vld [vmem:[#allocation5 + $0x9e8] ss:$48 sps:$4 sm:$0xff]  }
 0x2a6   :  { %4292 = vmatprep.subr.bf16.mxu1 %v7761_v19  ;;  %v7833_v19 = vld [vmem:[#allocation5 + $0xa4c] ss:$48 sps:$4 sm:$0xff]  }
 0x2a9   :  { %4293 = vmatpush1.bf16.msra.mxu1 %v7759_v20  ;;  %v7831_v20 = vld [vmem:[#allocation5 + $0xa48] ss:$48 sps:$4 sm:$0xff]  }
 0x2aa   :  { %4294 = vmatprep.subr.bf16.mxu1 %v7764_v21  ;;  %v7836_v21 = vld [vmem:[#allocation5 + $0xaac] ss:$48 sps:$4 sm:$0xff]  }
 0x2ad   :  { %4295 = vmatpush1.bf16.msra.mxu1 %v7762_v22  ;;  %v7834_v22 = vld [vmem:[#allocation5 + $0xaa8] ss:$48 sps:$4 sm:$0xff]  }
 0x2ae   :  { %4296 = vmatprep.subr.bf16.mxu1 %v7767_v23  ;;  %v7839_v23 = vld [vmem:[#allocation5 + $0xb0c] ss:$48 sps:$4 sm:$0xff]  }
 0x2af   :  { %v8564_v25 = vpop.f32.mrb[4].mxu1 }
 0x2b0   :  { %v8566_v58 = vpop.f32.mrb[5].mxu1 }
 0x2b1   :  { %v8568_v26 = vpop.f32.mrb[6].mxu1  ;;  %4297 = vmatpush1.bf16.msra.mxu1 %v7765_v56  ;;  %v7837_v56 = vld [vmem:[#allocation5 + $0xb08] ss:$48 sps:$4 sm:$0xff]  }
 0x2b2   :  { %v8570_v28 = vpop.f32.mrb[7].mxu1  ;;  %4298 = vmatprep.subr.bf16.mxu1 %v7770_v24  ;;  %v7842_v24 = vld [vmem:[#allocation5 + $0xb6c] ss:$48 sps:$4 sm:$0xff]  }
 0x2b5   :  { %4299 = vmatpush1.bf16.msra.mxu1 %v7768_v27  ;;  %v7840_v27 = vld [vmem:[#allocation5 + $0xb68] ss:$48 sps:$4 sm:$0xff]  }
 0x2b6   :  { %4300 = vmatprep.subr.bf16.mxu1 %v7773_v29  ;;  %v7845_v29 = vld [vmem:[#allocation5 + $0xbcc] ss:$48 sps:$4 sm:$0xff]  }
 0x2b9   :  { %4301 = vmatpush1.bf16.msra.mxu1 %v7771_v30  ;;  %v7843_v30 = vld [vmem:[#allocation5 + $0xbc8] ss:$48 sps:$4 sm:$0xff]  }
 0x2ba   :  { %4302 = vmatprep.subr.bf16.mxu1 %v7776_v31  ;;  %v7848_v31 = vld [vmem:[#allocation5 + $0xc2c] ss:$48 sps:$4 sm:$0xff]  }
 0x2bd   :  { %4303 = vmatpush1.bf16.msra.mxu1 %v7774_v33  ;;  %v7846_v33 = vld [vmem:[#allocation5 + $0xc28] ss:$48 sps:$4 sm:$0xff]  }
 0x2be   :  { %4304 = vmatprep.subr.bf16.mxu1 %v7779_v35  ;;  %v7851_v35 = vld [vmem:[#allocation5 + $0xc8c] ss:$48 sps:$4 sm:$0xff]  }
 0x2c1   :  { %4305 = vmatpush1.bf16.msra.mxu1 %v7777_v38  ;;  %v8243_v38 = vld [vmem:[#allocation2 + $0x8] ss:$24 sps:$4 sm:$0xff]  }
 0x2c2   :  { %4306 = vmatprep.subr.bf16.mxu1 %v7782_v40  ;;  %v7849_v40 = vld [vmem:[#allocation5 + $0xc88] ss:$48 sps:$4 sm:$0xff]  }
 0x2c4   :  { %v8574_v2 = vpop.f32.mrb[4].mxu0 }
 0x2c5   :  { %4307 = vmatpush1.bf16.msra.mxu1 %v7780_v41  ;;  %v8576_v3 = vpop.f32.mrb[5].mxu0  ;;  %v8244_v41 = vld [vmem:[#allocation2 + $0x14] ss:$24 sps:$4 sm:$0xff]  }
 0x2c6   :  { %4308 = vmatprep.subr.bf16.mxu1 %v7785_v42  ;;  %v8578_v4 = vpop.f32.mrb[6].mxu0  ;;  %v7854_v42 = vld [vmem:[#allocation5 + $0xcec] ss:$48 sps:$4 sm:$0xff]  }
 0x2c7   :  { %v8580_v9 = vpop.f32.mrb[7].mxu0 }
 0x2c9   :  { %4309 = vmatpush1.bf16.msra.mxu1 %v7783_v43  ;;  %v7852_v43 = vld [vmem:[#allocation5 + $0xce8] ss:$48 sps:$4 sm:$0xff]  }
 0x2ca   :  { %4310 = vmatprep.subr.bf16.mxu1 %v7788_v44  ;;  %v7857_v44 = vld [vmem:[#allocation5 + $0xd4c] ss:$48 sps:$4 sm:$0xff]  }
 0x2cd   :  { %4311 = vmatpush1.bf16.msra.mxu1 %v7786_v45  ;;  %v7855_v45 = vld [vmem:[#allocation5 + $0xd48] ss:$48 sps:$4 sm:$0xff]  }
 0x2ce   :  { %4312 = vmatprep.subr.bf16.mxu1 %v7791_v46  ;;  %v7860_v46 = vld [vmem:[#allocation5 + $0xdac] ss:$48 sps:$4 sm:$0xff]  }
 0x2d1   :  { %4313 = vmatpush1.bf16.msra.mxu1 %v7789_v49  ;;  %v7858_v49 = vld [vmem:[#allocation5 + $0xda8] ss:$48 sps:$4 sm:$0xff]  }
 0x2d2   :  { %4314 = vmatprep.subr.bf16.mxu1 %v7794_v50  ;;  %v7863_v50 = vld [vmem:[#allocation5 + $0xe0c] ss:$48 sps:$4 sm:$0xff]  }
 0x2d5   :  { %4315 = vmatpush1.bf16.msra.mxu1 %v7792_v52  ;;  %v7861_v52 = vld [vmem:[#allocation5 + $0xe08] ss:$48 sps:$4 sm:$0xff]  }
 0x2d6   :  { %4316 = vmatprep.subr.bf16.mxu1 %v7797_v53  ;;  %v7866_v53 = vld [vmem:[#allocation5 + $0xe6c] ss:$48 sps:$4 sm:$0xff]  }
 0x2d9   :  { %4317 = vmatpush1.bf16.msra.mxu1 %v7795_v55  ;;  %v7864_v55 = vld [vmem:[#allocation5 + $0xe68] ss:$48 sps:$4 sm:$0xff]  }
 0x2da   :  { %4329 = vmatprep.subr.bf16.mxu1 %v7800_v54  ;;  %v7869_v54 = vld [vmem:[#allocation5 + $0xecc] ss:$48 sps:$4 sm:$0xff]  }
 0x2dc   :  { %4319 = vmatmul.mubr.bf16.vlgmr.msra.gmra.mrb[12].mxu1 %v8545_v61  ;;  %v7813_v61 = vld [vmem:[#allocation5 + $0x808] ss:$48 sps:$4 sm:$0xff]  }
 0x2dd   :  { %4330 = vmatpush1.bf16.msra.mxu1 %v7798_v57  ;;  %4361 = vmatprep.mubr.bf16.mxu1 %v8548_v62  ;;  %v7816_v62 = vld [vmem:[#allocation5 + $0x868] ss:$48 sps:$4 sm:$0xff]  }
 0x2de   :  { %4331 = vmatprep.subr.bf16.mxu1 %v7803_v34  ;;  %v7867_v57 = vld [vmem:[#allocation5 + $0xec8] ss:$48 sps:$4 sm:$0xff]   ;;  %v7872_v34 = vld [vmem:[#allocation5 + $0xf2c] ss:$48 sps:$4 sm:$0xff]  }
 0x2e1   :  { %4332 = vmatpush1.bf16.msra.mxu1 %v7801_v36  ;;  %v7870_v36 = vld [vmem:[#allocation5 + $0xf28] ss:$48 sps:$4 sm:$0xff]  }
 0x2e2   :  { %4333 = vmatprep.subr.bf16.mxu1 %v7806_v59  ;;  %v7875_v59 = vld [vmem:[#allocation5 + $0xf8c] ss:$48 sps:$4 sm:$0xff]  }
 0x2e5   :  { %4334 = vmatpush1.bf16.msra.mxu1 %v7804_v32  ;;  %v7873_v32 = vld [vmem:[#allocation5 + $0xf88] ss:$48 sps:$4 sm:$0xff]  }
 0x2e6   :  { %4335 = vmatprep.subr.bf16.mxu1 %v7809_v60  ;;  %v7878_v60 = vld [vmem:[#allocation5 + $0xfec] ss:$48 sps:$4 sm:$0xff]  }
 0x2e9   :  { %4336 = vmatpush1.bf16.msra.mxu1 %v7807_v39  ;;  %v7876_v39 = vld [vmem:[#allocation5 + $0xfe8] ss:$48 sps:$4 sm:$0xff]  }
 0x2ea   :  { %4337 = vmatprep.subr.bf16.mxu1 %v7812_v37  ;;  %v7881_v37 = vld [vmem:[#allocation5 + $0x104c] ss:$48 sps:$4 sm:$0xff]  }
 0x2ed   :  { %4338 = vmatpush1.bf16.msra.mxu1 %v7810_v47  ;;  %v7879_v47 = vld [vmem:[#allocation5 + $0x1048] ss:$48 sps:$4 sm:$0xff]  }
 0x2ee   :  { %4339 = vmatprep.subr.bf16.mxu1 %v7815_v63  ;;  %v7884_v63 = vld [vmem:[#allocation5 + $0x10ac] ss:$48 sps:$4 sm:$0xff]  }
 0x2f1   :  { %4340 = vmatpush1.bf16.msra.mxu1 %v7813_v61  ;;  %v7882_v61 = vld [vmem:[#allocation5 + $0x10a8] ss:$48 sps:$4 sm:$0xff]  }
 0x2f2   :  { %4341 = vmatprep.subr.bf16.mxu1 %v7818_v48  ;;  %v7887_v48 = vld [vmem:[#allocation5 + $0x110c] ss:$48 sps:$4 sm:$0xff]  }
 0x2f5   :  { %4342 = vmatpush1.bf16.msra.mxu1 %v7816_v62  ;;  %v7885_v62 = vld [vmem:[#allocation5 + $0x1108] ss:$48 sps:$4 sm:$0xff]  }
 0x2f6   :  { %4343 = vmatprep.subr.bf16.mxu1 %v7821_v0  ;;  %v7890_v0 = vld [vmem:[#allocation5 + $0x116c] ss:$48 sps:$4 sm:$0xff]  }
 0x2f9   :  { %4344 = vmatpush1.bf16.msra.mxu1 %v7819_v51  ;;  %v7888_v51 = vld [vmem:[#allocation5 + $0x1168] ss:$48 sps:$4 sm:$0xff]  }
 0x2fa   :  { %4345 = vmatprep.subr.bf16.mxu1 %v7824_v1  ;;  %v7893_v1 = vld [vmem:[#allocation5 + $0x11cc] ss:$48 sps:$4 sm:$0xff]  }
 0x2fd   :  { %4346 = vmatpush1.bf16.msra.mxu1 %v7822_v7  ;;  %v7891_v7 = vld [vmem:[#allocation5 + $0x11c8] ss:$48 sps:$4 sm:$0xff]  }
 0x2fe   :  { %4347 = vmatprep.subr.bf16.mxu1 %v7827_v11  ;;  %v8245_v11 = vld [vmem:[#allocation2 + $0x10] ss:$24 sps:$4 sm:$0xff]  }
 0x301   :  { %4348 = vmatpush1.bf16.msra.mxu1 %v7825_v12 }
 0x302   :  { %4349 = vmatprep.subr.bf16.mxu1 %v7830_v13 }
 0x305   :  { %4350 = vmatpush1.bf16.msra.mxu1 %v7828_v17 }
 0x306   :  { %4351 = vmatprep.subr.bf16.mxu1 %v7833_v19 }
 0x309   :  { %4352 = vmatpush1.bf16.msra.mxu1 %v7831_v20  ;;  %v671_v20 = vlaneseq }
 0x30a   :  { %4353 = vmatprep.subr.bf16.mxu1 %v7836_v21 }
 0x30b   :  { %v8590_v21 = vshrl.u32 %v671_v20, 7 }
 0x30d   :  { %4354 = vmatpush1.bf16.msra.mxu1 %v7834_v22  ;;  %v8593_v22 = vsub.s32 0, %v8590_v21 }
 0x30e   :  { %4355 = vmatprep.subr.bf16.mxu1 %v7839_v23  ;;  %v8595_v23 = vld [vmem:[#allocation7] sm:$0xff] }
 0x311   :  { %4356 = vmatpush1.bf16.msra.mxu1 %v7837_v56  ;;  %v8598_v56 = vsub.s32 1, %v8590_v21 }
 0x312   :  { %4357 = vmatprep.subr.bf16.mxu1 %v7842_v24  ;;  %v674_v24 = vrot.slane %v8595_v23, %v8593_v22 }
 0x315   :  { %4358 = vmatpush1.bf16.msra.mxu1 %v7840_v27  ;;  %v678_v27 = vrot.slane %v8595_v23, %v8598_v56 }
 0x316   :  { %4359 = vmatprep.subr.bf16.mxu1 %v7845_v29  ;;  %v6913_v29 = vadd.f32 %v8537_v5, %v674_v24 }
 0x319   :  { %4360 = vmatpush1.bf16.msra.mxu1 %v7843_v30  ;;  %v681_v30 = vsub.s32 2, %v8590_v21 }
 0x31a   :  { %4372 = vmatprep.subr.bf16.mxu1 %v7848_v31  ;;  %v6914_v31 = vadd.f32 %v8539_v6, %v678_v27 }
 0x31c   :  { %4362 = vmatmul.mubr.bf16.vlgmr.msra.gmra.mrb[12].mxu1 %v8243_v38  ;;  %v685_v38 = vsub.s32 3, %v8590_v21 }
 0x31d   :  { %4373 = vmatpush1.bf16.msra.mxu1 %v7846_v33  ;;  %4404 = vmatprep.mubr.bf16.mxu1 %v8244_v41  ;;  %v6915_v33 = vadd.f32 %v8541_v8, %v674_v24  ;;  %v682_v41 = vrot.slane %v8595_v23, %v681_v30  ;;  %v8659_v24 = vld [vmem:[#allocation7 + $0x8] sm:$0xf] }
 0x31e   :  { %4374 = vmatprep.subr.bf16.mxu1 %v7851_v35  ;;  %v6916_v35 = vadd.f32 %v8543_v10, %v678_v27  ;;  %v686_v6 = vrot.slane %v8595_v23, %v685_v38 }
 0x31f   :  { %v8618_v8 = vadd.f32 %v8564_v25, %v682_v41  ;;  %v8621_v10 = vadd.f32 %v8568_v26, %v682_v41 }
 0x320   :  { %v4452_v5 = vmul.f32 0.70710677, %v6916_v35 }
 0x321   :  { %4375 = vmatpush1.bf16.msra.mxu1 %v7849_v40  ;;  %v4439_v40 = vmul.f32 0.70710677, %v6913_v29  ;;  %v4453_v25 = vmul.f32 0.70710677, %v8621_v10 }
 0x322   :  { %4376 = vmatprep.subr.bf16.mxu1 %v7854_v42  ;;  %v4440_v42 = vmul.f32 0.70710677, %v6914_v31 }
 0x323   :  { %8182 = verf.f32 %v4439_v40 }
 0x324   :  { %8184 = verf.f32 %v4440_v42 }
 0x325   :  { %4377 = vmatpush1.bf16.msra.mxu1 %v7852_v43  ;;  %v4451_v43 = vmul.f32 0.70710677, %v6915_v33 }
 0x326   :  { %4378 = vmatprep.subr.bf16.mxu1 %v7857_v44  ;;  %v689_v44 = vsub.s32 4, %v8590_v21 }
 0x327   :  { %8186 = verf.f32 %v4451_v43 }
 0x328   :  { %8188 = verf.f32 %v4452_v5 }
 0x329   :  { %4379 = vmatpush1.bf16.msra.mxu1 %v7855_v45  ;;  %v690_v45 = vrot.slane %v8595_v23, %v689_v44 }
 0x32a   :  { %4380 = vmatprep.subr.bf16.mxu1 %v7860_v46  ;;  %v8625_v46 = vadd.f32 %v8566_v58, %v686_v6 }
 0x32c   :  { %v4442_v26 = vmul.f32 0.70710677, %v8625_v46 }
 0x32d   :  { %4381 = vmatpush1.bf16.msra.mxu1 %v7858_v49  ;;  %v693_v49 = vsub.s32 5, %v8590_v21 }
 0x32e   :  { %4382 = vmatprep.subr.bf16.mxu1 %v7863_v50  ;;  %v4441_v50 = vmul.f32 0.70710677, %v8618_v8 }
 0x330   :  { %8190 = verf.f32 %v4441_v50  ;;  %v4429_v50 = vmul.f32 0.5, %v8621_v10  ;;  %v710_v10 = vrot.slane %v8659_v24, %v8598_v56 }
 0x331   :  { %4383 = vmatpush1.bf16.msra.mxu1 %v7861_v52  ;;  %v8630_v52 = vadd.f32 %v8570_v28, %v686_v6  ;;  %8192 = verf.f32 %v4453_v25 }
 0x332   :  { %4384 = vmatprep.subr.bf16.mxu1 %v7866_v53  ;;  %v8634_v53 = vadd.f32 %v8552_v14, %v690_v45  ;;  %8194 = verf.f32 %v4442_v26 }
 0x333   :  { %v4454_v58 = vmul.f32 0.70710677, %v8630_v52 }
 0x334   :  { %v4443_v28 = vmul.f32 0.70710677, %v8634_v53 }
 0x335   :  { %4385 = vmatpush1.bf16.msra.mxu1 %v7864_v55  ;;  %v694_v55 = vrot.slane %v8595_v23, %v693_v49  ;;  %8196 = verf.f32 %v4454_v58 }
 0x336   :  { %4386 = vmatprep.subr.bf16.mxu1 %v7869_v54  ;;  %v8640_v54 = vadd.f32 %v8556_v16, %v690_v45  ;;  %8198 = verf.f32 %v4443_v28  ;;  %v4417_v45 = vmul.f32 0.5, %v8618_v8 }
 0x337   :  { %v8645_v14 = vadd.f32 %v8554_v15, %v694_v55 }
 0x339   :  { %4387 = vmatpush1.bf16.msra.mxu1 %v7867_v57  ;;  %v8183_v57 = vpop.eup %8182 }
 0x33a   :  { %4388 = vmatprep.subr.bf16.mxu1 %v7872_v34  ;;  %v697_v34 = vsub.s32 6, %v8590_v21 }
 0x33d   :  { %4389 = vmatpush1.bf16.msra.mxu1 %v7870_v36  ;;  %v8185_v36 = vpop.eup %8184 }
 0x33e   :  { %4390 = vmatprep.subr.bf16.mxu1 %v7875_v59  ;;  %v8187_v59 = vpop.eup %8186 }
 0x33f   :  { %v8189_v16 = vpop.eup %8188 }
 0x340   :  { %v4500_v15 = vadd.f32 1.0, %v8189_v16  ;;  %v4430_v16 = vmul.f32 0.5, %v8630_v52  ;;  %v8714_v52 = vadd.f32 %v8576_v3, %v710_v10 }
 0x341   :  { %4391 = vmatpush1.bf16.msra.mxu1 %v7873_v32  ;;  %v4455_v32 = vmul.f32 0.70710677, %v8640_v54 }
 0x342   :  { %4392 = vmatprep.subr.bf16.mxu1 %v7878_v60  ;;  %v8649_v60 = vadd.f32 %v8558_v18, %v694_v55  ;;  %v4427_v18 = vmul.f32 0.5, %v6915_v33 }
 0x343   :  { %8200 = verf.f32 %v4455_v32  ;;  %v4431_v32 = vmul.f32 0.5, %v8640_v54 }
 0x345   :  { %4393 = vmatpush1.bf16.msra.mxu1 %v7876_v39  ;;  %v698_v39 = vrot.slane %v8595_v23, %v697_v34 }
 0x346   :  { %4394 = vmatprep.subr.bf16.mxu1 %v7881_v37  ;;  %v701_v37 = vsub.s32 7, %v8590_v21 }
 0x348   :  { %v702_v20 = vrot.slane %v8595_v23, %v701_v37  ;;  %v706_v23 = vrot.slane %v8659_v24, %v8593_v22 }
 0x349   :  { %4395 = vmatpush1.bf16.msra.mxu1 %v7879_v47  ;;  %v4487_v47 = vadd.f32 1.0, %v8183_v57 }
 0x34a   :  { %4396 = vmatprep.subr.bf16.mxu1 %v7884_v63  ;;  %v4488_v63 = vadd.f32 1.0, %v8185_v36  ;;  %v8691_v57 = vadd.f32 %v8574_v2, %v706_v23  ;;  %v4418_v36 = vmul.f32 0.5, %v8625_v46 }
 0x34c   :  { %v4447_v46 = vmul.f32 0.70710677, %v8691_v57 }
 0x34d   :  { %4397 = vmatpush1.bf16.msra.mxu1 %v7882_v61  ;;  %v4444_v61 = vmul.f32 0.70710677, %v8645_v14 }
 0x34e   :  { %4398 = vmatprep.subr.bf16.mxu1 %v7887_v48  ;;  %v4499_v48 = vadd.f32 1.0, %v8187_v59 }
 0x34f   :  { %8202 = verf.f32 %v4444_v61 }
 0x350   :  { %v8665_v42 = vmul.f32 %v4499_v48, %v4427_v18 }
 0x351   :  { %4399 = vmatpush1.bf16.msra.mxu1 %v7885_v62  ;;  %v4456_v62 = vmul.f32 0.70710677, %v8649_v60 }
 0x352   :  { %4400 = vmatprep.subr.bf16.mxu1 %v7890_v0  ;;  %v4415_v0 = vmul.f32 0.5, %v6913_v29 }
 0x353   :  { %8204 = verf.f32 %v4456_v62 }
 0x354   :  { %v8661_v40 = vmul.f32 %v4487_v47, %v4415_v0  ;;  %v8719_v0 = vadd.f32 %v8580_v9, %v710_v10 }
 0x355   :  { %4401 = vmatpush1.bf16.msra.mxu1 %v7888_v51  ;;  %v4416_v51 = vmul.f32 0.5, %v6914_v31 }
 0x356   :  { %4402 = vmatprep.subr.bf16.mxu1 %v7893_v1  ;;  %v8191_v1 = vpop.eup %8190 }
 0x357   :  { %v8193_v27 = vpop.eup %8192  ;;  %v8663_v41 = vmul.f32 %v4488_v63, %v4416_v51  ;;  %v4489_v33 = vadd.f32 1.0, %v8191_v1  ;;  %v4432_v1 = vmul.f32 0.5, %v8649_v60 }
 0x358   :  { %v4501_v43 = vadd.f32 1.0, %v8193_v27 }
 0x359   :  { %4403 = vmatpush1.bf16.msra.mxu1 %v7891_v7  ;;  %v4428_v7 = vmul.f32 0.5, %v6916_v35  ;;  %v4535_v6 = vadd.f32 %v8663_v41, %v8661_v40  ;;  %v8688_v55 = vmul.f32 %v4489_v33, %v4417_v45 }
 0x35a   :  { %v8693_v8 = vmul.f32 %v4501_v43, %v4429_v50  ;;  %v714_v43 = vrot.slane %v8659_v24, %v681_v30 }
 0x35b   :  { %v8667_v29 = vmul.f32 %v4500_v15, %v4428_v7  ;;  %v4536_v47 = vadd.f32 %v4535_v6, %v8688_v55  ;;  %v718_v6 = vrot.slane %v8659_v24, %v685_v38 }
 0x35c   :  { %4405 = vmatmul.mubr.bf16.vlgmr.msra.gmra.mrb[12].mxu1 %v8245_v11 }
 0x36f   :  { %v8582_v12 = vpop.f32.mrb[8].mxu1 }
 0x370   :  { %v8584_v13 = vpop.f32.mrb[9].mxu1  ;;  %v8656_v11 = vadd.f32 %v8582_v12, %v698_v39  ;;  %v8195_v12 = vpop.eup %8194 }
 0x371   :  { %v8586_v17 = vpop.f32.mrb[10].mxu1  ;;  %v8197_v35 = vpop.eup %8196  ;;  %v8676_v5 = vadd.f32 %v8584_v13, %v702_v20  ;;  %v4490_v13 = vadd.f32 1.0, %v8195_v12  ;;  %v4460_v12 = vmul.f32 0.70710677, %v8719_v0 }
 0x372   :  { %v8588_v19 = vpop.f32.mrb[11].mxu1  ;;  %v8670_v31 = vadd.f32 %v8586_v17, %v698_v39  ;;  %v4445_v44 = vmul.f32 0.70710677, %v8656_v11  ;;  %v8199_v49 = vpop.eup %8198  ;;  %v4548_v17 = vadd.f32 %v8667_v29, %v8665_v42  ;;  %v4502_v58 = vadd.f32 1.0, %v8197_v35 }
 0x373   :  { %v8686_v26 = vadd.f32 %v8588_v19, %v702_v20  ;;  %v8201_v28 = vpop.eup %8200  ;;  %v4446_v34 = vmul.f32 0.70710677, %v8676_v5  ;;  %v4419_v19 = vmul.f32 0.5, %v8634_v53  ;;  %v4491_v59 = vadd.f32 1.0, %v8199_v49 }
 0x374   :  { %v4457_v25 = vmul.f32 0.70710677, %v8670_v31  ;;  %8206 = verf.f32 %v4445_v44  ;;  %v8704_v39 = vadd.f32 %v8578_v4, %v706_v23  ;;  %v8203_v37 = vpop.eup %8202  ;;  %v8707_v63 = vmul.f32 %v4490_v13, %v4418_v36 }
 0x375   :  { %v4458_v2 = vmul.f32 0.70710677, %v8686_v26  ;;  %v4503_v61 = vadd.f32 1.0, %v8201_v28  ;;  %v8205_v53 = vpop.eup %8204  ;;  %v4549_v48 = vadd.f32 %v4548_v17, %v8693_v8  ;;  %v8711_v54 = vmul.f32 %v4502_v58, %v4430_v16 }
 0x376   :  { %8208 = verf.f32 %v4457_v25  ;;  %v4420_v4 = vmul.f32 0.5, %v8645_v14  ;;  %v4492_v15 = vadd.f32 1.0, %v8203_v37  ;;  %v4459_v62 = vmul.f32 0.70710677, %v8704_v39 }
 0x377   :  { %8210 = verf.f32 %v4446_v34  ;;  %v8721_v51 = vmul.f32 %v4491_v59, %v4419_v19  ;;  %v4504_v18 = vadd.f32 1.0, %v8205_v53  ;;  %v4537_v7 = vadd.f32 %v4536_v47, %v8707_v63 }
 0x378   :  { %8212 = verf.f32 %v4458_v2  ;;  %v4550_v3 = vadd.f32 %v4549_v48, %v8711_v54  ;;  %v8726_v20 = vmul.f32 %v4503_v61, %v4431_v32  ;;  %v4448_v14 = vmul.f32 0.70710677, %v8714_v52 }
 0x379   :  { %8214 = verf.f32 %v4447_v46  ;;  %v8730_v9 = vmul.f32 %v4492_v15, %v4420_v4  ;;  %v8732_v33 = vmul.f32 %v4504_v18, %v4432_v1  ;;  %v4538_v60 = vadd.f32 %v4537_v7, %v8721_v51 }
 0x37a   :  { %8216 = verf.f32 %v4459_v62  ;;  %v4551_v35 = vadd.f32 %v4550_v3, %v8726_v20  ;;  %v4421_v49 = vmul.f32 0.5, %v8656_v11  ;;  %v4433_v21 = vmul.f32 0.5, %v8670_v31 }
 0x37b   :  { %8218 = verf.f32 %v4448_v14  ;;  %v4539_v13 = vadd.f32 %v4538_v60, %v8730_v9  ;;  %v4422_v19 = vmul.f32 0.5, %v8676_v5  ;;  %v4423_v11 = vmul.f32 0.5, %v8691_v57 }
 0x37c   :  { %8220 = verf.f32 %v4460_v12  ;;  %v4552_v58 = vadd.f32 %v4551_v35, %v8732_v33  ;;  %v4434_v53 = vmul.f32 0.5, %v8686_v26  ;;  %v4435_v62 = vmul.f32 0.5, %v8704_v39 }
 0x37d   :  { %v4436_v39 = vmul.f32 0.5, %v8719_v0 }
 0x37e   :  { %v8207_v27 = vpop.eup %8206 }
 0x37f   :  { %v4493_v44 = vadd.f32 1.0, %v8207_v27  ;;  %v4424_v27 = vmul.f32 0.5, %v8714_v52 }
 0x380   :  { %v8209_v23 = vpop.eup %8208 }
 0x381   :  { %v8211_v45 = vpop.eup %8210  ;;  %v4505_v17 = vadd.f32 1.0, %v8209_v23  ;;  %v8745_v30 = vmul.f32 %v4493_v44, %v4421_v49 }
 0x382   :  { %v8213_v25 = vpop.eup %8212  ;;  %v4494_v36 = vadd.f32 1.0, %v8211_v45 }
 0x383   :  { %v8215_v10 = vpop.eup %8214  ;;  %v8750_v2 = vmul.f32 %v4505_v17, %v4433_v21  ;;  %v4506_v37 = vadd.f32 1.0, %v8213_v25  ;;  %v4540_v4 = vadd.f32 %v4539_v13, %v8745_v30 }
 0x384   :  { %v8217_v46 = vpop.eup %8216  ;;  %v4495_v48 = vadd.f32 1.0, %v8215_v10  ;;  %v8754_v15 = vmul.f32 %v4494_v36, %v4422_v19 }
 0x385   :  { %v8219_v57 = vpop.eup %8218  ;;  %v4553_v1 = vadd.f32 %v4552_v58, %v8750_v2  ;;  %v8758_v18 = vmul.f32 %v4506_v37, %v4434_v53  ;;  %v4507_v7 = vadd.f32 1.0, %v8217_v46  ;;  %v7894_v46 = vld [vmem:[#allocation8] ss:$8 sps:$4 sm:$0xff]   ;;  %v7896_v53 = vld [vmem:[#allocation8 + $0x4] ss:$8 sps:$4 sm:$0xff]  }
 0x386   :  { %v8221_v26 = vpop.eup %8220  ;;  %v4541_v3 = vadd.f32 %v4540_v4, %v8754_v15  ;;  %v8761_v14 = vmul.f32 %v4495_v48, %v4423_v11  ;;  %v4496_v12 = vadd.f32 1.0, %v8219_v57  ;;  %v7899_v48 = vld [vmem:[#allocation8 + $0x14] ss:$8 sps:$4 sm:$0xff]   ;;  %5844 = vmatprep.subr.bf16.mxu0 %v7896_v53  ;;  %v7900_v4 = vld [vmem:[#allocation8 + $0x20] ss:$8 sps:$4 sm:$0xff]  }
 0x387   :  { %v4554_v23 = vadd.f32 %v4553_v1, %v8758_v18  ;;  %v8765_v60 = vmul.f32 %v4507_v7, %v4435_v62  ;;  %v4508_v35 = vadd.f32 1.0, %v8221_v26  ;;  %5845 = vmatpush1.bf16.msra.mxu0 %v7894_v46  ;;  %v7903_v57 = vld [vmem:[#allocation8 + $0x30] ss:$8 sps:$4 sm:$0xff]   ;;  %v7908_v62 = vld [vmem:[#allocation8 + $0x44] ss:$8 sps:$4 sm:$0xff]  }
 0x388   :  { %v4542_v44 = vadd.f32 %v4541_v3, %v8761_v14  ;;  %5846 = vmatprep.subr.bf16.mxu0 %v7899_v48  ;;  %v7906_v1 = vld [vmem:[#allocation8 + $0x40] ss:$8 sps:$4 sm:$0xff]   ;;  %v7911_v7 = vld [vmem:[#allocation8 + $0x54] ss:$8 sps:$4 sm:$0xff]   ;;  %v7909_v26 = vld [vmem:[#allocation8 + $0x50] ss:$8 sps:$4 sm:$0xff]  }
 0x389   :  { %v4555_v49 = vadd.f32 %v4554_v23, %v8765_v60  ;;  %v8772_v17 = vmul.f32 %v4508_v35, %v4436_v39  ;;  %v7914_v3 = vld [vmem:[#allocation8 + $0x64] ss:$8 sps:$4 sm:$0xff]   ;;  %v7915_v23 = vld [vmem:[#allocation8 + $0x70] ss:$8 sps:$4 sm:$0xff]   ;;  %v7918_v35 = vld [vmem:[#allocation8 + $0x80] ss:$8 sps:$4 sm:$0xff]  }
 0x38a   :  { %v7920_v39 = vld [vmem:[#allocation8 + $0x84] ss:$8 sps:$4 sm:$0xff]  }
 0x42f   :  { %v4406_v50 = vpop.f32.mrb[12].mxu1 }
 0x430   :  { %v6933_v28 = vadd.f32 %v4406_v50, %v714_v43  ;;  %v4408_v34 = vpop.f32.mrb[13].mxu1 }
 0x431   :  { %v6934_v38 = vadd.f32 %v4408_v34, %v718_v6  ;;  %v4410_v24 = vpop.f32.mrb[14].mxu1 }
 0x432   :  { %v4449_v59 = vmul.f32 0.70710677, %v6933_v28  ;;  %v6935_v32 = vadd.f32 %v4410_v24, %v714_v43  ;;  %v4412_v16 = vpop.f32.mrb[15].mxu1  ;;  %v8768_v43 = vmul.f32 %v4496_v12, %v4424_v27  ;;  %v4425_v50 = vmul.f32 0.5, %v6933_v28  ;;  %v7912_v27 = vld [vmem:[#allocation8 + $0x60] ss:$8 sps:$4 sm:$0xff]  }
 0x433   :  { %v4450_v47 = vmul.f32 0.70710677, %v6934_v38  ;;  %v6936_v61 = vadd.f32 %v4412_v16, %v718_v6  ;;  %v4426_v13 = vmul.f32 0.5, %v6934_v38  ;;  %v4556_v28 = vadd.f32 %v4555_v49, %v8772_v17  ;;  %v7917_v12 = vld [vmem:[#allocation8 + $0x74] ss:$8 sps:$4 sm:$0xff]  }
 0x434   :  { %8222 = verf.f32 %v4449_v59  ;;  %v4461_v31 = vmul.f32 0.70710677, %v6935_v32  ;;  %v4437_v10 = vmul.f32 0.5, %v6935_v32  ;;  %v4543_v21 = vadd.f32 %v4542_v44, %v8768_v43  ;;  %v7923_v44 = vld [vmem:[#allocation8 + $0x94] ss:$8 sps:$4 sm:$0xff]  }
 0x435   :  { %8224 = verf.f32 %v4450_v47  ;;  %v4462_v5 = vmul.f32 0.70710677, %v6936_v61  ;;  %v4438_v59 = vmul.f32 0.5, %v6936_v61  ;;  %v7897_v61 = vld [vmem:[#allocation8 + $0x10] ss:$8 sps:$4 sm:$0xff]  }
 0x436   :  { %8226 = verf.f32 %v4461_v31  ;;  %v7902_v31 = vld [vmem:[#allocation8 + $0x24] ss:$8 sps:$4 sm:$0xff]   ;;  %5847 = vmatpush1.bf16.msra.mxu0 %v7897_v61  ;;  %v7924_v49 = vld [vmem:[#allocation8 + $0xa0] ss:$8 sps:$4 sm:$0xff]  }
 0x437   :  { %8228 = verf.f32 %v4462_v5  ;;  %5848 = vmatprep.subr.bf16.mxu0 %v7902_v31  ;;  %v7905_v5 = vld [vmem:[#allocation8 + $0x34] ss:$8 sps:$4 sm:$0xff]  }
 0x43a   :  { %5849 = vmatpush1.bf16.msra.mxu0 %v7900_v4 }
 0x43b   :  { %5850 = vmatprep.subr.bf16.mxu0 %v7905_v5 }
 0x43e   :  { %v8223_v6 = vpop.eup %8222  ;;  %5851 = vmatpush1.bf16.msra.mxu0 %v7903_v57 }
 0x43f   :  { %v8225_v45 = vpop.eup %8224  ;;  %v4497_v52 = vadd.f32 1.0, %v8223_v6  ;;  %5852 = vmatprep.subr.bf16.mxu0 %v7908_v62  ;;  %v7921_v6 = vld [vmem:[#allocation8 + $0x90] ss:$8 sps:$4 sm:$0xff]  }
 0x440   :  { %v8227_v25 = vpop.eup %8226  ;;  %v4498_v58 = vadd.f32 1.0, %v8225_v45  ;;  %v7926_v45 = vld [vmem:[#allocation8 + $0xa4] ss:$8 sps:$4 sm:$0xff]  }
 0x441   :  { %v8229_v34 = vpop.eup %8228  ;;  %v4509_v36 = vadd.f32 1.0, %v8227_v25  ;;  %v8774_v0 = vmul.f32 %v4497_v52, %v4425_v50 }
 0x442   :  { %v8777_v24 = vmul.f32 %v4498_v58, %v4426_v13  ;;  %v4510_v19 = vadd.f32 1.0, %v8229_v34  ;;  %5853 = vmatpush1.bf16.msra.mxu0 %v7906_v1 }
 0x443   :  { %v8779_v11 = vmul.f32 %v4509_v36, %v4437_v10  ;;  %v4544_v16 = vadd.f32 %v4543_v21, %v8774_v0  ;;  %5854 = vmatprep.subr.bf16.mxu0 %v7911_v7 }
 0x444   :  { %v8784_v37 = vmul.f32 %v4510_v19, %v4438_v59 }
 0x445   :  { %v4545_v38 = vadd.f32 %v4544_v16, %v8777_v24  ;;  %v4557_v32 = vadd.f32 %v4556_v28, %v8779_v11 }
 0x446   :  { %5855 = vmatpush1.bf16.msra.mxu0 %v7909_v26 }
 0x447   :  { %4546 = vadd.xlane.f32.xlu0 %v4545_v38  ;;  %v4558_v47 = vadd.f32 %v4557_v32, %v8784_v37  ;;  %5856 = vmatprep.subr.bf16.mxu0 %v7914_v3 }
 0x44a   :  { %5857 = vmatpush1.bf16.msra.mxu0 %v7912_v27 }
 0x44b   :  { %4559 = vadd.xlane.f32.xlu0 %v4558_v47  ;;  %5858 = vmatprep.subr.bf16.mxu0 %v7917_v12 }
 0x44e   :  { %5859 = vmatpush1.bf16.msra.mxu0 %v7915_v23 }
 0x44f   :  { %5860 = vmatprep.subr.bf16.mxu0 %v7920_v39 }
 0x452   :  { %5861 = vmatpush1.bf16.msra.mxu0 %v7918_v35 }
 0x453   :  { %5862 = vmatprep.subr.bf16.mxu0 %v7923_v44 }
 0x456   :  { %5863 = vmatpush1.bf16.msra.mxu0 %v7921_v6 }
 0x457   :  { %5864 = vmatprep.subr.bf16.mxu0 %v7926_v45 }
 0x45a   :  { %5865 = vmatpush1.bf16.msra.mxu0 %v7924_v49 }
 0x4d4   :  { %v4547_v50 = vpop.xlane.xlu0 %4546 }
 0x4d5   :  { %v4562_v52 = vmul.f32 0.0006510417, %v4547_v50 }
 0x4d7   :  { %v8789_v25 = vsub.f32 %v8661_v40, %v4562_v52  ;;  %v8792_v13 = vsub.f32 %v8663_v41, %v4562_v52  ;;  %v8795_v10 = vsub.f32 %v8688_v55, %v4562_v52  ;;  %v8802_v19 = vsub.f32 %v8707_v63, %v4562_v52 }
 0x4d8   :  { %v4560_v58 = vpop.xlane.xlu0 %4559  ;;  %v8805_v40 = vsub.f32 %v8721_v51, %v4562_v52  ;;  %v8816_v28 = vsub.f32 %v8730_v9, %v4562_v52  ;;  %v8826_v47 = vsub.f32 %v8745_v30, %v4562_v52  ;;  %v8836_v53 = vsub.f32 %v8754_v15, %v4562_v52 }
 0x4d9   :  { %v4563_v34 = vmul.f32 0.0006510417, %v4560_v58  ;;  %v4588_v36 = vmul.f32 %v8789_v25, %v8789_v25  ;;  %v4589_v21 = vmul.f32 %v8792_v13, %v8792_v13  ;;  %v4590_v41 = vmul.f32 %v8795_v10, %v8795_v10 }
 0x4da   :  { %v4591_v63 = vmul.f32 %v8802_v19, %v8802_v19  ;;  %v8846_v4 = vsub.f32 %v8761_v14, %v4562_v52  ;;  %v4595_v1 = vmul.f32 %v8836_v53, %v8836_v53 }
 0x4db   :  { %v4612_v59 = vadd.f32 %v4589_v21, %v4588_v36  ;;  %v8810_v16 = vsub.f32 %v8665_v42, %v4563_v34  ;;  %v8813_v55 = vsub.f32 %v8667_v29, %v4563_v34  ;;  %v8821_v51 = vsub.f32 %v8693_v8, %v4563_v34 }
 0x4dc   :  { %v4592_v42 = vmul.f32 %v8805_v40, %v8805_v40  ;;  %v8833_v46 = vsub.f32 %v8711_v54, %v4563_v34  ;;  %v4593_v8 = vmul.f32 %v8816_v28, %v8816_v28  ;;  %v8841_v30 = vsub.f32 %v8726_v20, %v4563_v34 }
 0x4dd   :  { %v4613_v38 = vadd.f32 %v4612_v59, %v4590_v41  ;;  %v4600_v32 = vmul.f32 %v8810_v16, %v8810_v16  ;;  %v4601_v9 = vmul.f32 %v8813_v55, %v8813_v55  ;;  %v4602_v61 = vmul.f32 %v8821_v51, %v8821_v51 }
 0x4de   :  { %v4594_v54 = vmul.f32 %v8826_v47, %v8826_v47  ;;  %v8851_v15 = vsub.f32 %v8732_v33, %v4563_v34  ;;  %v4603_v57 = vmul.f32 %v8833_v46, %v8833_v46  ;;  %v8856_v20 = vsub.f32 %v8768_v43, %v4562_v52 }
 0x4df   :  { %v4614_v29 = vadd.f32 %v4613_v38, %v4591_v63  ;;  %v4625_v31 = vadd.f32 %v4601_v9, %v4600_v32  ;;  %v8861_v14 = vsub.f32 %v8750_v2, %v4563_v34  ;;  %v4604_v26 = vmul.f32 %v8841_v30, %v8841_v30 }
 0x4e0   :  { %v8866_v33 = vsub.f32 %v8774_v0, %v4562_v52  ;;  %v4596_v27 = vmul.f32 %v8846_v4, %v8846_v4  ;;  %v8871_v43 = vsub.f32 %v8758_v18, %v4563_v34  ;;  %v4605_v23 = vmul.f32 %v8851_v15, %v8851_v15 }
 0x4e1   :  { %v4615_v48 = vadd.f32 %v4614_v29, %v4592_v42  ;;  %v4626_v62 = vadd.f32 %v4625_v31, %v4602_v61  ;;  %v8876_v2 = vsub.f32 %v8777_v24, %v4562_v52  ;;  %v4597_v35 = vmul.f32 %v8856_v20, %v8856_v20  ;;  %v7935_v61 = vld [vmem:[#allocation8 + $0xd4] ss:$8 sps:$4 sm:$0xff]   ;;  %v7933_v31 = vld [vmem:[#allocation8 + $0xd0] ss:$8 sps:$4 sm:$0xff]  }
 0x4e2   :  { %v8881_v0 = vsub.f32 %v8765_v60, %v4563_v34  ;;  %v4606_v6 = vmul.f32 %v8861_v14, %v8861_v14  ;;  %v4598_v18 = vmul.f32 %v8866_v33, %v8866_v33  ;;  %v8888_v50 = vsub.f32 %v8772_v17, %v4563_v34 }
 0x4e3   :  { %v4616_v5 = vadd.f32 %v4615_v48, %v4593_v8  ;;  %v4627_v3 = vadd.f32 %v4626_v62, %v4603_v57  ;;  %v4607_v24 = vmul.f32 %v8871_v43, %v8871_v43  ;;  %v4599_v58 = vmul.f32 %v8876_v2, %v8876_v2  ;;  %v7927_v8 = vld [vmem:[#allocation8 + $0xb0] ss:$8 sps:$4 sm:$0xff]   ;;  %v7929_v48 = vld [vmem:[#allocation8 + $0xb4] ss:$8 sps:$4 sm:$0xff]  }
 0x4e4   :  { %v8895_v36 = vsub.f32 %v8779_v11, %v4563_v34  ;;  %v4608_v21 = vmul.f32 %v8881_v0, %v8881_v0  ;;  %v8900_v63 = vsub.f32 %v8784_v37, %v4563_v34  ;;  %v4609_v17 = vmul.f32 %v8888_v50, %v8888_v50  ;;  %5866 = vmatprep.subr.bf16.mxu0 %v7929_v48  ;;  %v7932_v37 = vld [vmem:[#allocation8 + $0xc4] ss:$8 sps:$4 sm:$0xff]   ;;  %v7930_v34 = vld [vmem:[#allocation8 + $0xc0] ss:$8 sps:$4 sm:$0xff]   ;;  %v7941_v57 = vld [vmem:[#allocation8 + $0xf4] ss:$8 sps:$4 sm:$0xff]  }
 0x4e5   :  { %v4617_v7 = vadd.f32 %v4616_v5, %v4594_v54  ;;  %v4628_v39 = vadd.f32 %v4627_v3, %v4604_v26  ;;  %5867 = vmatpush1.bf16.msra.mxu0 %v7927_v8  ;;  %v7938_v54 = vld [vmem:[#allocation8 + $0xe4] ss:$8 sps:$4 sm:$0xff]   ;;  %v7936_v5 = vld [vmem:[#allocation8 + $0xe0] ss:$8 sps:$4 sm:$0xff]   ;;  %v7939_v62 = vld [vmem:[#allocation8 + $0xf0] ss:$8 sps:$4 sm:$0xff]  }
 0x4e6   :  { %v4610_v32 = vmul.f32 %v8895_v36, %v8895_v36  ;;  %v4611_v11 = vmul.f32 %v8900_v63, %v8900_v63  ;;  %5868 = vmatprep.subr.bf16.mxu0 %v7932_v37  ;;  %v7956_v8 = vld [vmem:[#allocation8 + $0x144] ss:$8 sps:$4 sm:$0xff]   ;;  %v7954_v48 = vld [vmem:[#allocation8 + $0x140] ss:$8 sps:$4 sm:$0xff]   ;;  %v7959_v37 = vld [vmem:[#allocation8 + $0x154] ss:$8 sps:$4 sm:$0xff]  }
 0x4e7   :  { %v4618_v12 = vadd.f32 %v4617_v7, %v4595_v1  ;;  %v4629_v45 = vadd.f32 %v4628_v39, %v4605_v23  ;;  %v7944_v1 = vld [vmem:[#allocation8 + $0x104] ss:$8 sps:$4 sm:$0xff]  }
 0x4e9   :  { %v4619_v44 = vadd.f32 %v4618_v12, %v4596_v27  ;;  %v4630_v52 = vadd.f32 %v4629_v45, %v4606_v6  ;;  %5869 = vmatpush1.bf16.msra.mxu0 %v7930_v34  ;;  %v7957_v34 = vld [vmem:[#allocation8 + $0x150] ss:$8 sps:$4 sm:$0xff]  }
 0x4ea   :  { %5870 = vmatprep.subr.bf16.mxu0 %v7935_v61  ;;  %v7962_v61 = vld [vmem:[#allocation8 + $0x164] ss:$8 sps:$4 sm:$0xff]  }
 0x4eb   :  { %v4620_v49 = vadd.f32 %v4619_v44, %v4597_v35  ;;  %v4631_v41 = vadd.f32 %v4630_v52, %v4607_v24 }
 0x4ed   :  { %v4621_v60 = vadd.f32 %v4620_v49, %v4598_v18  ;;  %v4632_v38 = vadd.f32 %v4631_v41, %v4608_v21  ;;  %5871 = vmatpush1.bf16.msra.mxu0 %v7933_v31  ;;  %v7960_v31 = vld [vmem:[#allocation8 + $0x160] ss:$8 sps:$4 sm:$0xff]  }
 0x4ee   :  { %5872 = vmatprep.subr.bf16.mxu0 %v7938_v54  ;;  %v7965_v54 = vld [vmem:[#allocation8 + $0x174] ss:$8 sps:$4 sm:$0xff]  }
 0x4ef   :  { %v4622_v59 = vadd.f32 %v4621_v60, %v4599_v58  ;;  %v4633_v42 = vadd.f32 %v4632_v38, %v4609_v17  ;;  %v7942_v60 = vld [vmem:[#allocation8 + $0x100] ss:$8 sps:$4 sm:$0xff]  }
 0x4f1   :  { %4623 = vadd.xlane.f32.xlu1 %v4622_v59  ;;  %v4634_v29 = vadd.f32 %v4633_v42, %v4610_v32  ;;  %5873 = vmatpush1.bf16.msra.mxu0 %v7936_v5  ;;  %v7945_v42 = vld [vmem:[#allocation8 + $0x110] ss:$8 sps:$4 sm:$0xff]  }
 0x4f2   :  { %5874 = vmatprep.subr.bf16.mxu0 %v7941_v57  ;;  %v7963_v5 = vld [vmem:[#allocation8 + $0x170] ss:$8 sps:$4 sm:$0xff]   ;;  %v7968_v57 = vld [vmem:[#allocation8 + $0x184] ss:$8 sps:$4 sm:$0xff]  }
 0x4f3   :  { %v4635_v9 = vadd.f32 %v4634_v29, %v4611_v11  ;;  %v7950_v11 = vld [vmem:[#allocation8 + $0x124] ss:$8 sps:$4 sm:$0xff]   ;;  %v7953_v29 = vld [vmem:[#allocation8 + $0x134] ss:$8 sps:$4 sm:$0xff]  }
 0x4f5   :  { %4636 = vadd.xlane.f32.xlu1 %v4635_v9  ;;  %5875 = vmatpush1.bf16.msra.mxu0 %v7939_v62  ;;  %v7951_v9 = vld [vmem:[#allocation8 + $0x130] ss:$8 sps:$4 sm:$0xff]   ;;  %v7966_v62 = vld [vmem:[#allocation8 + $0x180] ss:$8 sps:$4 sm:$0xff]  }
 0x4f6   :  { %5887 = vmatprep.subr.bf16.mxu0 %v7944_v1  ;;  %v7971_v1 = vld [vmem:[#allocation8 + $0x194] ss:$8 sps:$4 sm:$0xff]  }
 0x57e   :  { %v4624_v7 = vpop.xlane.xlu1 %4623 }
 0x57f   :  { %v4638_v26 = vmul.f32 0.0006510417, %v4624_v7  ;;  %v7969_v7 = vld [vmem:[#allocation8 + $0x190] ss:$8 sps:$4 sm:$0xff]  }
 0x581   :  { %v4640_v3 = vadd.f32 1e-12, %v4638_v26  ;;  %v7974_v26 = vld [vmem:[#allocation8 + $0x1a4] ss:$8 sps:$4 sm:$0xff]  }
 0x582   :  { %v4637_v27 = vpop.xlane.xlu1 %4636 }
 0x583   :  { %8230 = vrsqrt.f32 %v4640_v3  ;;  %v4639_v12 = vmul.f32 0.0006510417, %v4637_v27  ;;  %v7972_v3 = vld [vmem:[#allocation8 + $0x1a0] ss:$8 sps:$4 sm:$0xff]   ;;  %v7977_v27 = vld [vmem:[#allocation8 + $0x1b4] ss:$8 sps:$4 sm:$0xff]  }
 0x585   :  { %v4641_v23 = vadd.f32 1e-12, %v4639_v12  ;;  %v7975_v12 = vld [vmem:[#allocation8 + $0x1b0] ss:$8 sps:$4 sm:$0xff]  }
 0x587   :  { %8232 = vrsqrt.f32 %v4641_v23  ;;  %v7980_v23 = vld [vmem:[#allocation8 + $0x1c4] ss:$8 sps:$4 sm:$0xff]  }
 0x58d   :  { %v8231_v39 = vpop.eup %8230 }
 0x58e   :  { %v4645_v35 = vmul.f32 %v8231_v39, %v8792_v13  ;;  %v4644_v44 = vmul.f32 %v8231_v39, %v8789_v25  ;;  %v4647_v6 = vmul.f32 %v8231_v39, %v8802_v19  ;;  %v8912_v45 = vmul.f32 %v8231_v39, %v8795_v10 }
 0x58f   :  { %v8915_v18 = vmul.f32 %v8231_v39, %v8816_v28  ;;  %v8918_v49 = vmul.f32 %v8231_v39, %v8805_v40  ;;  %v8921_v24 = vmul.f32 %v8231_v39, %v8836_v53  ;;  %v8924_v58 = vmul.f32 %v8231_v39, %v8826_v47 }
 0x590   :  { %v8927_v25 = vmul.f32 %v8231_v39, %v8856_v20  ;;  %v8930_v13 = vmul.f32 %v8231_v39, %v8846_v4  ;;  %v8933_v10 = vmul.f32 %v8231_v39, %v8876_v2  ;;  %v8976_v32 = vmul.f32 %v8231_v39, %v8866_v33  ;;  %v7948_v33 = vld [vmem:[#allocation8 + $0x120] ss:$8 sps:$4 sm:$0xff]  }
 0x591   :  { %v8233_v52 = vpop.eup %8232  ;;  %v7978_v39 = vld [vmem:[#allocation8 + $0x1c0] ss:$8 sps:$4 sm:$0xff]  }
 0x592   :  { %v4657_v19 = vmul.f32 %v8233_v52, %v8813_v55  ;;  %v4656_v40 = vmul.f32 %v8233_v52, %v8810_v16  ;;  %v4659_v28 = vmul.f32 %v8233_v52, %v8833_v46  ;;  %v8939_v53 = vmul.f32 %v8233_v52, %v8821_v51  ;;  %v7947_v46 = vld [vmem:[#allocation8 + $0x114] ss:$8 sps:$4 sm:$0xff]  }
 0x593   :  { %v8942_v47 = vmul.f32 %v8233_v52, %v8851_v15  ;;  %v8945_v20 = vmul.f32 %v8233_v52, %v8841_v30  ;;  %v8948_v4 = vmul.f32 %v8233_v52, %v8871_v43  ;;  %v8951_v2 = vmul.f32 %v8233_v52, %v8861_v14 }
 0x594   :  { %v4669_v55 = vpack.c.bf16 %v4657_v19, %v4645_v35  ;;  %v4668_v16 = vpack.c.bf16 %v4656_v40, %v4644_v44  ;;  %v4671_v21 = vpack.c.bf16 %v4659_v28, %v4647_v6  ;;  %v4670_v51 = vpack.c.bf16 %v8939_v53, %v8912_v45  ;;  %v7983_v35 = vld [vmem:[#allocation8 + $0x1d4] ss:$8 sps:$4 sm:$0xff]   ;;  %v7981_v44 = vld [vmem:[#allocation8 + $0x1d0] ss:$8 sps:$4 sm:$0xff]   ;;  %v7986_v6 = vld [vmem:[#allocation8 + $0x1e4] ss:$8 sps:$4 sm:$0xff]  }
 0x595   :  { %v4673_v15 = vpack.c.bf16 %v8942_v47, %v8915_v18  ;;  %v4672_v30 = vpack.c.bf16 %v8945_v20, %v8918_v49  ;;  %v4675_v43 = vpack.c.bf16 %v8948_v4, %v8921_v24  ;;  %v4674_v14 = vpack.c.bf16 %v8951_v2, %v8924_v58  ;;  %v7989_v19 = vld [vmem:[#allocation8 + $0x1f4] ss:$8 sps:$4 sm:$0xff]   ;;  %v7987_v40 = vld [vmem:[#allocation8 + $0x1f0] ss:$8 sps:$4 sm:$0xff]   ;;  %v7992_v28 = vld [vmem:[#allocation8 + $0x204] ss:$8 sps:$4 sm:$0xff]  }
 0x596   :  { %5876 = vmatprep.mubr.bf16.mxu0 %v4669_v55  ;;  %v8964_v41 = vmul.f32 %v8233_v52, %v8888_v50  ;;  %v8967_v59 = vmul.f32 %v8233_v52, %v8881_v0  ;;  %v8970_v17 = vmul.f32 %v8233_v52, %v8900_v63  ;;  %v8973_v38 = vmul.f32 %v8233_v52, %v8895_v36  ;;  %v7984_v52 = vld [vmem:[#allocation8 + $0x1e0] ss:$8 sps:$4 sm:$0xff]   ;;  %v8007_v45 = vld [vmem:[#allocation8 + $0x254] ss:$8 sps:$4 sm:$0xff]   ;;  %v8005_v53 = vld [vmem:[#allocation8 + $0x250] ss:$8 sps:$4 sm:$0xff]  }
 0x597   :  { %5877 = vmatmul.mubr.bf16.vlgmr.msra.gmra.mrb[8].mxu0 %v4668_v16  ;;  %v7990_v55 = vld [vmem:[#allocation8 + $0x200] ss:$8 sps:$4 sm:$0xff]   ;;  %v7993_v16 = vld [vmem:[#allocation8 + $0x210] ss:$8 sps:$4 sm:$0xff]   ;;  %v8010_v18 = vld [vmem:[#allocation8 + $0x264] ss:$8 sps:$4 sm:$0xff]  }
 0x598   :  { %5888 = vmatpush1.bf16.msra.mxu0 %v7942_v60  ;;  %5919 = vmatprep.mubr.bf16.mxu0 %v4671_v21  ;;  %v4677_v50 = vpack.c.bf16 %v8964_v41, %v8927_v25  ;;  %v4676_v0 = vpack.c.bf16 %v8967_v59, %v8930_v13  ;;  %v4679_v63 = vpack.c.bf16 %v8970_v17, %v8933_v10  ;;  %v7995_v60 = vld [vmem:[#allocation8 + $0x214] ss:$8 sps:$4 sm:$0xff]   ;;  %v7998_v21 = vld [vmem:[#allocation8 + $0x224] ss:$8 sps:$4 sm:$0xff]   ;;  %v8008_v47 = vld [vmem:[#allocation8 + $0x260] ss:$8 sps:$4 sm:$0xff]  }
 0x599   :  { %5889 = vmatprep.subr.bf16.mxu0 %v7947_v46  ;;  %v4678_v36 = vpack.c.bf16 %v8973_v38, %v8976_v32  ;;  %v7996_v46 = vld [vmem:[#allocation8 + $0x220] ss:$8 sps:$4 sm:$0xff]   ;;  %v8055_v49 = vld [vmem:[#allocation8 + $0x354] ss:$8 sps:$4 sm:$0xff]   ;;  %v8053_v20 = vld [vmem:[#allocation8 + $0x350] ss:$8 sps:$4 sm:$0xff]  }
 0x59a   :  { %v8058_v24 = vld [vmem:[#allocation8 + $0x364] ss:$8 sps:$4 sm:$0xff]   ;;  %v8056_v4 = vld [vmem:[#allocation8 + $0x360] ss:$8 sps:$4 sm:$0xff]   ;;  %v8103_v58 = vld [vmem:[#allocation8 + $0x454] ss:$8 sps:$4 sm:$0xff]  }
 0x59b   :  { %v8101_v2 = vld [vmem:[#allocation8 + $0x450] ss:$8 sps:$4 sm:$0xff]   ;;  %v8106_v25 = vld [vmem:[#allocation8 + $0x464] ss:$8 sps:$4 sm:$0xff]   ;;  %v8109_v41 = vld [vmem:[#allocation8 + $0x474] ss:$8 sps:$4 sm:$0xff]  }
 0x59c   :  { %5890 = vmatpush1.bf16.msra.mxu0 %v7945_v42  ;;  %v8001_v42 = vld [vmem:[#allocation8 + $0x234] ss:$8 sps:$4 sm:$0xff]   ;;  %v8149_v59 = vld [vmem:[#allocation8 + $0x550] ss:$8 sps:$4 sm:$0xff]   ;;  %v8154_v10 = vld [vmem:[#allocation8 + $0x564] ss:$8 sps:$4 sm:$0xff]  }
 0x59d   :  { %5891 = vmatprep.subr.bf16.mxu0 %v7950_v11  ;;  %v7999_v11 = vld [vmem:[#allocation8 + $0x230] ss:$8 sps:$4 sm:$0xff]   ;;  %v8151_v13 = vld [vmem:[#allocation8 + $0x554] ss:$8 sps:$4 sm:$0xff]   ;;  %v8152_v17 = vld [vmem:[#allocation8 + $0x560] ss:$8 sps:$4 sm:$0xff]  }
 0x5a0   :  { %5892 = vmatpush1.bf16.msra.mxu0 %v7948_v33  ;;  %v8004_v33 = vld [vmem:[#allocation8 + $0x244] ss:$8 sps:$4 sm:$0xff]  }
 0x5a1   :  { %5893 = vmatprep.subr.bf16.mxu0 %v7953_v29  ;;  %v8002_v29 = vld [vmem:[#allocation8 + $0x240] ss:$8 sps:$4 sm:$0xff]  }
 0x5a4   :  { %5894 = vmatpush1.bf16.msra.mxu0 %v7951_v9  ;;  %v8016_v9 = vld [vmem:[#allocation8 + $0x284] ss:$8 sps:$4 sm:$0xff]  }
 0x5a5   :  { %5895 = vmatprep.subr.bf16.mxu0 %v7956_v8  ;;  %v8014_v8 = vld [vmem:[#allocation8 + $0x280] ss:$8 sps:$4 sm:$0xff]  }
 0x5a8   :  { %5896 = vmatpush1.bf16.msra.mxu0 %v7954_v48  ;;  %v8019_v48 = vld [vmem:[#allocation8 + $0x294] ss:$8 sps:$4 sm:$0xff]  }
 0x5a9   :  { %5897 = vmatprep.subr.bf16.mxu0 %v7959_v37  ;;  %v8017_v37 = vld [vmem:[#allocation8 + $0x290] ss:$8 sps:$4 sm:$0xff]  }
 0x5ac   :  { %5898 = vmatpush1.bf16.msra.mxu0 %v7957_v34  ;;  %v8022_v34 = vld [vmem:[#allocation8 + $0x2a4] ss:$8 sps:$4 sm:$0xff]  }
 0x5ad   :  { %5899 = vmatprep.subr.bf16.mxu0 %v7962_v61  ;;  %v8020_v61 = vld [vmem:[#allocation8 + $0x2a0] ss:$8 sps:$4 sm:$0xff]  }
 0x5b0   :  { %5900 = vmatpush1.bf16.msra.mxu0 %v7960_v31  ;;  %v8025_v31 = vld [vmem:[#allocation8 + $0x2b4] ss:$8 sps:$4 sm:$0xff]  }
 0x5b1   :  { %5901 = vmatprep.subr.bf16.mxu0 %v7965_v54  ;;  %v8023_v54 = vld [vmem:[#allocation8 + $0x2b0] ss:$8 sps:$4 sm:$0xff]  }
 0x5b4   :  { %5902 = vmatpush1.bf16.msra.mxu0 %v7963_v5  ;;  %v8028_v5 = vld [vmem:[#allocation8 + $0x2c4] ss:$8 sps:$4 sm:$0xff]  }
 0x5b5   :  { %5903 = vmatprep.subr.bf16.mxu0 %v7968_v57  ;;  %v8026_v57 = vld [vmem:[#allocation8 + $0x2c0] ss:$8 sps:$4 sm:$0xff]  }
 0x5b8   :  { %5904 = vmatpush1.bf16.msra.mxu0 %v7966_v62  ;;  %v8031_v62 = vld [vmem:[#allocation8 + $0x2d4] ss:$8 sps:$4 sm:$0xff]  }
 0x5b9   :  { %5905 = vmatprep.subr.bf16.mxu0 %v7971_v1  ;;  %v8029_v1 = vld [vmem:[#allocation8 + $0x2d0] ss:$8 sps:$4 sm:$0xff]  }
 0x5bc   :  { %5906 = vmatpush1.bf16.msra.mxu0 %v7969_v7  ;;  %v8034_v7 = vld [vmem:[#allocation8 + $0x2e4] ss:$8 sps:$4 sm:$0xff]  }
 0x5bd   :  { %5907 = vmatprep.subr.bf16.mxu0 %v7974_v26  ;;  %v8032_v26 = vld [vmem:[#allocation8 + $0x2e0] ss:$8 sps:$4 sm:$0xff]  }
 0x5c0   :  { %5908 = vmatpush1.bf16.msra.mxu0 %v7972_v3  ;;  %v8037_v3 = vld [vmem:[#allocation8 + $0x2f4] ss:$8 sps:$4 sm:$0xff]  }
 0x5c1   :  { %5909 = vmatprep.subr.bf16.mxu0 %v7977_v27  ;;  %v8035_v27 = vld [vmem:[#allocation8 + $0x2f0] ss:$8 sps:$4 sm:$0xff]  }
 0x5c4   :  { %5910 = vmatpush1.bf16.msra.mxu0 %v7975_v12  ;;  %v8040_v12 = vld [vmem:[#allocation8 + $0x304] ss:$8 sps:$4 sm:$0xff]  }
 0x5c5   :  { %5911 = vmatprep.subr.bf16.mxu0 %v7980_v23  ;;  %v8038_v23 = vld [vmem:[#allocation8 + $0x300] ss:$8 sps:$4 sm:$0xff]  }
 0x5c8   :  { %5912 = vmatpush1.bf16.msra.mxu0 %v7978_v39  ;;  %v8043_v39 = vld [vmem:[#allocation8 + $0x314] ss:$8 sps:$4 sm:$0xff]  }
 0x5c9   :  { %5913 = vmatprep.subr.bf16.mxu0 %v7983_v35  ;;  %v8041_v35 = vld [vmem:[#allocation8 + $0x310] ss:$8 sps:$4 sm:$0xff]  }
 0x5cc   :  { %5914 = vmatpush1.bf16.msra.mxu0 %v7981_v44  ;;  %v8046_v44 = vld [vmem:[#allocation8 + $0x324] ss:$8 sps:$4 sm:$0xff]  }
 0x5cd   :  { %5915 = vmatprep.subr.bf16.mxu0 %v7986_v6  ;;  %v8044_v6 = vld [vmem:[#allocation8 + $0x320] ss:$8 sps:$4 sm:$0xff]  }
 0x5d0   :  { %5916 = vmatpush1.bf16.msra.mxu0 %v7984_v52  ;;  %v8049_v52 = vld [vmem:[#allocation8 + $0x334] ss:$8 sps:$4 sm:$0xff]  }
 0x5d1   :  { %5917 = vmatprep.subr.bf16.mxu0 %v7989_v19  ;;  %v8047_v19 = vld [vmem:[#allocation8 + $0x330] ss:$8 sps:$4 sm:$0xff]  }
 0x5d4   :  { %5918 = vmatpush1.bf16.msra.mxu0 %v7987_v40  ;;  %v8052_v40 = vld [vmem:[#allocation8 + $0x344] ss:$8 sps:$4 sm:$0xff]  }
 0x5d5   :  { %5930 = vmatprep.subr.bf16.mxu0 %v7992_v28  ;;  %v8050_v28 = vld [vmem:[#allocation8 + $0x340] ss:$8 sps:$4 sm:$0xff]  }
 0x5d7   :  { %5920 = vmatmul.mubr.bf16.vlgmr.msra.gmra.mrb[8].mxu0 %v4670_v51  ;;  %v8013_v51 = vld [vmem:[#allocation8 + $0x274] ss:$8 sps:$4 sm:$0xff]  }
 0x5d8   :  { %5931 = vmatpush1.bf16.msra.mxu0 %v7990_v55  ;;  %5962 = vmatprep.mubr.bf16.mxu0 %v4673_v15  ;;  %v8011_v15 = vld [vmem:[#allocation8 + $0x270] ss:$8 sps:$4 sm:$0xff]   ;;  %v8064_v55 = vld [vmem:[#allocation8 + $0x384] ss:$8 sps:$4 sm:$0xff]  }
 0x5d9   :  { %5932 = vmatprep.subr.bf16.mxu0 %v7995_v60  ;;  %v8062_v60 = vld [vmem:[#allocation8 + $0x380] ss:$8 sps:$4 sm:$0xff]  }
 0x5dc   :  { %5933 = vmatpush1.bf16.msra.mxu0 %v7993_v16  ;;  %v8067_v16 = vld [vmem:[#allocation8 + $0x394] ss:$8 sps:$4 sm:$0xff]  }
 0x5dd   :  { %5934 = vmatprep.subr.bf16.mxu0 %v7998_v21  ;;  %v8065_v21 = vld [vmem:[#allocation8 + $0x390] ss:$8 sps:$4 sm:$0xff]  }
 0x5e0   :  { %5935 = vmatpush1.bf16.msra.mxu0 %v7996_v46  ;;  %v8070_v46 = vld [vmem:[#allocation8 + $0x3a4] ss:$8 sps:$4 sm:$0xff]  }
 0x5e1   :  { %5936 = vmatprep.subr.bf16.mxu0 %v8001_v42  ;;  %v8068_v42 = vld [vmem:[#allocation8 + $0x3a0] ss:$8 sps:$4 sm:$0xff]  }
 0x5e4   :  { %5937 = vmatpush1.bf16.msra.mxu0 %v7999_v11  ;;  %v8073_v11 = vld [vmem:[#allocation8 + $0x3b4] ss:$8 sps:$4 sm:$0xff]  }
 0x5e5   :  { %5938 = vmatprep.subr.bf16.mxu0 %v8004_v33  ;;  %v8071_v33 = vld [vmem:[#allocation8 + $0x3b0] ss:$8 sps:$4 sm:$0xff]  }
 0x5e8   :  { %5939 = vmatpush1.bf16.msra.mxu0 %v8002_v29  ;;  %v8076_v29 = vld [vmem:[#allocation8 + $0x3c4] ss:$8 sps:$4 sm:$0xff]  }
 0x5e9   :  { %5940 = vmatprep.subr.bf16.mxu0 %v8007_v45  ;;  %v8074_v45 = vld [vmem:[#allocation8 + $0x3c0] ss:$8 sps:$4 sm:$0xff]  }
 0x5ec   :  { %5941 = vmatpush1.bf16.msra.mxu0 %v8005_v53  ;;  %v8079_v53 = vld [vmem:[#allocation8 + $0x3d4] ss:$8 sps:$4 sm:$0xff]  }
 0x5ed   :  { %5942 = vmatprep.subr.bf16.mxu0 %v8010_v18  ;;  %v8077_v18 = vld [vmem:[#allocation8 + $0x3d0] ss:$8 sps:$4 sm:$0xff]  }
 0x5f0   :  { %5943 = vmatpush1.bf16.msra.mxu0 %v8008_v47  ;;  %v8082_v47 = vld [vmem:[#allocation8 + $0x3e4] ss:$8 sps:$4 sm:$0xff]  }
 0x5f1   :  { %5944 = vmatprep.subr.bf16.mxu0 %v8013_v51  ;;  %v8080_v51 = vld [vmem:[#allocation8 + $0x3e0] ss:$8 sps:$4 sm:$0xff]  }
 0x5f4   :  { %5945 = vmatpush1.bf16.msra.mxu0 %v8011_v15  ;;  %v8085_v15 = vld [vmem:[#allocation8 + $0x3f4] ss:$8 sps:$4 sm:$0xff]  }
 0x5f5   :  { %5946 = vmatprep.subr.bf16.mxu0 %v8016_v9  ;;  %v8083_v9 = vld [vmem:[#allocation8 + $0x3f0] ss:$8 sps:$4 sm:$0xff]  }
 0x5f8   :  { %5947 = vmatpush1.bf16.msra.mxu0 %v8014_v8  ;;  %v8088_v8 = vld [vmem:[#allocation8 + $0x404] ss:$8 sps:$4 sm:$0xff]  }
 0x5f9   :  { %5948 = vmatprep.subr.bf16.mxu0 %v8019_v48  ;;  %v8086_v48 = vld [vmem:[#allocation8 + $0x400] ss:$8 sps:$4 sm:$0xff]  }
 0x5fc   :  { %5949 = vmatpush1.bf16.msra.mxu0 %v8017_v37  ;;  %v8091_v37 = vld [vmem:[#allocation8 + $0x414] ss:$8 sps:$4 sm:$0xff]  }
 0x5fd   :  { %5950 = vmatprep.subr.bf16.mxu0 %v8022_v34  ;;  %v8089_v34 = vld [vmem:[#allocation8 + $0x410] ss:$8 sps:$4 sm:$0xff]  }
 0x600   :  { %5951 = vmatpush1.bf16.msra.mxu0 %v8020_v61  ;;  %v8094_v61 = vld [vmem:[#allocation8 + $0x424] ss:$8 sps:$4 sm:$0xff]  }
 0x601   :  { %5952 = vmatprep.subr.bf16.mxu0 %v8025_v31  ;;  %v8092_v31 = vld [vmem:[#allocation8 + $0x420] ss:$8 sps:$4 sm:$0xff]  }
 0x604   :  { %5953 = vmatpush1.bf16.msra.mxu0 %v8023_v54  ;;  %v8097_v54 = vld [vmem:[#allocation8 + $0x434] ss:$8 sps:$4 sm:$0xff]  }
 0x605   :  { %5954 = vmatprep.subr.bf16.mxu0 %v8028_v5  ;;  %v8095_v5 = vld [vmem:[#allocation8 + $0x430] ss:$8 sps:$4 sm:$0xff]  }
 0x608   :  { %5955 = vmatpush1.bf16.msra.mxu0 %v8026_v57  ;;  %v8100_v57 = vld [vmem:[#allocation8 + $0x444] ss:$8 sps:$4 sm:$0xff]  }
 0x609   :  { %5956 = vmatprep.subr.bf16.mxu0 %v8031_v62  ;;  %v8098_v62 = vld [vmem:[#allocation8 + $0x440] ss:$8 sps:$4 sm:$0xff]  }
 0x60c   :  { %5957 = vmatpush1.bf16.msra.mxu0 %v8029_v1  ;;  %v8112_v1 = vld [vmem:[#allocation8 + $0x484] ss:$8 sps:$4 sm:$0xff]  }
 0x60d   :  { %5958 = vmatprep.subr.bf16.mxu0 %v8034_v7  ;;  %v8110_v7 = vld [vmem:[#allocation8 + $0x480] ss:$8 sps:$4 sm:$0xff]  }
 0x610   :  { %5959 = vmatpush1.bf16.msra.mxu0 %v8032_v26  ;;  %v8115_v26 = vld [vmem:[#allocation8 + $0x494] ss:$8 sps:$4 sm:$0xff]  }
 0x611   :  { %5960 = vmatprep.subr.bf16.mxu0 %v8037_v3  ;;  %v8113_v3 = vld [vmem:[#allocation8 + $0x490] ss:$8 sps:$4 sm:$0xff]  }
 0x614   :  { %5961 = vmatpush1.bf16.msra.mxu0 %v8035_v27  ;;  %v8118_v27 = vld [vmem:[#allocation8 + $0x4a4] ss:$8 sps:$4 sm:$0xff]  }
 0x615   :  { %5973 = vmatprep.subr.bf16.mxu0 %v8040_v12  ;;  %v8116_v12 = vld [vmem:[#allocation8 + $0x4a0] ss:$8 sps:$4 sm:$0xff]  }
 0x617   :  { %5963 = vmatmul.mubr.bf16.vlgmr.msra.gmra.mrb[8].mxu0 %v4672_v30  ;;  %v8061_v30 = vld [vmem:[#allocation8 + $0x374] ss:$8 sps:$4 sm:$0xff]  }
 0x618   :  { %5974 = vmatpush1.bf16.msra.mxu0 %v8038_v23  ;;  %6005 = vmatprep.mubr.bf16.mxu0 %v4675_v43  ;;  %v8059_v43 = vld [vmem:[#allocation8 + $0x370] ss:$8 sps:$4 sm:$0xff]   ;;  %v8121_v23 = vld [vmem:[#allocation8 + $0x4b4] ss:$8 sps:$4 sm:$0xff]  }
 0x619   :  { %5975 = vmatprep.subr.bf16.mxu0 %v8043_v39  ;;  %v8119_v39 = vld [vmem:[#allocation8 + $0x4b0] ss:$8 sps:$4 sm:$0xff]  }
 0x61c   :  { %5976 = vmatpush1.bf16.msra.mxu0 %v8041_v35  ;;  %v8124_v35 = vld [vmem:[#allocation8 + $0x4c4] ss:$8 sps:$4 sm:$0xff]  }
 0x61d   :  { %5977 = vmatprep.subr.bf16.mxu0 %v8046_v44  ;;  %v8122_v44 = vld [vmem:[#allocation8 + $0x4c0] ss:$8 sps:$4 sm:$0xff]  }
 0x620   :  { %5978 = vmatpush1.bf16.msra.mxu0 %v8044_v6  ;;  %v8127_v6 = vld [vmem:[#allocation8 + $0x4d4] ss:$8 sps:$4 sm:$0xff]  }
 0x621   :  { %5979 = vmatprep.subr.bf16.mxu0 %v8049_v52  ;;  %v8125_v52 = vld [vmem:[#allocation8 + $0x4d0] ss:$8 sps:$4 sm:$0xff]  }
 0x624   :  { %5980 = vmatpush1.bf16.msra.mxu0 %v8047_v19  ;;  %v8130_v19 = vld [vmem:[#allocation8 + $0x4e4] ss:$8 sps:$4 sm:$0xff]  }
 0x625   :  { %5981 = vmatprep.subr.bf16.mxu0 %v8052_v40  ;;  %v8128_v40 = vld [vmem:[#allocation8 + $0x4e0] ss:$8 sps:$4 sm:$0xff]  }
 0x628   :  { %5982 = vmatpush1.bf16.msra.mxu0 %v8050_v28  ;;  %v8133_v28 = vld [vmem:[#allocation8 + $0x4f4] ss:$8 sps:$4 sm:$0xff]  }
 0x629   :  { %5983 = vmatprep.subr.bf16.mxu0 %v8055_v49  ;;  %v8131_v49 = vld [vmem:[#allocation8 + $0x4f0] ss:$8 sps:$4 sm:$0xff]  }
 0x62c   :  { %5984 = vmatpush1.bf16.msra.mxu0 %v8053_v20  ;;  %v8136_v20 = vld [vmem:[#allocation8 + $0x504] ss:$8 sps:$4 sm:$0xff]  }
 0x62d   :  { %5985 = vmatprep.subr.bf16.mxu0 %v8058_v24  ;;  %v8134_v24 = vld [vmem:[#allocation8 + $0x500] ss:$8 sps:$4 sm:$0xff]  }
 0x630   :  { %5986 = vmatpush1.bf16.msra.mxu0 %v8056_v4  ;;  %v8139_v4 = vld [vmem:[#allocation8 + $0x514] ss:$8 sps:$4 sm:$0xff]  }
 0x631   :  { %5987 = vmatprep.subr.bf16.mxu0 %v8061_v30  ;;  %v8137_v30 = vld [vmem:[#allocation8 + $0x510] ss:$8 sps:$4 sm:$0xff]  }
 0x634   :  { %5988 = vmatpush1.bf16.msra.mxu0 %v8059_v43  ;;  %v8142_v43 = vld [vmem:[#allocation8 + $0x524] ss:$8 sps:$4 sm:$0xff]  }
 0x635   :  { %5989 = vmatprep.subr.bf16.mxu0 %v8064_v55  ;;  %v8140_v55 = vld [vmem:[#allocation8 + $0x520] ss:$8 sps:$4 sm:$0xff]  }
 0x638   :  { %5990 = vmatpush1.bf16.msra.mxu0 %v8062_v60  ;;  %v8145_v60 = vld [vmem:[#allocation8 + $0x534] ss:$8 sps:$4 sm:$0xff]  }
 0x639   :  { %5991 = vmatprep.subr.bf16.mxu0 %v8067_v16  ;;  %v8143_v16 = vld [vmem:[#allocation8 + $0x530] ss:$8 sps:$4 sm:$0xff]  }
 0x63c   :  { %5992 = vmatpush1.bf16.msra.mxu0 %v8065_v21  ;;  %v8148_v21 = vld [vmem:[#allocation8 + $0x544] ss:$8 sps:$4 sm:$0xff]  }
 0x63d   :  { %5993 = vmatprep.subr.bf16.mxu0 %v8070_v46  ;;  %v8146_v46 = vld [vmem:[#allocation8 + $0x540] ss:$8 sps:$4 sm:$0xff]  }
 0x640   :  { %5994 = vmatpush1.bf16.msra.mxu0 %v8068_v42  ;;  %v8160_v42 = vld [vmem:[#allocation8 + $0x584] ss:$8 sps:$4 sm:$0xff]  }
 0x641   :  { %5995 = vmatprep.subr.bf16.mxu0 %v8073_v11  ;;  %v8158_v11 = vld [vmem:[#allocation8 + $0x580] ss:$8 sps:$4 sm:$0xff]  }
 0x644   :  { %5996 = vmatpush1.bf16.msra.mxu0 %v8071_v33  ;;  %v8163_v33 = vld [vmem:[#allocation8 + $0x594] ss:$8 sps:$4 sm:$0xff]  }
 0x645   :  { %5997 = vmatprep.subr.bf16.mxu0 %v8076_v29  ;;  %v8161_v29 = vld [vmem:[#allocation8 + $0x590] ss:$8 sps:$4 sm:$0xff]  }
 0x648   :  { %5998 = vmatpush1.bf16.msra.mxu0 %v8074_v45  ;;  %v8166_v45 = vld [vmem:[#allocation8 + $0x5a4] ss:$8 sps:$4 sm:$0xff]  }
 0x649   :  { %5999 = vmatprep.subr.bf16.mxu0 %v8079_v53  ;;  %v8164_v53 = vld [vmem:[#allocation8 + $0x5a0] ss:$8 sps:$4 sm:$0xff]  }
 0x64c   :  { %6000 = vmatpush1.bf16.msra.mxu0 %v8077_v18  ;;  %v8169_v18 = vld [vmem:[#allocation8 + $0x5b4] ss:$8 sps:$4 sm:$0xff]  }
 0x64d   :  { %6001 = vmatprep.subr.bf16.mxu0 %v8082_v47  ;;  %v8167_v47 = vld [vmem:[#allocation8 + $0x5b0] ss:$8 sps:$4 sm:$0xff]  }
 0x650   :  { %6002 = vmatpush1.bf16.msra.mxu0 %v8080_v51  ;;  %v8172_v51 = vld [vmem:[#allocation8 + $0x5c4] ss:$8 sps:$4 sm:$0xff]  }
 0x651   :  { %6003 = vmatprep.subr.bf16.mxu0 %v8085_v15  ;;  %v8170_v15 = vld [vmem:[#allocation8 + $0x5c0] ss:$8 sps:$4 sm:$0xff]  }
 0x654   :  { %6004 = vmatpush1.bf16.msra.mxu0 %v8083_v9  ;;  %v8175_v9 = vld [vmem:[#allocation8 + $0x5d4] ss:$8 sps:$4 sm:$0xff]  }
 0x655   :  { %6016 = vmatprep.subr.bf16.mxu0 %v8088_v8  ;;  %v8173_v8 = vld [vmem:[#allocation8 + $0x5d0] ss:$8 sps:$4 sm:$0xff]  }
 0x657   :  { %6006 = vmatmul.mubr.bf16.vlgmr.msra.gmra.mrb[8].mxu0 %v4674_v14  ;;  %v8104_v14 = vld [vmem:[#allocation8 + $0x460] ss:$8 sps:$4 sm:$0xff]  }
 0x658   :  { %6017 = vmatpush1.bf16.msra.mxu0 %v8086_v48  ;;  %6048 = vmatprep.mubr.bf16.mxu0 %v4677_v50  ;;  %v8107_v50 = vld [vmem:[#allocation8 + $0x470] ss:$8 sps:$4 sm:$0xff]   ;;  %v8178_v48 = vld [vmem:[#allocation8 + $0x5e4] ss:$8 sps:$4 sm:$0xff]  }
 0x659   :  { %6018 = vmatprep.subr.bf16.mxu0 %v8091_v37  ;;  %v8176_v37 = vld [vmem:[#allocation8 + $0x5e0] ss:$8 sps:$4 sm:$0xff]  }
 0x65c   :  { %6019 = vmatpush1.bf16.msra.mxu0 %v8089_v34  ;;  %v8181_v34 = vld [vmem:[#allocation8 + $0x5f4] ss:$8 sps:$4 sm:$0xff]  }
 0x65d   :  { %6020 = vmatprep.subr.bf16.mxu0 %v8094_v61  ;;  %v8179_v61 = vld [vmem:[#allocation8 + $0x5f0] ss:$8 sps:$4 sm:$0xff]  }
 0x660   :  { %6021 = vmatpush1.bf16.msra.mxu0 %v8092_v31  ;;  %v4872_v31 = vld [vmem:[#allocation10] sm:$0x3] }
 0x661   :  { %6022 = vmatprep.subr.bf16.mxu0 %v8097_v54  ;;  %v4877_v54 = vrot.slane %v4872_v31, %v8593_v22 }
 0x664   :  { %6023 = vmatpush1.bf16.msra.mxu0 %v8095_v5  ;;  %v4881_v5 = vrot.slane %v4872_v31, %v8598_v56 }
 0x665   :  { %6024 = vmatprep.subr.bf16.mxu0 %v8100_v57 }
 0x668   :  { %6025 = vmatpush1.bf16.msra.mxu0 %v8098_v62 }
 0x669   :  { %6026 = vmatprep.subr.bf16.mxu0 %v8103_v58 }
 0x66c   :  { %6027 = vmatpush1.bf16.msra.mxu0 %v8101_v2 }
 0x66d   :  { %6028 = vmatprep.subr.bf16.mxu0 %v8106_v25 }
 0x670   :  { %6029 = vmatpush1.bf16.msra.mxu0 %v8104_v14 }
 0x671   :  { %6030 = vmatprep.subr.bf16.mxu0 %v8109_v41 }
 0x674   :  { %6031 = vmatpush1.bf16.msra.mxu0 %v8107_v50 }
 0x675   :  { %6032 = vmatprep.subr.bf16.mxu0 %v8112_v1 }
 0x678   :  { %6033 = vmatpush1.bf16.msra.mxu0 %v8110_v7 }
 0x679   :  { %6034 = vmatprep.subr.bf16.mxu0 %v8115_v26 }
 0x67c   :  { %6035 = vmatpush1.bf16.msra.mxu0 %v8113_v3 }
 0x67d   :  { %6036 = vmatprep.subr.bf16.mxu0 %v8118_v27 }
 0x680   :  { %6037 = vmatpush1.bf16.msra.mxu0 %v8116_v12 }
 0x681   :  { %6038 = vmatprep.subr.bf16.mxu0 %v8121_v23 }
 0x684   :  { %6039 = vmatpush1.bf16.msra.mxu0 %v8119_v39 }
 0x685   :  { %6040 = vmatprep.subr.bf16.mxu0 %v8124_v35 }
 0x688   :  { %6041 = vmatpush1.bf16.msra.mxu0 %v8122_v44 }
 0x689   :  { %6042 = vmatprep.subr.bf16.mxu0 %v8127_v6 }
 0x68c   :  { %6043 = vmatpush1.bf16.msra.mxu0 %v8125_v52 }
 0x68d   :  { %6044 = vmatprep.subr.bf16.mxu0 %v8130_v19 }
 0x690   :  { %6045 = vmatpush1.bf16.msra.mxu0 %v8128_v40 }
 0x691   :  { %6046 = vmatprep.subr.bf16.mxu0 %v8133_v28 }
 0x694   :  { %6047 = vmatpush1.bf16.msra.mxu0 %v8131_v49 }
 0x695   :  { %6059 = vmatprep.subr.bf16.mxu0 %v8136_v20 }
 0x697   :  { %6049 = vmatmul.mubr.bf16.vlgmr.msra.gmra.mrb[8].mxu0 %v4676_v0  ;;  %v8157_v0 = vld [vmem:[#allocation8 + $0x574] ss:$8 sps:$4 sm:$0xff]  }
 0x698   :  { %6060 = vmatpush1.bf16.msra.mxu0 %v8134_v24  ;;  %6091 = vmatprep.mubr.bf16.mxu0 %v4679_v63  ;;  %v8155_v63 = vld [vmem:[#allocation8 + $0x570] ss:$8 sps:$4 sm:$0xff]  }
 0x699   :  { %6061 = vmatprep.subr.bf16.mxu0 %v8139_v4 }
 0x69c   :  { %6062 = vmatpush1.bf16.msra.mxu0 %v8137_v30 }
 0x69d   :  { %6063 = vmatprep.subr.bf16.mxu0 %v8142_v43 }
 0x6a0   :  { %6064 = vmatpush1.bf16.msra.mxu0 %v8140_v55 }
 0x6a1   :  { %6065 = vmatprep.subr.bf16.mxu0 %v8145_v60 }
 0x6a4   :  { %6066 = vmatpush1.bf16.msra.mxu0 %v8143_v16 }
 0x6a5   :  { %6067 = vmatprep.subr.bf16.mxu0 %v8148_v21 }
 0x6a8   :  { %6068 = vmatpush1.bf16.msra.mxu0 %v8146_v46 }
 0x6a9   :  { %6069 = vmatprep.subr.bf16.mxu0 %v8151_v13 }
 0x6ac   :  { %6070 = vmatpush1.bf16.msra.mxu0 %v8149_v59 }
 0x6ad   :  { %6071 = vmatprep.subr.bf16.mxu0 %v8154_v10 }
 0x6b0   :  { %6072 = vmatpush1.bf16.msra.mxu0 %v8152_v17 }
 0x6b1   :  { %6073 = vmatprep.subr.bf16.mxu0 %v8157_v0 }
 0x6b4   :  { %6074 = vmatpush1.bf16.msra.mxu0 %v8155_v63 }
 0x6b5   :  { %6075 = vmatprep.subr.bf16.mxu0 %v8160_v42 }
 0x6b8   :  { %6076 = vmatpush1.bf16.msra.mxu0 %v8158_v11 }
 0x6b9   :  { %6077 = vmatprep.subr.bf16.mxu0 %v8163_v33 }
 0x6bc   :  { %6078 = vmatpush1.bf16.msra.mxu0 %v8161_v29 }
 0x6bd   :  { %6079 = vmatprep.subr.bf16.mxu0 %v8166_v45 }
 0x6c0   :  { %6080 = vmatpush1.bf16.msra.mxu0 %v8164_v53 }
 0x6c1   :  { %6081 = vmatprep.subr.bf16.mxu0 %v8169_v18 }
 0x6c4   :  { %6082 = vmatpush1.bf16.msra.mxu0 %v8167_v47 }
 0x6c5   :  { %6083 = vmatprep.subr.bf16.mxu0 %v8172_v51 }
 0x6c8   :  { %6084 = vmatpush1.bf16.msra.mxu0 %v8170_v15 }
 0x6c9   :  { %6085 = vmatprep.subr.bf16.mxu0 %v8175_v9 }
 0x6cc   :  { %6086 = vmatpush1.bf16.msra.mxu0 %v8173_v8 }
 0x6cd   :  { %6087 = vmatprep.subr.bf16.mxu0 %v8178_v48 }
 0x6d0   :  { %6088 = vmatpush1.bf16.msra.mxu0 %v8176_v37 }
 0x6d1   :  { %6089 = vmatprep.subr.bf16.mxu0 %v8181_v34 }
 0x6d4   :  { %6090 = vmatpush1.bf16.msra.mxu0 %v8179_v61 }
 0x6d7   :  { %6092 = vmatmul.mubr.bf16.vlgmr.msra.gmra.mrb[8].mxu0 %v4678_v36 }
 0x7aa   :  { %v6093_v57 = vpop.f32.mrb[8].mxu0 }
 0x7ab   :  { %v6937_v62 = vadd.f32 %v6093_v57, %v4877_v54  ;;  %v6095_v58 = vpop.f32.mrb[9].mxu0 }
 0x7ac   :  { %v6938_v2 = vadd.f32 %v6095_v58, %v4881_v5  ;;  %v6097_v25 = vpop.f32.mrb[10].mxu0 }
 0x7ad   :  { %v6939_v14 = vadd.f32 %v6097_v25, %v4877_v54  ;;  %v6099_v41 = vpop.f32.mrb[11].mxu0 }
 0x7ae   :  { %v6911_v50 = vpack.c.bf16 %v6938_v2, %v6937_v62  ;;  %v6940_v1 = vadd.f32 %v6099_v41, %v4881_v5 }
 0x7b0   :  { %6114 = vst [vmem:[#allocation11] sm:$0xff] %v6911_v50  ;;  %v6912_v7 = vpack.c.bf16 %v6940_v1, %v6939_v14 }
 0x7b2   :  { %6115 = vst [vmem:[#allocation11 + $0x8] sm:$0xff] %v6912_v7 }
 0x7b3   :  { %8367 = shalt.err (!%p8364_p2)
}
 0x7b4   :  { %s8368_s9 = scalar_lea.hbm %s9035_s5, 256 }
 0x7b5   :  { %p8369_p3 = scmp.ne.s32.totalorder %s9035_s5, %s8368_s9  ;;  %p8372_p4 = scmp.lt.u32.totalorder %s8368_s9, %s9035_s5 }
 0x7b7   :  { %p8374_p5 = pnand %p8372_p4, %p8369_p3 }
 0x7b9   :  { %8377 = shalt.err (!%p8374_p5)
}
 0x7ba   :  { %6127 = dma.vmem_to_hbm [thread:$0]  %s6122_s30, 256, %s9035_s5, [#allocation4], %s8390_s1, %s8390_s1, %s8391_s17  }
 0x7bb   :  { %8384 = dma.done.wait [#allocation4], 256  }
 0x7bc   :  { %8385 = vsyncadd [#allocation4], 4294967040 }
 0x7bd   :  { %6131 = vsyncpa [#allocation3], 1 }
 0x7be   :  { %6132 = vsyncpa [#allocation6], 1 }
 0x7bf   :  { %6133 = vsyncpa [#allocation9], 1 }
 0x7c0   :  { %6134 = vsyncpa [#allocation4], 1 }

</bundles_post_ra>
